<compile_context>
chip_gen: v7x
topology: tpu7x:2x2x1
jax: 0.10.0
libtpu: 0.0.40
codegen_flags: <defaults>
</compile_context>

<pallas_src>
import functools

import jax
import jax.numpy as jnp
import numpy as np
from jax.experimental import pallas as pl
from jax.experimental.pallas import tpu as pltpu


# VMEM budget used both for TB auto-sizing and as the scoped compiler limit:
# safely below v7x's 64 MiB/TC while above v6e's 32 MiB default scoped cap.
_VMEM_BUDGET_BYTES = 48 * 1024 * 1024


def _layer_norm(x, g, b, eps=1e-5):
    mu = jnp.mean(x, axis=-1, keepdims=True)
    var = jnp.mean((x - mu) ** 2, axis=-1, keepdims=True)
    return (x - mu) * jax.lax.rsqrt(var + eps) * g + b


def _normalize_adj(adj, eps=1e-5):
    # nn.InstanceNorm2d(1) on a [1, 1, N, N] tensor == whole-matrix normalization.
    mu = jnp.mean(adj)
    var = jnp.mean((adj - mu) ** 2)
    return (adj - mu) * jax.lax.rsqrt(var + eps)


def _block_diag(w, heads):
    """Per-head (D, D) weight in `x @ W` form -> (C, C) block-diagonal kron(I_H, W)."""
    return jnp.kron(jnp.eye(heads, dtype=w.dtype), w)


def st_transformer_kernel(
    v_ref, k_ref, q_ref, adj_ref,
    wq_ref, wk_ref, wv_ref, wfc_ref, bfc_ref,
    ln1g_ref, ln1b_ref,
    w1_ref, b1_ref, w2_ref, b2_ref,
    ln2g_ref, ln2b_ref,
    wg1_ref, bg1_ref, wg2_ref, bg2_ref,
    wo1_ref, wo2_ref, bo_ref,
    out_ref,
    *, heads, approx_softmax,
):
    N, TB, C = q_ref.shape          # nodes, time block, embed
    H = heads
    D = C // H
    B = TB * H                      # (time, head) attention batch
    R = N * TB                      # row count of the flattened (node, time) view
    f32 = jnp.float32
    mm = wq_ref.dtype               # matmul-operand dtype (f32 or bf16)

    # Row views: row = (node, time); cheap leading-dim merges, no lane movement.
    v2 = v_ref[...].reshape(R, C)
    k2 = k_ref[...].reshape(R, C)
    q2 = q_ref[...].reshape(R, C)

    def rdot(x, w_ref):             # (R, C) @ (C, K), f32 accumulate
        return jnp.dot(x.astype(mm), w_ref[...], preferred_element_type=f32)

    # ---- spatial self-attention --------------------------------------------
    # Per-head projections as C-wide block-diagonal matmuls (no D=8 MXU tiles,
    # no pre-projection head transposes).  1/sqrt(C) is folded into Wq.
    qp = rdot(q2, wq_ref)
    kp = rdot(k2, wk_ref)
    vp = rdot(v2, wv_ref)

    def to_head_batch(x):           # (R, C) -> (TB*H, N, D), batch = (t, h)
        return x.reshape(N, TB, H, D).transpose(1, 2, 0, 3).reshape(B, N, D)

    qh = to_head_batch(qp)
    kh = to_head_batch(kp)
    vh = to_head_batch(vp)

    e = jnp.einsum('bqd,bkd->bqk', qh.astype(mm), kh.astype(mm),
                   preferred_element_type=f32)
    e = e - jnp.max(e, axis=-1, keepdims=True)
    p = jnp.exp(e)
    den = jnp.sum(p, axis=-1, keepdims=True)
    if approx_softmax:
        att = p * pl.reciprocal(den, approx=True)     # EUP slot (bf16 fast path)
    else:
        att = p / den                                 # exact f32 semantics
    oh = jnp.einsum('bqk,bkd->bqd', att.astype(mm), vh.astype(mm),
                    preferred_element_type=f32)
    # merge heads back into (node, time) rows and apply fc_out in one matmul
    o2 = oh.reshape(TB, H, N, D).transpose(2, 0, 1, 3).reshape(R, C)
    attention = rdot(o2, wfc_ref) + bfc_ref[...]

    # ---- norm1 + feed-forward + norm2 (dropout == identity) -----------------
    x = _layer_norm(attention + q2, ln1g_ref[...], ln1b_ref[...])
    h1 = jnp.maximum(rdot(x, w1_ref) + b1_ref[...], 0.0)
    ff = rdot(h1, w2_ref) + b2_ref[...]
    out1 = _layer_norm(ff + x, ln2g_ref[...], ln2b_ref[...])

    # ---- GCN branch (adj pre-normalized in the wrapper) ----------------------
    an_b = jnp.broadcast_to(adj_ref[...], (TB, N, N))       # (TB, N, N), mm dtype
    s1 = rdot(q2, wg1_ref)                                   # (R, C), rows = (n, t)
    s1_t = s1.reshape(N, TB, C).transpose(1, 0, 2)           # (TB, N, C)
    r1_t = jnp.einsum('tnm,tmc->tnc', an_b, s1_t.astype(mm),
                      preferred_element_type=f32)
    r1_t = jnp.maximum(r1_t + bg1_ref[...], 0.0)
    s2_t = jnp.dot(r1_t.reshape(TB * N, C).astype(mm), wg2_ref[...],
                   preferred_element_type=f32).reshape(TB, N, C)
    out2_t = jnp.einsum('tnm,tmc->tnc', an_b, s2_t.astype(mm),
                        preferred_element_type=f32) + bg2_ref[...]
    out2 = out2_t.transpose(1, 0, 2).reshape(R, C)           # back to (n, t) rows

    # ---- gated fusion: two K=C matmuls, no lane concat ----------------------
    g = jax.nn.sigmoid(rdot(out1, wo1_ref) + rdot(out2, wo2_ref) + bo_ref[...])
    y = g * out1 + (1.0 - g) * out2
    out_ref[...] = y.reshape(N, TB, C)


def _workset_bytes(tb, n, c, h, f):
    """Coarse per-grid-step VMEM estimate (f32, lane-padded), for TB sizing."""
    rows = tb * n
    lane = 128
    act = 4 * rows * (12 * c + 2 * f)                 # live row-form intermediates
    attn = 4 * 4 * tb * h * n * max(n, lane)          # head-batched q/k/v + scores
    blocks = 4 * 2 * 4 * rows * max(c, lane)          # 3 in + 1 out, double-buffered
    return act + attn + blocks


def _choose_time_block(T, n, c, h, f, budget=_VMEM_BUDGET_BYTES):
    """Largest TB dividing T that is sublane-legal (TB % 8 == 0 or TB == T),
    prefers an even grid of >= 2 steps (both v7x TensorCores busy) and fits the
    per-step working set in the VMEM budget."""
    candidates = []
    for tb in range(1, T + 1):
        if T % tb:
            continue
        if tb % 8 != 0 and tb != T:
            continue
        if _workset_bytes(tb, n, c, h, f) > budget // 2:
            continue
        steps = T // tb
        candidates.append((steps >= 2, steps % 2 == 0, tb))
    if not candidates:
        return T
    return sorted(candidates)[-1][2]


def init_params(key, embed_size, heads, forward_expansion):
    """Deterministic synthetic parameters, stored in `x @ W` form (f32)."""
    D = embed_size // heads
    F = forward_expansion * embed_size
    shapes = {
        'Wv': (D, D), 'Wk': (D, D), 'Wq': (D, D),
        'Wfc': (embed_size, embed_size), 'bfc': (1, embed_size),
        'ln1_g': (1, embed_size), 'ln1_b': (1, embed_size),
        'W1': (embed_size, F), 'b1': (1, F),
        'W2': (F, embed_size), 'b2': (1, embed_size),
        'ln2_g': (1, embed_size), 'ln2_b': (1, embed_size),
        'Wg1': (embed_size, embed_size), 'bg1': (1, embed_size),
        'Wg2': (embed_size, embed_size), 'bg2': (1, embed_size),
        'Wo1': (embed_size, embed_size), 'bo1': (1, embed_size),
        'Wo2': (embed_size, embed_size), 'bo2': (1, embed_size),
    }
    params = {}
    keys = jax.random.split(key, len(shapes))
    for kk, (name, shp) in zip(keys, shapes.items()):
        params[name] = (0.1 * jax.random.normal(kk, shp)).astype(jnp.float32)
    # PyTorch LayerNorm default init: gamma = 1, beta = 0
    params['ln1_g'] = jnp.ones((1, embed_size), jnp.float32)
    params['ln1_b'] = jnp.zeros((1, embed_size), jnp.float32)
    params['ln2_g'] = jnp.ones((1, embed_size), jnp.float32)
    params['ln2_b'] = jnp.zeros((1, embed_size), jnp.float32)
    return params


def st_transformer_forward(value, key, query, adj, params, heads,
                           time_block=None, matmul_dtype=jnp.float32):
    """PyTorch-layout [N, T, C] inputs -> fused kernel gridded over T.

    Inputs/outputs stay in (N, T, C); the time axis is blocked purely through
    BlockSpec index_maps (no wrapper HBM transposes)."""
    N, T, C = query.shape
    f32 = jnp.float32
    mm = matmul_dtype
    F = params['W1'].shape[1]

    TB = (_choose_time_block(T, N, C, heads, F) if time_block is None
          else int(time_block))
    assert T % TB == 0, "time_block must divide T"
    n_steps = T // TB

    # Hoisted one-time transforms: fused block-diagonal head projections
    # (1/sqrt(C) folded into Wq), InstanceNorm2d of the adjacency, fused gate bias.
    inv_sqrt_c = 1.0 / float(np.sqrt(C))
    wq_bd = (_block_diag(params['Wq'], heads) * inv_sqrt_c).astype(mm)
    wk_bd = _block_diag(params['Wk'], heads).astype(mm)
    wv_bd = _block_diag(params['Wv'], heads).astype(mm)
    adj_n = _normalize_adj(adj.astype(f32)).astype(mm)
    bo_sum = (params['bo1'] + params['bo2']).astype(f32)

    w = lambda n: params[n].astype(mm)    # matmul weights -> mm dtype
    b = lambda n: params[n].astype(f32)   # biases / LN params stay f32

    args = [
        value.astype(f32), key.astype(f32), query.astype(f32), adj_n,
        wq_bd, wk_bd, wv_bd, w('Wfc'), b('bfc'),
        b('ln1_g'), b('ln1_b'),
        w('W1'), b('b1'), w('W2'), b('b2'),
        b('ln2_g'), b('ln2_b'),
        w('Wg1'), b('bg1'), w('Wg2'), b('bg2'),
        w('Wo1'), w('Wo2'), bo_sum,
    ]

    blocked = pl.BlockSpec((N, TB, C), lambda t: (0, t, 0))   # T-axis pipelining

    def resident(a):
        # Full array, constant index_map -> stays VMEM-resident across grid steps.
        # TODO(synk): at real model scale add pipeline_mode=pl.Buffered(1) here so
        #             constant-index weights are single-buffered (VMEM win on v7x).
        return pl.BlockSpec(a.shape, lambda t, _nd=a.ndim: (0,) * _nd)

    in_specs = [blocked, blocked, blocked] + [resident(a) for a in args[3:]]

    kernel = functools.partial(
        st_transformer_kernel, heads=heads,
        approx_softmax=(np.dtype(mm) != np.dtype(np.float32)))

    out = pl.pallas_call(
        kernel,
        out_shape=jax.ShapeDtypeStruct((N, T, C), f32),
        grid=(n_steps,),
        in_specs=in_specs,
        out_specs=pl.BlockSpec((N, TB, C), lambda t: (0, t, 0)),
        compiler_params=pltpu.CompilerParams(
            dimension_semantics=("parallel",),          # megacore-shard the T axis
            vmem_limit_bytes=_VMEM_BUDGET_BYTES),
    )(*args)
    return out


def reference_forward(value, key, query, adj, params, heads,
                      matmul_dtype=jnp.float32):
    """Pure-JAX reference mirroring the PyTorch forward literally (NTC layout).

    Matmul operands are rounded to `matmul_dtype` (f32 accumulation), so the
    same function is both the exact f32 reference and the numerics target for
    the bf16-matmul kernel path."""
    N, T, C = query.shape
    D = C // heads
    f32 = jnp.float32
    c = lambda a: a.astype(matmul_dtype)
    ein = functools.partial(jnp.einsum, preferred_element_type=f32)

    v = value.reshape(N, T, heads, D)
    k = key.reshape(N, T, heads, D)
    q = query.reshape(N, T, heads, D)
    vp = ein('nthd,de->nthe', c(v), c(params['Wv']))
    kp = ein('nthd,de->nthe', c(k), c(params['Wk']))
    qp = ein('nthd,de->nthe', c(q), c(params['Wq']))
    energy = ein('qthd,kthd->qkth', c(qp), c(kp))
    att = jax.nn.softmax(energy / (C ** 0.5), axis=1)
    out = ein('qkth,kthd->qthd', c(att), c(vp)).reshape(N, T, C)
    attention = ein('ntc,cd->ntd', c(out), c(params['Wfc'])) + params['bfc']

    x = _layer_norm(attention + query, params['ln1_g'], params['ln1_b'])
    h1 = jax.nn.relu(ein('ntc,cf->ntf', c(x), c(params['W1'])) + params['b1'])
    ff = ein('ntf,fc->ntc', c(h1), c(params['W2'])) + params['b2']
    out1 = _layer_norm(ff + x, params['ln2_g'], params['ln2_b'])

    an = c(_normalize_adj(adj.astype(f32)))
    s1 = ein('ntc,cd->ntd', c(query), c(params['Wg1']))
    r1 = jax.nn.relu(ein('nm,mtc->ntc', an, c(s1)) + params['bg1'])
    s2 = ein('ntc,cd->ntd', c(r1), c(params['Wg2']))
    out2 = ein('nm,mtc->ntc', an, c(s2)) + params['bg2']

    g = jax.nn.sigmoid(
        ein('ntc,cd->ntd', c(out1), c(params['Wo1'])) + params['bo1']
        + ein('ntc,cd->ntd', c(out2), c(params['Wo2'])) + params['bo2'])
    return g * out1 + (1 - g) * out2


if __name__ == "__main__":
    EMBED, HEADS, FWD_EXP = 32, 4, 2
    N_NODES, T_STEPS = 8, 16

    root = jax.random.PRNGKey(0)
    k_in, k_par = jax.random.split(root)
    kv, kk, kq, ka = jax.random.split(k_in, 4)
    value = jax.random.normal(kv, (N_NODES, T_STEPS, EMBED), jnp.float32)
    key_x = jax.random.normal(kk, (N_NODES, T_STEPS, EMBED), jnp.float32)
    query = jax.random.normal(kq, (N_NODES, T_STEPS, EMBED), jnp.float32)
    adj = jax.random.uniform(ka, (N_NODES, N_NODES), jnp.float32)
    params = init_params(k_par, EMBED, HEADS, FWD_EXP)

    # 1) exact-semantics check: f32 matmul path (exact softmax divide) vs the
    #    literal forward.
    out_f32 = jax.block_until_ready(
        st_transformer_forward(value, key_x, query, adj, params, HEADS,
                               matmul_dtype=jnp.float32))
    ref_f32 = reference_forward(value, key_x, query, adj, params, HEADS,
                                matmul_dtype=jnp.float32)
    assert out_f32.shape == (N_NODES, T_STEPS, EMBED)
    np.testing.assert_allclose(np.asarray(out_f32), np.asarray(ref_f32),
                               atol=5e-3, rtol=5e-3)

    # 2) fast path (all generations, incl. v5e): bf16 matmul operands, f32
    #    accumulation / VPU math, checked against the bf16-rounded reference.
    out_bf16 = jax.block_until_ready(
        st_transformer_forward(value, key_x, query, adj, params, HEADS,
                               matmul_dtype=jnp.bfloat16))
    ref_bf16 = reference_forward(value, key_x, query, adj, params, HEADS,
                                 matmul_dtype=jnp.bfloat16)
    np.testing.assert_allclose(np.asarray(out_bf16), np.asarray(ref_bf16),
                               atol=3e-2, rtol=3e-2)

    print("KERNEL_OK")
</pallas_src>

<mosaic_0001>
module attributes {stable_mosaic.version = 11 : i64} {
  func.func @st_transformer_kernel(%arg0: i32, %arg1: memref<8x8x32xf32, #tpu.memory_space<vmem>>, %arg2: memref<8x8x32xf32, #tpu.memory_space<vmem>>, %arg3: memref<8x8x32xf32, #tpu.memory_space<vmem>>, %arg4: memref<8x8xf32, #tpu.memory_space<vmem>>, %arg5: memref<32x32xf32, #tpu.memory_space<vmem>>, %arg6: memref<32x32xf32, #tpu.memory_space<vmem>>, %arg7: memref<32x32xf32, #tpu.memory_space<vmem>>, %arg8: memref<32x32xf32, #tpu.memory_space<vmem>>, %arg9: memref<1x32xf32, #tpu.memory_space<vmem>>, %arg10: memref<1x32xf32, #tpu.memory_space<vmem>>, %arg11: memref<1x32xf32, #tpu.memory_space<vmem>>, %arg12: memref<32x64xf32, #tpu.memory_space<vmem>>, %arg13: memref<1x64xf32, #tpu.memory_space<vmem>>, %arg14: memref<64x32xf32, #tpu.memory_space<vmem>>, %arg15: memref<1x32xf32, #tpu.memory_space<vmem>>, %arg16: memref<1x32xf32, #tpu.memory_space<vmem>>, %arg17: memref<1x32xf32, #tpu.memory_space<vmem>>, %arg18: memref<32x32xf32, #tpu.memory_space<vmem>>, %arg19: memref<1x32xf32, #tpu.memory_space<vmem>>, %arg20: memref<32x32xf32, #tpu.memory_space<vmem>>, %arg21: memref<1x32xf32, #tpu.memory_space<vmem>>, %arg22: memref<32x32xf32, #tpu.memory_space<vmem>>, %arg23: memref<32x32xf32, #tpu.memory_space<vmem>>, %arg24: memref<1x32xf32, #tpu.memory_space<vmem>>, %arg25: memref<8x8x32xf32, #tpu.memory_space<vmem>>) attributes {dimension_semantics = [#tpu.dimension_semantics<parallel>], iteration_bounds = array<i64: 2>, scalar_prefetch = 0 : i64, scratch_operands = 0 : i64, tpu.core_type = #tpu.core_type<tc>, window_params = [{transform_indices = @transform_0, window_bounds = array<i64: 8, 8, 32>}, {transform_indices = @transform_1, window_bounds = array<i64: 8, 8, 32>}, {transform_indices = @transform_2, window_bounds = array<i64: 8, 8, 32>}, {pipeline_mode = #tpu.pipeline_mode<synchronous>, transform_indices = @transform_3, window_bounds = array<i64: 8, 8>}, {pipeline_mode = #tpu.pipeline_mode<synchronous>, transform_indices = @transform_4, window_bounds = array<i64: 32, 32>}, {pipeline_mode = #tpu.pipeline_mode<synchronous>, transform_indices = @transform_5, window_bounds = array<i64: 32, 32>}, {pipeline_mode = #tpu.pipeline_mode<synchronous>, transform_indices = @transform_6, window_bounds = array<i64: 32, 32>}, {pipeline_mode = #tpu.pipeline_mode<synchronous>, transform_indices = @transform_7, window_bounds = array<i64: 32, 32>}, {pipeline_mode = #tpu.pipeline_mode<synchronous>, transform_indices = @transform_8, window_bounds = array<i64: 1, 32>}, {pipeline_mode = #tpu.pipeline_mode<synchronous>, transform_indices = @transform_9, window_bounds = array<i64: 1, 32>}, {pipeline_mode = #tpu.pipeline_mode<synchronous>, transform_indices = @transform_10, window_bounds = array<i64: 1, 32>}, {pipeline_mode = #tpu.pipeline_mode<synchronous>, transform_indices = @transform_11, window_bounds = array<i64: 32, 64>}, {pipeline_mode = #tpu.pipeline_mode<synchronous>, transform_indices = @transform_12, window_bounds = array<i64: 1, 64>}, {pipeline_mode = #tpu.pipeline_mode<synchronous>, transform_indices = @transform_13, window_bounds = array<i64: 64, 32>}, {pipeline_mode = #tpu.pipeline_mode<synchronous>, transform_indices = @transform_14, window_bounds = array<i64: 1, 32>}, {pipeline_mode = #tpu.pipeline_mode<synchronous>, transform_indices = @transform_15, window_bounds = array<i64: 1, 32>}, {pipeline_mode = #tpu.pipeline_mode<synchronous>, transform_indices = @transform_16, window_bounds = array<i64: 1, 32>}, {pipeline_mode = #tpu.pipeline_mode<synchronous>, transform_indices = @transform_17, window_bounds = array<i64: 32, 32>}, {pipeline_mode = #tpu.pipeline_mode<synchronous>, transform_indices = @transform_18, window_bounds = array<i64: 1, 32>}, {pipeline_mode = #tpu.pipeline_mode<synchronous>, transform_indices = @transform_19, window_bounds = array<i64: 32, 32>}, {pipeline_mode = #tpu.pipeline_mode<synchronous>, transform_indices = @transform_20, window_bounds = array<i64: 1, 32>}, {pipeline_mode = #tpu.pipeline_mode<synchronous>, transform_indices = @transform_21, window_bounds = array<i64: 32, 32>}, {pipeline_mode = #tpu.pipeline_mode<synchronous>, transform_indices = @transform_22, window_bounds = array<i64: 32, 32>}, {pipeline_mode = #tpu.pipeline_mode<synchronous>, transform_indices = @transform_23, window_bounds = array<i64: 1, 32>}, {transform_indices = @transform_24, window_bounds = array<i64: 8, 8, 32>}]} {
    %c0 = arith.constant 0 : index
    %c0_0 = arith.constant 0 : index
    %c0_1 = arith.constant 0 : index
    %0 = vector.load %arg1[%c0, %c0_0, %c0_1] : memref<8x8x32xf32, #tpu.memory_space<vmem>>, vector<8x8x32xf32>
    %1 = vector.shape_cast %0 : vector<8x8x32xf32> to vector<64x32xf32>
    %c0_2 = arith.constant 0 : index
    %c0_3 = arith.constant 0 : index
    %c0_4 = arith.constant 0 : index
    %2 = vector.load %arg2[%c0_2, %c0_3, %c0_4] : memref<8x8x32xf32, #tpu.memory_space<vmem>>, vector<8x8x32xf32>
    %3 = vector.shape_cast %2 : vector<8x8x32xf32> to vector<64x32xf32>
    %c0_5 = arith.constant 0 : index
    %c0_6 = arith.constant 0 : index
    %c0_7 = arith.constant 0 : index
    %4 = vector.load %arg3[%c0_5, %c0_6, %c0_7] : memref<8x8x32xf32, #tpu.memory_space<vmem>>, vector<8x8x32xf32>
    %5 = vector.shape_cast %4 : vector<8x8x32xf32> to vector<64x32xf32>
    %c0_8 = arith.constant 0 : index
    %c0_9 = arith.constant 0 : index
    %6 = vector.load %arg5[%c0_8, %c0_9] : memref<32x32xf32, #tpu.memory_space<vmem>>, vector<32x32xf32>
    %cst = arith.constant dense<0.000000e+00> : vector<64x32xf32>
    %7 = tpu.matmul %5, %6, %cst {dimension_numbers = #tpu.dot_dimension_numbers<[1], [0], [0], [1], [0, 0, 1, 1], [], []>} : vector<64x32xf32>, vector<32x32xf32>, vector<64x32xf32> -> vector<64x32xf32>
    %c0_10 = arith.constant 0 : index
    %c0_11 = arith.constant 0 : index
    %8 = vector.load %arg6[%c0_10, %c0_11] : memref<32x32xf32, #tpu.memory_space<vmem>>, vector<32x32xf32>
    %cst_12 = arith.constant dense<0.000000e+00> : vector<64x32xf32>
    %9 = tpu.matmul %3, %8, %cst_12 {dimension_numbers = #tpu.dot_dimension_numbers<[1], [0], [0], [1], [0, 0, 1, 1], [], []>} : vector<64x32xf32>, vector<32x32xf32>, vector<64x32xf32> -> vector<64x32xf32>
    %c0_13 = arith.constant 0 : index
    %c0_14 = arith.constant 0 : index
    %10 = vector.load %arg7[%c0_13, %c0_14] : memref<32x32xf32, #tpu.memory_space<vmem>>, vector<32x32xf32>
    %cst_15 = arith.constant dense<0.000000e+00> : vector<64x32xf32>
    %11 = tpu.matmul %1, %10, %cst_15 {dimension_numbers = #tpu.dot_dimension_numbers<[1], [0], [0], [1], [0, 0, 1, 1], [], []>} : vector<64x32xf32>, vector<32x32xf32>, vector<64x32xf32> -> vector<64x32xf32>
    %12 = vector.shape_cast %7 : vector<64x32xf32> to vector<8x8x4x8xf32>
    %13 = tpu.transpose %12, [1, 2, 0, 3] : vector<8x8x4x8xf32> -> vector<8x4x8x8xf32>
    %14 = vector.shape_cast %13 : vector<8x4x8x8xf32> to vector<32x8x8xf32>
    %15 = vector.shape_cast %9 : vector<64x32xf32> to vector<8x8x4x8xf32>
    %16 = tpu.transpose %15, [1, 2, 0, 3] : vector<8x8x4x8xf32> -> vector<8x4x8x8xf32>
    %17 = vector.shape_cast %16 : vector<8x4x8x8xf32> to vector<32x8x8xf32>
    %18 = vector.shape_cast %11 : vector<64x32xf32> to vector<8x8x4x8xf32>
    %19 = tpu.transpose %18, [1, 2, 0, 3] : vector<8x8x4x8xf32> -> vector<8x4x8x8xf32>
    %20 = vector.shape_cast %19 : vector<8x4x8x8xf32> to vector<32x8x8xf32>
    "tpu.trace_start"() <{level = 10 : i32, message = "bqd,bkd->bqk"}> : () -> ()
    %cst_16 = arith.constant dense<0.000000e+00> : vector<32x8x8xf32>
    %21 = tpu.matmul %14, %17, %cst_16 {dimension_numbers = #tpu.dot_dimension_numbers<[2], [2], [1], [1], [0, 0, 0, 1, 1, 1], [0], [0]>} : vector<32x8x8xf32>, vector<32x8x8xf32>, vector<32x8x8xf32> -> vector<32x8x8xf32>
    "tpu.trace_stop"() : () -> ()
    %cst_17 = arith.constant dense<0xFF800000> : vector<32x8xf32>
    %22 = vector.multi_reduction <maximumf>, %21, %cst_17 [2] : vector<32x8x8xf32> to vector<32x8xf32>
    %23 = vector.shape_cast %22 : vector<32x8xf32> to vector<32x8x1xf32>
    %24 = vector.broadcast %23 : vector<32x8x1xf32> to vector<32x8x8xf32>
    %25 = arith.subf %21, %24 : vector<32x8x8xf32>
    %26 = math.exp %25 : vector<32x8x8xf32>
    %cst_18 = arith.constant dense<0.000000e+00> : vector<32x8xf32>
    %27 = vector.multi_reduction <add>, %26, %cst_18 [2] : vector<32x8x8xf32> to vector<32x8xf32>
    %28 = vector.shape_cast %27 : vector<32x8xf32> to vector<32x8x1xf32>
    %29 = vector.broadcast %28 : vector<32x8x1xf32> to vector<32x8x8xf32>
    %30 = arith.divf %26, %29 : vector<32x8x8xf32>
    "tpu.trace_start"() <{level = 10 : i32, message = "bqk,bkd->bqd"}> : () -> ()
    %cst_19 = arith.constant dense<0.000000e+00> : vector<32x8x8xf32>
    %31 = tpu.matmul %30, %20, %cst_19 {dimension_numbers = #tpu.dot_dimension_numbers<[2], [1], [1], [2], [0, 0, 0, 1, 1, 2], [0], [0]>} : vector<32x8x8xf32>, vector<32x8x8xf32>, vector<32x8x8xf32> -> vector<32x8x8xf32>
    "tpu.trace_stop"() : () -> ()
    %32 = vector.shape_cast %31 : vector<32x8x8xf32> to vector<8x4x8x8xf32>
    %33 = tpu.transpose %32, [2, 0, 1, 3] : vector<8x4x8x8xf32> -> vector<8x8x4x8xf32>
    %34 = vector.shape_cast %33 : vector<8x8x4x8xf32> to vector<64x32xf32>
    %c0_20 = arith.constant 0 : index
    %c0_21 = arith.constant 0 : index
    %35 = vector.load %arg8[%c0_20, %c0_21] : memref<32x32xf32, #tpu.memory_space<vmem>>, vector<32x32xf32>
    %cst_22 = arith.constant dense<0.000000e+00> : vector<64x32xf32>
    %36 = tpu.matmul %34, %35, %cst_22 {dimension_numbers = #tpu.dot_dimension_numbers<[1], [0], [0], [1], [0, 0, 1, 1], [], []>} : vector<64x32xf32>, vector<32x32xf32>, vector<64x32xf32> -> vector<64x32xf32>
    %c0_23 = arith.constant 0 : index
    %c0_24 = arith.constant 0 : index
    %37 = vector.load %arg9[%c0_23, %c0_24] : memref<1x32xf32, #tpu.memory_space<vmem>>, vector<1x32xf32>
    %38 = vector.broadcast %37 : vector<1x32xf32> to vector<64x32xf32>
    %39 = arith.addf %36, %38 : vector<64x32xf32>
    %40 = arith.addf %39, %5 : vector<64x32xf32>
    %c0_25 = arith.constant 0 : index
    %c0_26 = arith.constant 0 : index
    %41 = vector.load %arg10[%c0_25, %c0_26] : memref<1x32xf32, #tpu.memory_space<vmem>>, vector<1x32xf32>
    %c0_27 = arith.constant 0 : index
    %c0_28 = arith.constant 0 : index
    %42 = vector.load %arg11[%c0_27, %c0_28] : memref<1x32xf32, #tpu.memory_space<vmem>>, vector<1x32xf32>
    %cst_29 = arith.constant dense<0.000000e+00> : vector<64xf32>
    %43 = vector.multi_reduction <add>, %40, %cst_29 [1] : vector<64x32xf32> to vector<64xf32>
    %44 = vector.shape_cast %43 : vector<64xf32> to vector<64x1xf32>
    %cst_30 = arith.constant 3.200000e+01 : f32
    %45 = vector.broadcast %cst_30 : f32 to vector<64x1xf32>
    %46 = arith.divf %44, %45 : vector<64x1xf32>
    %47 = vector.broadcast %46 : vector<64x1xf32> to vector<64x32xf32>
    %48 = arith.subf %40, %47 : vector<64x32xf32>
    %49 = arith.mulf %48, %48 : vector<64x32xf32>
    %cst_31 = arith.constant dense<0.000000e+00> : vector<64xf32>
    %50 = vector.multi_reduction <add>, %49, %cst_31 [1] : vector<64x32xf32> to vector<64xf32>
    %51 = vector.shape_cast %50 : vector<64xf32> to vector<64x1xf32>
    %cst_32 = arith.constant 3.200000e+01 : f32
    %52 = vector.broadcast %cst_32 : f32 to vector<64x1xf32>
    %53 = arith.divf %51, %52 : vector<64x1xf32>
    %54 = vector.broadcast %46 : vector<64x1xf32> to vector<64x32xf32>
    %55 = arith.subf %40, %54 : vector<64x32xf32>
    %cst_33 = arith.constant 9.99999974E-6 : f32
    %56 = vector.broadcast %cst_33 : f32 to vector<64x1xf32>
    %57 = arith.addf %53, %56 : vector<64x1xf32>
    %58 = math.rsqrt %57 : vector<64x1xf32>
    %59 = vector.broadcast %58 : vector<64x1xf32> to vector<64x32xf32>
    %60 = arith.mulf %55, %59 : vector<64x32xf32>
    %61 = vector.broadcast %41 : vector<1x32xf32> to vector<64x32xf32>
    %62 = arith.mulf %60, %61 : vector<64x32xf32>
    %63 = vector.broadcast %42 : vector<1x32xf32> to vector<64x32xf32>
    %64 = arith.addf %62, %63 : vector<64x32xf32>
    %c0_34 = arith.constant 0 : index
    %c0_35 = arith.constant 0 : index
    %65 = vector.load %arg12[%c0_34, %c0_35] : memref<32x64xf32, #tpu.memory_space<vmem>>, vector<32x64xf32>
    %cst_36 = arith.constant dense<0.000000e+00> : vector<64x64xf32>
    %66 = tpu.matmul %64, %65, %cst_36 {dimension_numbers = #tpu.dot_dimension_numbers<[1], [0], [0], [1], [0, 0, 1, 1], [], []>} : vector<64x32xf32>, vector<32x64xf32>, vector<64x64xf32> -> vector<64x64xf32>
    %c0_37 = arith.constant 0 : index
    %c0_38 = arith.constant 0 : index
    %67 = vector.load %arg13[%c0_37, %c0_38] : memref<1x64xf32, #tpu.memory_space<vmem>>, vector<1x64xf32>
    %68 = vector.broadcast %67 : vector<1x64xf32> to vector<64x64xf32>
    %69 = arith.addf %66, %68 : vector<64x64xf32>
    %cst_39 = arith.constant 0.000000e+00 : f32
    %70 = vector.broadcast %cst_39 : f32 to vector<64x64xf32>
    %71 = arith.maximumf %69, %70 : vector<64x64xf32>
    %c0_40 = arith.constant 0 : index
    %c0_41 = arith.constant 0 : index
    %72 = vector.load %arg14[%c0_40, %c0_41] : memref<64x32xf32, #tpu.memory_space<vmem>>, vector<64x32xf32>
    %cst_42 = arith.constant dense<0.000000e+00> : vector<64x32xf32>
    %73 = tpu.matmul %71, %72, %cst_42 {dimension_numbers = #tpu.dot_dimension_numbers<[1], [0], [0], [1], [0, 0, 1, 1], [], []>} : vector<64x64xf32>, vector<64x32xf32>, vector<64x32xf32> -> vector<64x32xf32>
    %c0_43 = arith.constant 0 : index
    %c0_44 = arith.constant 0 : index
    %74 = vector.load %arg15[%c0_43, %c0_44] : memref<1x32xf32, #tpu.memory_space<vmem>>, vector<1x32xf32>
    %75 = vector.broadcast %74 : vector<1x32xf32> to vector<64x32xf32>
    %76 = arith.addf %73, %75 : vector<64x32xf32>
    %77 = arith.addf %76, %64 : vector<64x32xf32>
    %c0_45 = arith.constant 0 : index
    %c0_46 = arith.constant 0 : index
    %78 = vector.load %arg16[%c0_45, %c0_46] : memref<1x32xf32, #tpu.memory_space<vmem>>, vector<1x32xf32>
    %c0_47 = arith.constant 0 : index
    %c0_48 = arith.constant 0 : index
    %79 = vector.load %arg17[%c0_47, %c0_48] : memref<1x32xf32, #tpu.memory_space<vmem>>, vector<1x32xf32>
    %cst_49 = arith.constant dense<0.000000e+00> : vector<64xf32>
    %80 = vector.multi_reduction <add>, %77, %cst_49 [1] : vector<64x32xf32> to vector<64xf32>
    %81 = vector.shape_cast %80 : vector<64xf32> to vector<64x1xf32>
    %cst_50 = arith.constant 3.200000e+01 : f32
    %82 = vector.broadcast %cst_50 : f32 to vector<64x1xf32>
    %83 = arith.divf %81, %82 : vector<64x1xf32>
    %84 = vector.broadcast %83 : vector<64x1xf32> to vector<64x32xf32>
    %85 = arith.subf %77, %84 : vector<64x32xf32>
    %86 = arith.mulf %85, %85 : vector<64x32xf32>
    %cst_51 = arith.constant dense<0.000000e+00> : vector<64xf32>
    %87 = vector.multi_reduction <add>, %86, %cst_51 [1] : vector<64x32xf32> to vector<64xf32>
    %88 = vector.shape_cast %87 : vector<64xf32> to vector<64x1xf32>
    %cst_52 = arith.constant 3.200000e+01 : f32
    %89 = vector.broadcast %cst_52 : f32 to vector<64x1xf32>
    %90 = arith.divf %88, %89 : vector<64x1xf32>
    %91 = vector.broadcast %83 : vector<64x1xf32> to vector<64x32xf32>
    %92 = arith.subf %77, %91 : vector<64x32xf32>
    %cst_53 = arith.constant 9.99999974E-6 : f32
    %93 = vector.broadcast %cst_53 : f32 to vector<64x1xf32>
    %94 = arith.addf %90, %93 : vector<64x1xf32>
    %95 = math.rsqrt %94 : vector<64x1xf32>
    %96 = vector.broadcast %95 : vector<64x1xf32> to vector<64x32xf32>
    %97 = arith.mulf %92, %96 : vector<64x32xf32>
    %98 = vector.broadcast %78 : vector<1x32xf32> to vector<64x32xf32>
    %99 = arith.mulf %97, %98 : vector<64x32xf32>
    %100 = vector.broadcast %79 : vector<1x32xf32> to vector<64x32xf32>
    %101 = arith.addf %99, %100 : vector<64x32xf32>
    %c0_54 = arith.constant 0 : index
    %c0_55 = arith.constant 0 : index
    %102 = vector.load %arg4[%c0_54, %c0_55] : memref<8x8xf32, #tpu.memory_space<vmem>>, vector<8x8xf32>
    %103 = vector.shape_cast %102 : vector<8x8xf32> to vector<1x8x8xf32>
    %104 = vector.broadcast %103 : vector<1x8x8xf32> to vector<8x8x8xf32>
    %c0_56 = arith.constant 0 : index
    %c0_57 = arith.constant 0 : index
    %105 = vector.load %arg18[%c0_56, %c0_57] : memref<32x32xf32, #tpu.memory_space<vmem>>, vector<32x32xf32>
    %cst_58 = arith.constant dense<0.000000e+00> : vector<64x32xf32>
    %106 = tpu.matmul %5, %105, %cst_58 {dimension_numbers = #tpu.dot_dimension_numbers<[1], [0], [0], [1], [0, 0, 1, 1], [], []>} : vector<64x32xf32>, vector<32x32xf32>, vector<64x32xf32> -> vector<64x32xf32>
    %107 = vector.shape_cast %106 : vector<64x32xf32> to vector<8x8x32xf32>
    %108 = tpu.transpose %107, [1, 0, 2] : vector<8x8x32xf32> -> vector<8x8x32xf32>
    "tpu.trace_start"() <{level = 10 : i32, message = "tnm,tmc->tnc"}> : () -> ()
    %cst_59 = arith.constant dense<0.000000e+00> : vector<8x8x32xf32>
    %109 = tpu.matmul %104, %108, %cst_59 {dimension_numbers = #tpu.dot_dimension_numbers<[2], [1], [1], [2], [0, 0, 0, 1, 1, 2], [0], [0]>} : vector<8x8x8xf32>, vector<8x8x32xf32>, vector<8x8x32xf32> -> vector<8x8x32xf32>
    "tpu.trace_stop"() : () -> ()
    %c0_60 = arith.constant 0 : index
    %c0_61 = arith.constant 0 : index
    %110 = vector.load %arg19[%c0_60, %c0_61] : memref<1x32xf32, #tpu.memory_space<vmem>>, vector<1x32xf32>
    %111 = vector.shape_cast %110 : vector<1x32xf32> to vector<1x1x32xf32>
    %112 = vector.broadcast %111 : vector<1x1x32xf32> to vector<8x8x32xf32>
    %113 = arith.addf %109, %112 : vector<8x8x32xf32>
    %cst_62 = arith.constant 0.000000e+00 : f32
    %114 = vector.broadcast %cst_62 : f32 to vector<8x8x32xf32>
    %115 = arith.maximumf %113, %114 : vector<8x8x32xf32>
    %116 = vector.shape_cast %115 : vector<8x8x32xf32> to vector<64x32xf32>
    %c0_63 = arith.constant 0 : index
    %c0_64 = arith.constant 0 : index
    %117 = vector.load %arg20[%c0_63, %c0_64] : memref<32x32xf32, #tpu.memory_space<vmem>>, vector<32x32xf32>
    %cst_65 = arith.constant dense<0.000000e+00> : vector<64x32xf32>
    %118 = tpu.matmul %116, %117, %cst_65 {dimension_numbers = #tpu.dot_dimension_numbers<[1], [0], [0], [1], [0, 0, 1, 1], [], []>} : vector<64x32xf32>, vector<32x32xf32>, vector<64x32xf32> -> vector<64x32xf32>
    %119 = vector.shape_cast %118 : vector<64x32xf32> to vector<8x8x32xf32>
    "tpu.trace_start"() <{level = 10 : i32, message = "tnm,tmc->tnc"}> : () -> ()
    %cst_66 = arith.constant dense<0.000000e+00> : vector<8x8x32xf32>
    %120 = tpu.matmul %104, %119, %cst_66 {dimension_numbers = #tpu.dot_dimension_numbers<[2], [1], [1], [2], [0, 0, 0, 1, 1, 2], [0], [0]>} : vector<8x8x8xf32>, vector<8x8x32xf32>, vector<8x8x32xf32> -> vector<8x8x32xf32>
    "tpu.trace_stop"() : () -> ()
    %c0_67 = arith.constant 0 : index
    %c0_68 = arith.constant 0 : index
    %121 = vector.load %arg21[%c0_67, %c0_68] : memref<1x32xf32, #tpu.memory_space<vmem>>, vector<1x32xf32>
    %122 = vector.shape_cast %121 : vector<1x32xf32> to vector<1x1x32xf32>
    %123 = vector.broadcast %122 : vector<1x1x32xf32> to vector<8x8x32xf32>
    %124 = arith.addf %120, %123 : vector<8x8x32xf32>
    %125 = tpu.transpose %124, [1, 0, 2] : vector<8x8x32xf32> -> vector<8x8x32xf32>
    %126 = vector.shape_cast %125 : vector<8x8x32xf32> to vector<64x32xf32>
    %c0_69 = arith.constant 0 : index
    %c0_70 = arith.constant 0 : index
    %127 = vector.load %arg22[%c0_69, %c0_70] : memref<32x32xf32, #tpu.memory_space<vmem>>, vector<32x32xf32>
    %cst_71 = arith.constant dense<0.000000e+00> : vector<64x32xf32>
    %128 = tpu.matmul %101, %127, %cst_71 {dimension_numbers = #tpu.dot_dimension_numbers<[1], [0], [0], [1], [0, 0, 1, 1], [], []>} : vector<64x32xf32>, vector<32x32xf32>, vector<64x32xf32> -> vector<64x32xf32>
    %c0_72 = arith.constant 0 : index
    %c0_73 = arith.constant 0 : index
    %129 = vector.load %arg23[%c0_72, %c0_73] : memref<32x32xf32, #tpu.memory_space<vmem>>, vector<32x32xf32>
    %cst_74 = arith.constant dense<0.000000e+00> : vector<64x32xf32>
    %130 = tpu.matmul %126, %129, %cst_74 {dimension_numbers = #tpu.dot_dimension_numbers<[1], [0], [0], [1], [0, 0, 1, 1], [], []>} : vector<64x32xf32>, vector<32x32xf32>, vector<64x32xf32> -> vector<64x32xf32>
    %131 = arith.addf %128, %130 : vector<64x32xf32>
    %c0_75 = arith.constant 0 : index
    %c0_76 = arith.constant 0 : index
    %132 = vector.load %arg24[%c0_75, %c0_76] : memref<1x32xf32, #tpu.memory_space<vmem>>, vector<1x32xf32>
    %133 = vector.broadcast %132 : vector<1x32xf32> to vector<64x32xf32>
    %134 = arith.addf %131, %133 : vector<64x32xf32>
    %135 = arith.negf %134 : vector<64x32xf32>
    %136 = math.exp %135 : vector<64x32xf32>
    %cst_77 = arith.constant 1.000000e+00 : f32
    %137 = vector.broadcast %cst_77 : f32 to vector<64x32xf32>
    %138 = arith.addf %137, %136 : vector<64x32xf32>
    %139 = arith.divf %137, %138 : vector<64x32xf32>
    %140 = arith.mulf %139, %101 : vector<64x32xf32>
    %cst_78 = arith.constant 1.000000e+00 : f32
    %141 = vector.broadcast %cst_78 : f32 to vector<64x32xf32>
    %142 = arith.subf %141, %139 : vector<64x32xf32>
    %143 = arith.mulf %142, %126 : vector<64x32xf32>
    %144 = arith.addf %140, %143 : vector<64x32xf32>
    %145 = vector.shape_cast %144 : vector<64x32xf32> to vector<8x8x32xf32>
    %c0_79 = arith.constant 0 : index
    %c0_80 = arith.constant 0 : index
    %c0_81 = arith.constant 0 : index
    %146 = vector.load %arg25[%c0_79, %c0_80, %c0_81] : memref<8x8x32xf32, #tpu.memory_space<vmem>>, vector<8x8x32xf32>
    tpu.vector_store %arg25[%c0_79, %c0_80, %c0_81], %145 {strides = array<i32>} : memref<8x8x32xf32, #tpu.memory_space<vmem>>, vector<8x8x32xf32>,
    return
  }
  func.func @transform_0(%arg0: i32) -> (i32, i32, i32) {
    %c0_i32 = arith.constant 0 : i32
    %c0_i32_0 = arith.constant 0 : i32
    %c0_i32_1 = arith.constant 0 : i32
    return %c0_i32, %arg0, %c0_i32_0 : i32, i32, i32
  }
  func.func @transform_1(%arg0: i32) -> (i32, i32, i32) {
    %c0_i32 = arith.constant 0 : i32
    %c0_i32_0 = arith.constant 0 : i32
    %c0_i32_1 = arith.constant 0 : i32
    return %c0_i32, %arg0, %c0_i32_0 : i32, i32, i32
  }
  func.func @transform_2(%arg0: i32) -> (i32, i32, i32) {
    %c0_i32 = arith.constant 0 : i32
    %c0_i32_0 = arith.constant 0 : i32
    %c0_i32_1 = arith.constant 0 : i32
    return %c0_i32, %arg0, %c0_i32_0 : i32, i32, i32
  }
  func.func @transform_3(%arg0: i32) -> (i32, i32) {
    %c0_i32 = arith.constant 0 : i32
    %c0_i32_0 = arith.constant 0 : i32
    %c0_i32_1 = arith.constant 0 : i32
    return %c0_i32, %c0_i32_0 : i32, i32
  }
  func.func @transform_4(%arg0: i32) -> (i32, i32) {
    %c0_i32 = arith.constant 0 : i32
    %c0_i32_0 = arith.constant 0 : i32
    %c0_i32_1 = arith.constant 0 : i32
    return %c0_i32, %c0_i32_0 : i32, i32
  }
  func.func @transform_5(%arg0: i32) -> (i32, i32) {
    %c0_i32 = arith.constant 0 : i32
    %c0_i32_0 = arith.constant 0 : i32
    %c0_i32_1 = arith.constant 0 : i32
    return %c0_i32, %c0_i32_0 : i32, i32
  }
  func.func @transform_6(%arg0: i32) -> (i32, i32) {
    %c0_i32 = arith.constant 0 : i32
    %c0_i32_0 = arith.constant 0 : i32
    %c0_i32_1 = arith.constant 0 : i32
    return %c0_i32, %c0_i32_0 : i32, i32
  }
  func.func @transform_7(%arg0: i32) -> (i32, i32) {
    %c0_i32 = arith.constant 0 : i32
    %c0_i32_0 = arith.constant 0 : i32
    %c0_i32_1 = arith.constant 0 : i32
    return %c0_i32, %c0_i32_0 : i32, i32
  }
  func.func @transform_8(%arg0: i32) -> (i32, i32) {
    %c0_i32 = arith.constant 0 : i32
    %c0_i32_0 = arith.constant 0 : i32
    %c0_i32_1 = arith.constant 0 : i32
    return %c0_i32, %c0_i32_0 : i32, i32
  }
  func.func @transform_9(%arg0: i32) -> (i32, i32) {
    %c0_i32 = arith.constant 0 : i32
    %c0_i32_0 = arith.constant 0 : i32
    %c0_i32_1 = arith.constant 0 : i32
    return %c0_i32, %c0_i32_0 : i32, i32
  }
  func.func @transform_10(%arg0: i32) -> (i32, i32) {
    %c0_i32 = arith.constant 0 : i32
    %c0_i32_0 = arith.constant 0 : i32
    %c0_i32_1 = arith.constant 0 : i32
    return %c0_i32, %c0_i32_0 : i32, i32
  }
  func.func @transform_11(%arg0: i32) -> (i32, i32) {
    %c0_i32 = arith.constant 0 : i32
    %c0_i32_0 = arith.constant 0 : i32
    %c0_i32_1 = arith.constant 0 : i32
    return %c0_i32, %c0_i32_0 : i32, i32
  }
  func.func @transform_12(%arg0: i32) -> (i32, i32) {
    %c0_i32 = arith.constant 0 : i32
    %c0_i32_0 = arith.constant 0 : i32
    %c0_i32_1 = arith.constant 0 : i32
    return %c0_i32, %c0_i32_0 : i32, i32
  }
  func.func @transform_13(%arg0: i32) -> (i32, i32) {
    %c0_i32 = arith.constant 0 : i32
    %c0_i32_0 = arith.constant 0 : i32
    %c0_i32_1 = arith.constant 0 : i32
    return %c0_i32, %c0_i32_0 : i32, i32
  }
  func.func @transform_14(%arg0: i32) -> (i32, i32) {
    %c0_i32 = arith.constant 0 : i32
    %c0_i32_0 = arith.constant 0 : i32
    %c0_i32_1 = arith.constant 0 : i32
    return %c0_i32, %c0_i32_0 : i32, i32
  }
  func.func @transform_15(%arg0: i32) -> (i32, i32) {
    %c0_i32 = arith.constant 0 : i32
    %c0_i32_0 = arith.constant 0 : i32
    %c0_i32_1 = arith.constant 0 : i32
    return %c0_i32, %c0_i32_0 : i32, i32
  }
  func.func @transform_16(%arg0: i32) -> (i32, i32) {
    %c0_i32 = arith.constant 0 : i32
    %c0_i32_0 = arith.constant 0 : i32
    %c0_i32_1 = arith.constant 0 : i32
    return %c0_i32, %c0_i32_0 : i32, i32
  }
  func.func @transform_17(%arg0: i32) -> (i32, i32) {
    %c0_i32 = arith.constant 0 : i32
    %c0_i32_0 = arith.constant 0 : i32
    %c0_i32_1 = arith.constant 0 : i32
    return %c0_i32, %c0_i32_0 : i32, i32
  }
  func.func @transform_18(%arg0: i32) -> (i32, i32) {
    %c0_i32 = arith.constant 0 : i32
    %c0_i32_0 = arith.constant 0 : i32
    %c0_i32_1 = arith.constant 0 : i32
    return %c0_i32, %c0_i32_0 : i32, i32
  }
  func.func @transform_19(%arg0: i32) -> (i32, i32) {
    %c0_i32 = arith.constant 0 : i32
    %c0_i32_0 = arith.constant 0 : i32
    %c0_i32_1 = arith.constant 0 : i32
    return %c0_i32, %c0_i32_0 : i32, i32
  }
  func.func @transform_20(%arg0: i32) -> (i32, i32) {
    %c0_i32 = arith.constant 0 : i32
    %c0_i32_0 = arith.constant 0 : i32
    %c0_i32_1 = arith.constant 0 : i32
    return %c0_i32, %c0_i32_0 : i32, i32
  }
  func.func @transform_21(%arg0: i32) -> (i32, i32) {
    %c0_i32 = arith.constant 0 : i32
    %c0_i32_0 = arith.constant 0 : i32
    %c0_i32_1 = arith.constant 0 : i32
    return %c0_i32, %c0_i32_0 : i32, i32
  }
  func.func @transform_22(%arg0: i32) -> (i32, i32) {
    %c0_i32 = arith.constant 0 : i32
    %c0_i32_0 = arith.constant 0 : i32
    %c0_i32_1 = arith.constant 0 : i32
    return %c0_i32, %c0_i32_0 : i32, i32
  }
  func.func @transform_23(%arg0: i32) -> (i32, i32) {
    %c0_i32 = arith.constant 0 : i32
    %c0_i32_0 = arith.constant 0 : i32
    %c0_i32_1 = arith.constant 0 : i32
    return %c0_i32, %c0_i32_0 : i32, i32
  }
  func.func @transform_24(%arg0: i32) -> (i32, i32, i32) {
    %c0_i32 = arith.constant 0 : i32
    %c0_i32_0 = arith.constant 0 : i32
    %c0_i32_1 = arith.constant 0 : i32
    return %c0_i32, %arg0, %c0_i32_0 : i32, i32, i32
  }
}

</mosaic_0001>

<bundles_post_ra>
// kernel: tpu_custom_call.1
= control target key start
LH: loop header
LB: loop body
LE: loop exit
PB: predicated region body
PF: predicated region fallthrough
CT: control target
= control target key end

     0   :  { %s21091_s0 = inlined_call_operand.hbm [shape: f32[8,16,32], index: 0, kind: input, shape index: {}]   ;;  %s21092_s1 = inlined_call_operand.hbm [shape: f32[8,16,32], index: 1, kind: input, shape index: {}]   ;;  %s21093_s2 = inlined_call_operand.hbm [shape: f32[8,16,32], index: 2, kind: input, shape index: {}]   ;;  %s21094_s3 = inlined_call_operand.hbm [shape: f32[8,8], index: 3, kind: input, shape index: {}]   ;;  %s21095_s4 = inlined_call_operand.vmem [shape: f32[32,32], index: 4, kind: input, shape index: {}]   ;;  %s21096_s5 = inlined_call_operand.vmem [shape: f32[32,32], index: 5, kind: input, shape index: {}]   ;;  %s21097_s6 = inlined_call_operand.vmem [shape: f32[32,32], index: 6, kind: input, shape index: {}]   ;;  %s21098_s7 = inlined_call_operand.hbm [shape: f32[32,32], index: 7, kind: input, shape index: {}]   ;;  %s21099_s8 = inlined_call_operand.hbm [shape: f32[1,32], index: 8, kind: input, shape index: {}]   ;;  %s21100_s9 = inlined_call_operand.hbm [shape: f32[1,32], index: 9, kind: input, shape index: {}]   ;;  %s21101_s10 = inlined_call_operand.hbm [shape: f32[1,32], index: 10, kind: input, shape index: {}]   ;;  %s21102_s11 = inlined_call_operand.vmem [shape: f32[32,64], index: 11, kind: input, shape index: {}]   ;;  %s21103_s12 = inlined_call_operand.hbm [shape: f32[1,64], index: 12, kind: input, shape index: {}]   ;;  %s21104_s13 = inlined_call_operand.vmem [shape: f32[64,32], index: 13, kind: input, shape index: {}]   ;;  %s21105_s14 = inlined_call_operand.hbm [shape: f32[1,32], index: 14, kind: input, shape index: {}]   ;;  %s21106_s15 = inlined_call_operand.hbm [shape: f32[1,32], index: 15, kind: input, shape index: {}]   ;;  %s21107_s16 = inlined_call_operand.hbm [shape: f32[1,32], index: 16, kind: input, shape index: {}]   ;;  %s21108_s17 = inlined_call_operand.vmem [shape: f32[32,32], index: 17, kind: input, shape index: {}]   ;;  %s21109_s18 = inlined_call_operand.vmem [shape: f32[1,32], index: 18, kind: input, shape index: {}]   ;;  %s21110_s19 = inlined_call_operand.hbm [shape: f32[32,32], index: 19, kind: input, shape index: {}]   ;;  %s21111_s20 = inlined_call_operand.vmem [shape: f32[1,32], index: 20, kind: input, shape index: {}]   ;;  %s21112_s21 = inlined_call_operand.hbm [shape: f32[32,32], index: 21, kind: input, shape index: {}]   ;;  %s21113_s22 = inlined_call_operand.hbm [shape: f32[32,32], index: 22, kind: input, shape index: {}]   ;;  %s21114_s23 = inlined_call_operand.vmem [shape: f32[1,32], index: 23, kind: input, shape index: {}]   ;;  %s21115_s24 = inlined_call_operand.hbm [shape: f32[8,16,32], index: 24, kind: output, shape index: {}]  }
   0x1   :  { %21252 = sst [smem:[#allocation71_spill]] %s21091_s0 }
   0x2   :  { %21253 = sst [smem:[#allocation72_spill]] %s21092_s1 }
   0x3   :  { %21254 = sst [smem:[#allocation73_spill]] %s21093_s2 }
   0x4   :  { %21255 = sst [smem:[#allocation74_spill]] %s21094_s3 }
   0x5   :  { %21256 = sst [smem:[#allocation75_spill]] %s21095_s4 }
   0x6   :  { %21257 = sst [smem:[#allocation76_spill]] %s21096_s5 }
   0x7   :  { %21258 = sst [smem:[#allocation77_spill]] %s21097_s6 }
   0x8   :  { %21259 = sst [smem:[#allocation78_spill]] %s21098_s7 }
   0x9   :  { %21260 = sst [smem:[#allocation79_spill]] %s21099_s8 }
   0xa   :  { %21261 = sst [smem:[#allocation80_spill]] %s21101_s10 }
   0xb   :  { %21262 = sst [smem:[#allocation81_spill]] %s21102_s11 }
   0xc   :  { %21263 = sst [smem:[#allocation82_spill]] %s21104_s13 }
   0xd   :  { %21264 = sst [smem:[#allocation83_spill]] %s21105_s14 }
   0xe   :  { %21265 = sst [smem:[#allocation84_spill]] %s21107_s16 }
   0xf   :  { %21266 = sst [smem:[#allocation85_spill]] %s21108_s17 }
  0x10   :  { %21267 = sst [smem:[#allocation86_spill]] %s21109_s18 }
  0x11   :  { %21268 = sst [smem:[#allocation87_spill]] %s21111_s20 }
  0x12   :  { %21269 = sst [smem:[#allocation88_spill]] %s21112_s21 }
  0x13   :  { %21270 = sst [smem:[#allocation89_spill]] %s21114_s23 }
  0x14   :  { %21271 = sst [smem:[#allocation90_spill]] %s21115_s24 }
  0x15   :  { %29 = vsyncpa [#allocation3], 0 }
  0x16   :  { %31 = vsyncpa [#allocation3 + $0x1], 0 }
  0x17   :  { %32 = vsyncpa [#allocation6], 0 }
  0x18   :  { %34 = vsyncpa [#allocation6 + $0x1], 0 }
  0x19   :  { %35 = vsyncpa [#allocation9], 0 }
  0x1a   :  { %36 = vsyncpa [#allocation12], 0 }
  0x1b   :  { %37 = vsyncpa [#allocation15], 0 }
  0x1c   :  { %38 = vsyncpa [#allocation18], 0 }
  0x1d   :  { %39 = vsyncpa [#allocation21], 0 }
  0x1e   :  { %40 = vsyncpa [#allocation24], 0 }
  0x1f   :  { %41 = vsyncpa [#allocation4], 0 }
  0x20   :  { %43 = vsyncpa [#allocation4 + $0x1], 0  ;;  %s16611_s5 = smov 0   ;;  %s16613_s26 = smov 0  }
  0x21   :  { %s16615_s27 = smov 0   ;;  %s16617_s28 = smov 0  }
  0x22 LB: > { %21272 = sst [smem:[#allocation36_spill]] %s16441_s5  ;;  %s16455_s6 = smov [#allocation8]   ;;  %s16453_s28 = sphi %s16617_s28, %s21601_s28   ;;  %s16449_s27 = sphi %s16615_s27, %s21605_s27   ;;  %s16445_s26 = sphi %s16613_s26, %s21604_s26   ;;  %s16441_s5 = sphi %s16611_s5, %s21602_s5  }
  0x23   : > { %21273 = sst [smem:[#allocation37_spill]] %s16445_s26  ;;  %s612_s2 = sshll.u32 %s16455_s6, 4  ;;  %s16637_s2 = int_to_ptr.vmem [resolvable:$true] %s612_s2 }
  0x24   : > { %21274 = sst [smem:[#allocation38_spill]] %s16453_s28  ;;  %s16632_s29 = sadd.s32 4294967295, %s16453_s28  }
  0x25   : > { %21275 = sst [smem:[#allocation39_spill]] %s16632_s29  ;;  %p14238_p0 = scmp.ge.s32.totalorder %s16453_s28, 1 }
  0x26   : > { %p21130_p1 = scmp.eq.s32.totalorder %s16632_s29, 0  ;;  %p599_p2 = scmp.lt.s32.totalorder %s16453_s28, 3 }
  0x27   : > { %s16456_s7 = smov [#allocation11]   ;;  %s16457_s3 = smov [#allocation14]  }
  0x28   : > { %p16639_p3 = pnand %p14238_p0, %p599_p2  ;;  %s645_s30 = sshll.u32 %s16456_s7, 4  ;;  %s16646_s30 = int_to_ptr.vmem [resolvable:$true] %s645_s30 }
  0x29   : > { %s667_s25 = sshll.u32 %s16457_s3, 4  ;;  %s16458_s4 = smov [#allocation17]   ;;  %s16654_s25 = int_to_ptr.vmem [resolvable:$true] %s667_s25 }
  0x2a   : > { %s21276_s0 = scalar_select %p16639_p3, 1, 0 }
  0x2b   : > { %p15597_p5 = pneg %p16639_p3  ;;  %s16656_s1 = sshll.u32 %s16458_s4, 4  ;;  %s696_s1 = int_to_ptr.vmem [resolvable:$true] %s16656_s1 }
  0x2c   : > { %21277 = sst [smem:[#allocation40_spill]] %s21276_s0  ;;  %s21279_s23 = sld [smem:[#allocation74_spill]] }
  0x2d   : > { %p16650_p6 = pnand %p15597_p5, %p21130_p1 }
  0x2f   : > { %s21278_s8 = scalar_select %p16650_p6, 1, 0 }
  0x30   : > { %p16666_p8 = pneg %p16650_p6 }
  0x32   : > { %s15933_s20 = scalar_lea.hbm %s21279_s23, 128 }
  0x33   : > { %p15934_p7 = scmp.ne.s32.totalorder %s21279_s23, %s15933_s20  ;;  %p15940_p11 = scmp.lt.u32.totalorder %s15933_s20, %s21279_s23 }
  0x34   : > { %s21280_s3 = scalar_select %p16666_p8, 1, 0 }
  0x35   : > { %p15936_p9 = pnand %p16666_p8, %p15934_p7 }
  0x37   : > { %p15937_p10 = pneg %p15936_p9 }
  0x39   : > { %p15942_p12 = pnand %p15940_p11, %p15937_p10 }
  0x3b   : > { %15945 = shalt.err (!%p15942_p12)
}
  0x3c   : > { %s15946_s18 = scalar_lea.vmem %s16637_s2, 128  ;;  %p15954_p5 = scmp.lt.s32.totalorder %s16637_s2, %s16637_s2 }
  0x3d   : > { %p15947_p13 = scmp.ne.s32.totalorder %s16637_s2, %s15946_s18  ;;  %p15955_p4 = scmp.lt.s32.totalorder %s15946_s18, %s15946_s18 }
  0x3f   : > { %p15949_p0 = pnand %p15947_p13, %p16666_p8  ;;  %p15956_p7 = por %p15955_p4, %p15954_p5 }
  0x41   : > { %p15950_p2 = pneg %p15949_p0 }
  0x43   : > { %p15957_p9 = pnand %p15956_p7, %p15950_p2 }
  0x45   : > { %15960 = shalt.err (!%p15957_p9)
}
  0x46   : > { %15600 = dma.hbm_to_vmem [thread:$0]  (!%p16650_p6), %s21279_s23, 128, %s16637_s2, [#allocation9]  }
  0x47   : > { %s21281_s7 = sld [smem:[#allocation79_spill]] }
  0x4d   : > { %s15961_s4 = scalar_lea.hbm %s21281_s7, 16 }
  0x4e   : > { %p15962_p10 = scmp.ne.s32.totalorder %s21281_s7, %s15961_s4  ;;  %p15968_p12 = scmp.lt.u32.totalorder %s15961_s4, %s21281_s7 }
  0x50   : > { %p15964_p4 = pnand %p15962_p10, %p16666_p8 }
  0x52   : > { %p15965_p11 = pneg %p15964_p4 }
  0x54   : > { %p15970_p13 = pnand %p15968_p12, %p15965_p11 }
  0x56   : > { %15973 = shalt.err (!%p15970_p13)
}
  0x57   : > { %s15974_s2 = scalar_lea.vmem %s16646_s30, 16  ;;  %s15981_s11 = scalar_lea.vmem %s16646_s30, 32 }
  0x58   : > { %p15975_p0 = scmp.ne.s32.totalorder %s16646_s30, %s15974_s2  ;;  %p15982_p7 = scmp.lt.s32.totalorder %s16646_s30, %s16646_s30 }
  0x59   : > { %p15983_p9 = scmp.lt.s32.totalorder %s15981_s11, %s15974_s2 }
  0x5a   : > { %p15977_p2 = pnand %p15975_p0, %p16666_p8 }
  0x5b   : > { %p15984_p10 = por %p15983_p9, %p15982_p7 }
  0x5c   : > { %p15978_p5 = pneg %p15977_p2 }
  0x5e   : > { %p15985_p4 = pnand %p15984_p10, %p15978_p5 }
  0x60   : > { %15988 = shalt.err (!%p15985_p4)
}
  0x61   : > { %15606 = dma.hbm_to_vmem [thread:$0]  (!%p16650_p6), %s21281_s7, 16, %s16646_s30, [#allocation12]  }
  0x62   : > { %s21282_s10 = sld [smem:[#allocation80_spill]] }
  0x68   : > { %s15989_s24 = scalar_lea.hbm %s21282_s10, 16 }
  0x69   : > { %p15990_p11 = scmp.ne.s32.totalorder %s21282_s10, %s15989_s24  ;;  %p15996_p0 = scmp.lt.u32.totalorder %s15989_s24, %s21282_s10 }
  0x6b   : > { %p15992_p12 = pnand %p15990_p11, %p16666_p8 }
  0x6d   : > { %p15993_p13 = pneg %p15992_p12 }
  0x6f   : > { %p15998_p2 = pnand %p15996_p0, %p15993_p13 }
  0x71   : > { %16001 = shalt.err (!%p15998_p2)
}
  0x72   : > { %s16002_s30 = scalar_lea.vmem %s16654_s25, 16  ;;  %s16009_s11 = scalar_lea.vmem %s16654_s25, 32 }
  0x73   : > { %p16003_p5 = scmp.ne.s32.totalorder %s16654_s25, %s16002_s30  ;;  %p16010_p10 = scmp.lt.s32.totalorder %s16654_s25, %s16654_s25 }
  0x74   : > { %p16011_p4 = scmp.lt.s32.totalorder %s16009_s11, %s16002_s30 }
  0x75   : > { %p16005_p7 = pnand %p16003_p5, %p16666_p8 }
  0x76   : > { %p16012_p11 = por %p16011_p4, %p16010_p10 }
  0x77   : > { %p16006_p9 = pneg %p16005_p7 }
  0x79   : > { %p16013_p12 = pnand %p16012_p11, %p16006_p9 }
  0x7b   : > { %16016 = shalt.err (!%p16013_p12)
}
  0x7c   : > { %15612 = dma.hbm_to_vmem [thread:$0]  (!%p16650_p6), %s21282_s10, 16, %s16654_s25, [#allocation15]  }
  0x7d   : > { %s16459_s13 = smov [#allocation20]   ;;  %s21283_s14 = sld [smem:[#allocation83_spill]] }
  0x7e   : > { %s717_s20 = sshll.u32 %s16459_s13, 4  ;;  %s718_s20 = int_to_ptr.vmem [resolvable:$true] %s717_s20 }
  0x83   : > { %s16017_s4 = scalar_lea.hbm %s21283_s14, 16 }
  0x84   : > { %p16018_p13 = scmp.ne.s32.totalorder %s21283_s14, %s16017_s4  ;;  %p16024_p5 = scmp.lt.u32.totalorder %s16017_s4, %s21283_s14 }
  0x86   : > { %p16020_p0 = pnand %p16018_p13, %p16666_p8 }
  0x88   : > { %p16021_p2 = pneg %p16020_p0 }
  0x8a   : > { %p16026_p7 = pnand %p16024_p5, %p16021_p2 }
  0x8c   : > { %16029 = shalt.err (!%p16026_p7)
}
  0x8d   : > { %s16030_s25 = scalar_lea.vmem %s696_s1, 16  ;;  %s16037_s17 = scalar_lea.vmem %s696_s1, 32 }
  0x8e   : > { %p16031_p9 = scmp.ne.s32.totalorder %s696_s1, %s16030_s25  ;;  %p16038_p11 = scmp.lt.s32.totalorder %s696_s1, %s696_s1 }
  0x8f   : > { %p16039_p12 = scmp.lt.s32.totalorder %s16037_s17, %s16030_s25 }
  0x90   : > { %p16033_p10 = pnand %p16031_p9, %p16666_p8 }
  0x91   : > { %p16040_p1 = por %p16039_p12, %p16038_p11 }
  0x92   : > { %p16034_p4 = pneg %p16033_p10 }
  0x94   : > { %p16041_p3 = pnand %p16040_p1, %p16034_p4 }
  0x96   : > { %16044 = shalt.err (!%p16041_p3)
}
  0x97   : > { %15618 = dma.hbm_to_vmem [thread:$0]  (!%p16650_p6), %s21283_s14, 16, %s696_s1, [#allocation18]  }
  0x98   : > { %s21284_s16 = sld [smem:[#allocation84_spill]] }
  0x9e   : > { %s16045_s4 = scalar_lea.hbm %s21284_s16, 16 }
  0x9f   : > { %p16046_p13 = scmp.ne.s32.totalorder %s21284_s16, %s16045_s4  ;;  %p16052_p3 = scmp.lt.u32.totalorder %s16045_s4, %s21284_s16 }
  0xa1   : > { %p16048_p0 = pnand %p16046_p13, %p16666_p8 }
  0xa3   : > { %p16049_p1 = pneg %p16048_p0 }
  0xa5   : > { %p16054_p2 = pnand %p16052_p3, %p16049_p1 }
  0xa7   : > { %16057 = shalt.err (!%p16054_p2)
}
  0xa8   : > { %s16058_s25 = scalar_lea.vmem %s718_s20, 16  ;;  %s16065_s1 = scalar_lea.vmem %s718_s20, 32 }
  0xa9   : > { %p16059_p5 = scmp.ne.s32.totalorder %s718_s20, %s16058_s25  ;;  %p16066_p10 = scmp.lt.s32.totalorder %s718_s20, %s718_s20 }
  0xaa   : > { %p16067_p4 = scmp.lt.s32.totalorder %s16065_s1, %s16058_s25 }
  0xab   : > { %p16061_p7 = pnand %p16059_p5, %p16666_p8 }
  0xac   : > { %p16068_p11 = por %p16067_p4, %p16066_p10 }
  0xad   : > { %p16062_p9 = pneg %p16061_p7 }
  0xaf   : > { %p16069_p12 = pnand %p16068_p11, %p16062_p9 }
  0xb1   : > { %16072 = shalt.err (!%p16069_p12)
}
  0xb2   : > { %15624 = dma.hbm_to_vmem [thread:$0]  (!%p16650_p6), %s21284_s16, 16, %s718_s20, [#allocation21]  }
  0xb3   : > { %s16460_s13 = smov [#allocation23]   ;;  %s21285_s21 = sld [smem:[#allocation88_spill]] }
  0xb4   : > { %s749_s24 = sshll.u32 %s16460_s13, 4  ;;  %s750_s24 = int_to_ptr.vmem [resolvable:$true] %s749_s24 }
  0xb9   : > { %s16073_s18 = scalar_lea.hbm %s21285_s21, 512 }
  0xba   : > { %p16074_p13 = scmp.ne.s32.totalorder %s21285_s21, %s16073_s18  ;;  %p16080_p3 = scmp.lt.u32.totalorder %s16073_s18, %s21285_s21 }
  0xbc   : > { %p16076_p0 = pnand %p16074_p13, %p16666_p8 }
  0xbe   : > { %p16077_p1 = pneg %p16076_p0 }
  0xc0   : > { %p16082_p2 = pnand %p16080_p3, %p16077_p1 }
  0xc2   : > { %16085 = shalt.err (!%p16082_p2)
}
  0xc3   : > { %s16086_s20 = scalar_lea.vmem %s750_s24, 512  ;;  %p16094_p10 = scmp.lt.s32.totalorder %s750_s24, %s750_s24 }
  0xc4   : > { %p16087_p5 = scmp.ne.s32.totalorder %s750_s24, %s16086_s20  ;;  %p16095_p4 = scmp.lt.s32.totalorder %s16086_s20, %s16086_s20 }
  0xc6   : > { %p16089_p7 = pnand %p16087_p5, %p16666_p8  ;;  %p16096_p11 = por %p16095_p4, %p16094_p10 }
  0xc8   : > { %p16090_p9 = pneg %p16089_p7 }
  0xca   : > { %p16097_p12 = pnand %p16096_p11, %p16090_p9 }
  0xcc   : > { %16100 = shalt.err (!%p16097_p12)
}
  0xcd   : > { %s21132_s1 = smov 128   ;;  %s21134_s17 = smov 8  }
  0xce   : > { %15630 = dma.hbm_to_vmem [thread:$0]  (!%p16650_p6), %s21285_s21, 512, %s750_s24, [#allocation24], %s21132_s1, %s21132_s1, %s21134_s17  }
  0xcf   : > { %s14237_s6 = sadd.s32 4294967294, %s16453_s28   ;;  %s16795_s4 = sadd.s32 1, %s16453_s28  }
  0xd0   : > { %21286 = sst [smem:[#allocation41_spill]] %s16795_s4  ;;  %s53_s18 = ssub.s32 %s16453_s28, %s16795_s4 }
  0xd1   : > { %s56_s2 = sadd.s32 1, %s16449_s27  ;;  %p54_p13 = scmp.eq.s32.totalorder %s53_s18, 0 }
  0xd2   : > { %p63_p0 = scmp.ne.s32.totalorder %s16449_s27, %s16445_s26  ;;  %p64_p1 = scmp.eq.s32.totalorder %s16453_s28, 0 }
  0xd3   : > { %p69_p3 = scmp.ne.s32.totalorder %s16445_s26, %s16441_s5  ;;  %p21288_p5 = scmp.eq.s32.totalorder %s16632_s29, 0 }
  0xd4   : > { %s16806_s30 = scalar_select %p54_p13, %s16449_s27, %s56_s2  }
  0xd5   : > { %p65_p2 = por %p64_p1, %p63_p0  ;;  %p16810_p7 = por %p21288_p5, %p69_p3 }
  0xd6   : > { %21287 = sst [smem:[#allocation42_spill]] %s16806_s30  ;;  %p586_p9 = scmp.eq.s32.totalorder %s16632_s29, 1 }
  0xd7   : > { %s21289_s11 = scalar_select %p16810_p7, 1, 0 }
  0xd8   : > { %p592_p10 = scmp.eq.s32.totalorder %s14237_s6, 1  ;;  %p15660_p4 = scmp.lt.s32.totalorder %s16453_s28, 2 }
  0xd9   : > { %21290 = sst [smem:[#allocation43_spill]] %s21289_s11  ;;  %s21137_s24 = sand.u32 1, %s16449_s27  }
  0xda   : > { %p16817_p11 = por %p586_p9, %p63_p0  ;;  %p16821_p12 = por %p592_p10, %p69_p3 }
  0xdb   : > { %s16827_s0 = sshll.u32 %s21137_s24, 6  ;;  %s16830_s13 = sshll.u32 %s16453_s28, 7 }
  0xdc   : > { %s21291_s25 = scalar_select %p16817_p11, 1, 0 }
  0xdd   : > { %s21293_s20 = scalar_select %p16821_p12, 1, 0 }
  0xde   : > { %21292 = sst [smem:[#allocation44_spill]] %s21291_s25  ;;  %p16832_p13 = pnand %p15660_p4, %p65_p2 }
  0xdf   : > { %21294 = sst [smem:[#allocation45_spill]] %s21293_s20  ;;  %s799_s6 = sand.u32 1, %s16453_s28  }
  0xe0   : > { %s21295_s18 = scalar_select %p16832_p13, 1, 0 }
  0xe1   : > { %s21296_s17 = sld [smem:[#allocation72_spill]]  ;;  %s803_s24 = scalar_lea.vmem [#allocation5], %s16827_s0 }
  0xe2   : > { %s809_s10 = sshll.u32 %s803_s24, 4  ;;  %s16846_s14 = scalar_lea.sflag [#allocation6], %s799_s6  ;;  %s16844_s10 = int_to_ptr.vmem [resolvable:$true] %s809_s10 }
  0xe3   : > { %p16852_p1 = pneg %p16832_p13 }
  0xe5   : > { %s21297_s21 = scalar_select %p16852_p1, 1, 0 }
  0xe7   : > { %s16841_s7 = scalar_lea.hbm %s21296_s17, %s16830_s13  ;;  %s16106_s23 = scalar_lea.hbm %s21296_s17, 2048 }
  0xe8   : > { %s16101_s16 = scalar_lea.hbm %s16841_s7, 1024  ;;  %p16107_p5 = scmp.lt.u32.totalorder %s16841_s7, %s21296_s17 }
  0xe9   : > { %p16102_p0 = scmp.ne.s32.totalorder %s16841_s7, %s16101_s16  ;;  %p16108_p9 = scmp.lt.u32.totalorder %s16106_s23, %s16101_s16 }
  0xea   : > { %p16110_p4 = scmp.lt.u32.totalorder %s16101_s16, %s16841_s7 }
  0xeb   : > { %p16104_p3 = pnand %p16852_p1, %p16102_p0  ;;  %p16109_p10 = por %p16108_p9, %p16107_p5 }
  0xed   : > { %p16105_p2 = pneg %p16104_p3  ;;  %p16111_p12 = por %p16110_p4, %p16109_p10 }
  0xef   : > { %p16112_p11 = pnand %p16111_p12, %p16105_p2 }
  0xf1   : > { %16115 = shalt.err (!%p16112_p11)
}
  0xf2   : > { %s16116_s6 = scalar_lea.vmem %s16844_s10, 1024  ;;  %s16463_s1 = smov [#allocation5]  }
  0xf3   : > { %p16117_p0 = scmp.ne.s32.totalorder %s16844_s10, %s16116_s6  ;;  %s16121_s2 = sshll.u32 %s16463_s1, 4  ;;  %s16122_s2 = int_to_ptr.vmem [resolvable:$false] %s16121_s2 }
  0xf4   : > { %s16123_s30 = scalar_lea.vmem %s16122_s2, 2048  ;;  %p16124_p6 = scmp.lt.s32.totalorder %s16844_s10, %s16122_s2 }
  0xf5   : > { %p16119_p3 = pnand %p16117_p0, %p16852_p1  ;;  %p16125_p8 = scmp.lt.s32.totalorder %s16123_s30, %s16116_s6 }
  0xf7   : > { %p16120_p7 = pneg %p16119_p3  ;;  %p16126_p5 = por %p16125_p8, %p16124_p6 }
  0xf9   : > { %p16127_p9 = pnand %p16126_p5, %p16120_p7 }
  0xfb   : > { %16130 = shalt.err (!%p16127_p9)
}
  0xfc   : > { %s16464_s16 = smov 256   ;;  %s21298_s23 = smov 8  }
  0xfd   : > { %s21299_s24 = smov 128   ;;  %s16465_s17 = smov [#allocation10]  }
  0xfe   : > { %15640 = dma.hbm_to_vmem [thread:$0]  (!%p16832_p13), %s16841_s7, 1024, %s16844_s10, %s16846_s14, %s16464_s16, %s21299_s24, %s21298_s23  }
  0xff   : > { %s631_s1 = sshll.u32 %s16465_s17, 4  ;;  %s16466_s4 = smov [#allocation13]   ;;  %s632_s1 = int_to_ptr.vmem [resolvable:$true] %s631_s1 }
 0x100   : > { %s656_s2 = sshll.u32 %s16466_s4, 4  ;;  %s21300_s28 = sld [smem:[#allocation78_spill]]  ;;  %s657_s2 = int_to_ptr.vmem [resolvable:$true] %s656_s2 }
 0x101   : > { %p21302_p8 = scmp.ne.s32.totalorder %s21280_s3, 0 }
 0x106   : > { %s21301_s20 = smov %s21300_s28  ;;  %s16131_s5 = scalar_lea.hbm %s21300_s28, 512 }
 0x107   : > { %p16132_p6 = scmp.ne.s32.totalorder %s21301_s20, %s16131_s5  ;;  %p16138_p12 = scmp.lt.u32.totalorder %s16131_s5, %s21301_s20 }
 0x109   : > { %p16134_p7 = pnand %p16132_p6, %p21302_p8 }
 0x10b   : > { %p16135_p11 = pneg %p16134_p7 }
 0x10d   : > { %p16140_p2 = pnand %p16138_p12, %p16135_p11 }
 0x10f   : > { %16143 = shalt.err (!%p16140_p2)
}
 0x110   : > { %s16144_s10 = scalar_lea.vmem %s632_s1, 512  ;;  %p16152_p3 = scmp.lt.s32.totalorder %s632_s1, %s632_s1 }
 0x111   : > { %p16145_p10 = scmp.ne.s32.totalorder %s632_s1, %s16144_s10  ;;  %p16153_p5 = scmp.lt.s32.totalorder %s16144_s10, %s16144_s10 }
 0x113   : > { %p16147_p4 = pnand %p16145_p10, %p21302_p8  ;;  %p16154_p9 = por %p16153_p5, %p16152_p3 }
 0x115   : > { %p16148_p0 = pneg %p16147_p4 }
 0x117   : > { %p16155_p13 = pnand %p16154_p9, %p16148_p0 }
 0x119   : > { %16158 = shalt.err (!%p16155_p13)
}
 0x11a   : > { %p21303_p6 = scmp.ne.s32.totalorder %s21278_s8, 0  ;;  %s16159_s7 = scalar_lea.hbm %s21100_s9, 16 }
 0x11b   : > { %p16160_p7 = scmp.ne.s32.totalorder %s21100_s9, %s16159_s7  ;;  %p16166_p12 = scmp.lt.u32.totalorder %s16159_s7, %s21100_s9 }
 0x11c   : > { %15603 = dma.hbm_to_vmem [thread:$0]  (!%p21303_p6), %s21301_s20, 512, %s632_s1, [#allocation9], %s21299_s24, %s21299_s24, %s21298_s23  }
 0x11d   : > { %p16162_p13 = pnand %p16160_p7, %p21302_p8 }
 0x11f   : > { %p16163_p11 = pneg %p16162_p13 }
 0x121   : > { %p16168_p2 = pnand %p16166_p12, %p16163_p11 }
 0x123   : > { %16171 = shalt.err (!%p16168_p2)
}
 0x124   : > { %s16172_s6 = scalar_lea.vmem %s657_s2, 16  ;;  %s16179_s1 = scalar_lea.vmem %s657_s2, 32 }
 0x125   : > { %p16173_p10 = scmp.ne.s32.totalorder %s657_s2, %s16172_s6  ;;  %p16180_p3 = scmp.lt.s32.totalorder %s657_s2, %s657_s2 }
 0x126   : > { %p16181_p5 = scmp.lt.s32.totalorder %s16179_s1, %s16172_s6 }
 0x127   : > { %p16175_p4 = pnand %p16173_p10, %p21302_p8 }
 0x128   : > { %p16182_p9 = por %p16181_p5, %p16180_p3 }
 0x129   : > { %p16176_p0 = pneg %p16175_p4 }
 0x12b   : > { %p16183_p1 = pnand %p16182_p9, %p16176_p0 }
 0x12d   : > { %16186 = shalt.err (!%p16183_p1)
}
 0x12e   : > { %15609 = dma.hbm_to_vmem [thread:$0]  (!%p21303_p6), %s21100_s9, 16, %s657_s2, [#allocation12]  }
 0x12f   : > { %s16467_s26 = smov [#allocation16]   ;;  %s16468_s28 = smov [#allocation19]  }
 0x130   : > { %s681_s5 = sshll.u32 %s16467_s26, 4  ;;  %s706_s29 = sshll.u32 %s16468_s28, 4  ;;  %s682_s5 = int_to_ptr.vmem [resolvable:$true] %s681_s5  ;;  %s707_s29 = int_to_ptr.vmem [resolvable:$true] %s706_s29 }
 0x131   : > { %s16187_s4 = scalar_lea.hbm %s21103_s12, 16 }
 0x132   : > { %p16188_p1 = scmp.ne.s32.totalorder %s21103_s12, %s16187_s4  ;;  %p16194_p11 = scmp.lt.u32.totalorder %s16187_s4, %s21103_s12 }
 0x134   : > { %p16190_p7 = pnand %p16188_p1, %p21302_p8 }
 0x136   : > { %p16191_p13 = pneg %p16190_p7 }
 0x138   : > { %p16196_p12 = pnand %p16194_p11, %p16191_p13 }
 0x13a   : > { %16199 = shalt.err (!%p16196_p12)
}
 0x13b   : > { %s16200_s2 = scalar_lea.vmem %s682_s5, 16  ;;  %s16207_s30 = scalar_lea.vmem %s682_s5, 32 }
 0x13c   : > { %p16201_p2 = scmp.ne.s32.totalorder %s682_s5, %s16200_s2  ;;  %p16208_p0 = scmp.lt.s32.totalorder %s682_s5, %s682_s5 }
 0x13d   : > { %p16209_p3 = scmp.lt.s32.totalorder %s16207_s30, %s16200_s2 }
 0x13e   : > { %p16203_p10 = pnand %p16201_p2, %p21302_p8 }
 0x13f   : > { %p16210_p5 = por %p16209_p3, %p16208_p0 }
 0x140   : > { %p16204_p4 = pneg %p16203_p10 }
 0x142   : > { %p16211_p9 = pnand %p16210_p5, %p16204_p4 }
 0x144   : > { %16214 = shalt.err (!%p16211_p9)
}
 0x145   : > { %15615 = dma.hbm_to_vmem [thread:$0]  (!%p21303_p6), %s21103_s12, 16, %s682_s5, [#allocation15]  }
 0x146   : > { %s16215_s17 = scalar_lea.hbm %s21106_s15, 16 }
 0x147   : > { %p16216_p1 = scmp.ne.s32.totalorder %s21106_s15, %s16215_s17  ;;  %p16222_p11 = scmp.lt.u32.totalorder %s16215_s17, %s21106_s15 }
 0x149   : > { %p16218_p7 = pnand %p16216_p1, %p21302_p8 }
 0x14b   : > { %p16219_p13 = pneg %p16218_p7 }
 0x14d   : > { %p16224_p12 = pnand %p16222_p11, %p16219_p13 }
 0x14f   : > { %16227 = shalt.err (!%p16224_p12)
}
 0x150   : > { %s16228_s1 = scalar_lea.vmem %s707_s29, 16  ;;  %s16235_s5 = scalar_lea.vmem %s707_s29, 32 }
 0x151   : > { %p16229_p2 = scmp.ne.s32.totalorder %s707_s29, %s16228_s1  ;;  %p16236_p0 = scmp.lt.s32.totalorder %s707_s29, %s707_s29 }
 0x152   : > { %p16237_p3 = scmp.lt.s32.totalorder %s16235_s5, %s16228_s1 }
 0x153   : > { %p16231_p10 = pnand %p16229_p2, %p21302_p8 }
 0x154   : > { %p16238_p5 = por %p16237_p3, %p16236_p0 }
 0x155   : > { %p16232_p4 = pneg %p16231_p10 }
 0x157   : > { %p16239_p9 = pnand %p16238_p5, %p16232_p4 }
 0x159   : > { %16242 = shalt.err (!%p16239_p9)
}
 0x15a   : > { %15621 = dma.hbm_to_vmem [thread:$0]  (!%p21303_p6), %s21106_s15, 16, %s707_s29, [#allocation18]  }
 0x15b   : > { %s16469_s10 = smov [#allocation22]   ;;  %s16470_s28 = smov [#allocation25]  }
 0x15c   : > { %s733_s26 = sshll.u32 %s16469_s10, 4  ;;  %s762_s7 = sshll.u32 %s16470_s28, 4  ;;  %s734_s26 = int_to_ptr.vmem [resolvable:$true] %s733_s26  ;;  %s763_s7 = int_to_ptr.vmem [resolvable:$true] %s762_s7 }
 0x15d   : > { %s16243_s11 = scalar_lea.hbm %s21110_s19, 512 }
 0x15e   : > { %p16244_p1 = scmp.ne.s32.totalorder %s21110_s19, %s16243_s11  ;;  %p16250_p11 = scmp.lt.u32.totalorder %s16243_s11, %s21110_s19 }
 0x160   : > { %p16246_p7 = pnand %p16244_p1, %p21302_p8 }
 0x162   : > { %p16247_p13 = pneg %p16246_p7 }
 0x164   : > { %p16252_p12 = pnand %p16250_p11, %p16247_p13 }
 0x166   : > { %16255 = shalt.err (!%p16252_p12)
}
 0x167   : > { %s16256_s29 = scalar_lea.vmem %s734_s26, 512  ;;  %p16264_p0 = scmp.lt.s32.totalorder %s734_s26, %s734_s26 }
 0x168   : > { %p16257_p2 = scmp.ne.s32.totalorder %s734_s26, %s16256_s29  ;;  %p16265_p3 = scmp.lt.s32.totalorder %s16256_s29, %s16256_s29 }
 0x16a   : > { %p16259_p10 = pnand %p16257_p2, %p21302_p8  ;;  %p16266_p5 = por %p16265_p3, %p16264_p0 }
 0x16c   : > { %p16260_p4 = pneg %p16259_p10 }
 0x16e   : > { %p16267_p9 = pnand %p16266_p5, %p16260_p4 }
 0x170   : > { %16270 = shalt.err (!%p16267_p9)
}
 0x171   : > { %15627 = dma.hbm_to_vmem [thread:$0]  (!%p21303_p6), %s21110_s19, 512, %s734_s26, [#allocation21], %s21299_s24, %s21299_s24, %s21298_s23  }
 0x172   : > { %s16271_s17 = scalar_lea.hbm %s21113_s22, 512 }
 0x173   : > { %p16272_p1 = scmp.ne.s32.totalorder %s21113_s22, %s16271_s17  ;;  %p16278_p11 = scmp.lt.u32.totalorder %s16271_s17, %s21113_s22 }
 0x175   : > { %p16274_p7 = pnand %p16272_p1, %p21302_p8 }
 0x177   : > { %p16275_p13 = pneg %p16274_p7 }
 0x179   : > { %p16280_p12 = pnand %p16278_p11, %p16275_p13 }
 0x17b   : > { %16283 = shalt.err (!%p16280_p12)
}
 0x17c   : > { %s16284_s1 = scalar_lea.vmem %s763_s7, 512  ;;  %p16292_p0 = scmp.lt.s32.totalorder %s763_s7, %s763_s7 }
 0x17d   : > { %p16285_p2 = scmp.ne.s32.totalorder %s763_s7, %s16284_s1  ;;  %p16293_p3 = scmp.lt.s32.totalorder %s16284_s1, %s16284_s1 }
 0x17f   : > { %p16287_p10 = pnand %p16285_p2, %p21302_p8  ;;  %p16294_p5 = por %p16293_p3, %p16292_p0 }
 0x181   : > { %p16288_p4 = pneg %p16287_p10 }
 0x183   : > { %p16295_p9 = pnand %p16294_p5, %p16288_p4 }
 0x185   : > { %16298 = shalt.err (!%p16295_p9)
}
 0x186   : > { %15633 = dma.hbm_to_vmem [thread:$0]  (!%p21303_p6), %s21113_s22, 512, %s763_s7, [#allocation24], %s21299_s24, %s21299_s24, %s21298_s23  }
 0x187   : > { %s21304_s2 = sld [smem:[#allocation71_spill]]  ;;  %s783_s8 = scalar_lea.vmem [#allocation2], %s16827_s0 }
 0x188   : > { %s789_s10 = sshll.u32 %s783_s8, 4  ;;  %s21305_s4 = sld [smem:[#allocation73_spill]]  ;;  %s17003_s10 = int_to_ptr.vmem [resolvable:$true] %s789_s10 }
 0x189   : > { %s21306_s25 = sand.u32 1, %s16449_s27   ;;  %p21307_p6 = scmp.ne.s32.totalorder %s21297_s21, 0 }
 0x18a   : > { %s17013_s7 = scalar_lea.sflag [#allocation3], %s21306_s25 }
 0x18d   : > { %s17000_s30 = scalar_lea.hbm %s21304_s2, %s16830_s13  ;;  %s16304_s5 = scalar_lea.hbm %s21304_s2, 2048 }
 0x18e   : > { %s17009_s11 = scalar_lea.hbm %s21305_s4, %s16830_s13  ;;  %s16299_s6 = scalar_lea.hbm %s17000_s30, 1024 }
 0x18f   : > { %p16300_p8 = scmp.ne.s32.totalorder %s17000_s30, %s16299_s6  ;;  %p16305_p13 = scmp.lt.u32.totalorder %s17000_s30, %s21304_s2 }
 0x190   : > { %p16306_p11 = scmp.lt.u32.totalorder %s16304_s5, %s16299_s6  ;;  %p16308_p2 = scmp.lt.u32.totalorder %s16299_s6, %s17000_s30 }
 0x191   : > { %p16302_p1 = pnand %p16300_p8, %p21307_p6 }
 0x192   : > { %p16307_p12 = por %p16306_p11, %p16305_p13 }
 0x193   : > { %p16303_p7 = pneg %p16302_p1 }
 0x194   : > { %p16309_p10 = por %p16308_p2, %p16307_p12 }
 0x196   : > { %p16310_p4 = pnand %p16309_p10, %p16303_p7 }
 0x198   : > { %16313 = shalt.err (!%p16310_p4)
}
 0x199   : > { %s16314_s13 = scalar_lea.vmem %s17003_s10, 1024  ;;  %s16471_s8 = smov [#allocation2]  }
 0x19a   : > { %p16315_p0 = scmp.ne.s32.totalorder %s17003_s10, %s16314_s13  ;;  %s16319_s28 = sshll.u32 %s16471_s8, 4  ;;  %s16320_s28 = int_to_ptr.vmem [resolvable:$false] %s16319_s28 }
 0x19b   : > { %s16321_s17 = scalar_lea.vmem %s16320_s28, 2048  ;;  %p16322_p9 = scmp.lt.s32.totalorder %s17003_s10, %s16320_s28 }
 0x19c   : > { %p16317_p3 = pnand %p16315_p0, %p21307_p6  ;;  %p16323_p8 = scmp.lt.s32.totalorder %s16321_s17, %s16314_s13 }
 0x19e   : > { %p16318_p5 = pneg %p16317_p3  ;;  %p16324_p1 = por %p16323_p8, %p16322_p9 }
 0x1a0   : > { %p16325_p13 = pnand %p16324_p1, %p16318_p5 }
 0x1a2   : > { %16328 = shalt.err (!%p16325_p13)
}
 0x1a3   : > { %p21308_p7 = scmp.ne.s32.totalorder %s21295_s18, 0  ;;  %s823_s25 = scalar_lea.vmem [#allocation7], %s16827_s0 }
 0x1a4   : > { %s829_s6 = sshll.u32 %s823_s25, 4  ;;  %s16329_s1 = scalar_lea.hbm %s17009_s11, 1024  ;;  %s17041_s6 = int_to_ptr.vmem [resolvable:$true] %s829_s6 }
 0x1a5   : > { %15637 = dma.hbm_to_vmem [thread:$0]  (!%p21308_p7), %s17000_s30, 1024, %s17003_s10, %s17013_s7, %s16464_s16, %s21299_s24, %s21298_s23  }
 0x1a6   : > { %p16330_p11 = scmp.ne.s32.totalorder %s17009_s11, %s16329_s1  ;;  %s16334_s3 = scalar_lea.hbm %s21305_s4, 2048 }
 0x1a7   : > { %p16335_p10 = scmp.lt.u32.totalorder %s17009_s11, %s21305_s4  ;;  %p16336_p4 = scmp.lt.u32.totalorder %s16334_s3, %s16329_s1 }
 0x1a8   : > { %p16332_p12 = pnand %p16330_p11, %p21307_p6  ;;  %p16338_p3 = scmp.lt.u32.totalorder %s16329_s1, %s17009_s11 }
 0x1a9   : > { %p16337_p0 = por %p16336_p4, %p16335_p10 }
 0x1aa   : > { %p16333_p2 = pneg %p16332_p12 }
 0x1ab   : > { %p16339_p5 = por %p16338_p3, %p16337_p0 }
 0x1ad   : > { %p16340_p9 = pnand %p16339_p5, %p16333_p2 }
 0x1af   : > { %16343 = shalt.err (!%p16340_p9)
}
 0x1b0   : > { %s16344_s0 = scalar_lea.vmem %s17041_s6, 1024  ;;  %s16472_s30 = smov [#allocation7]  }
 0x1b1   : > { %p16345_p8 = scmp.ne.s32.totalorder %s17041_s6, %s16344_s0  ;;  %s16349_s10 = sshll.u32 %s16472_s30, 4  ;;  %s16350_s10 = int_to_ptr.vmem [resolvable:$false] %s16349_s10 }
 0x1b2   : > { %s16351_s7 = scalar_lea.vmem %s16350_s10, 2048  ;;  %p16352_p11 = scmp.lt.s32.totalorder %s17041_s6, %s16350_s10 }
 0x1b3   : > { %p16347_p1 = pnand %p16345_p8, %p21307_p6  ;;  %p16353_p12 = scmp.lt.s32.totalorder %s16351_s7, %s16344_s0 }
 0x1b5   : > { %p16348_p13 = pneg %p16347_p1  ;;  %p16354_p10 = por %p16353_p12, %p16352_p11 }
 0x1b7   : > { %p16355_p4 = pnand %p16354_p10, %p16348_p13 }
 0x1b9   : > { %16358 = shalt.err (!%p16355_p4)
}
 0x1ba   : > { %15643 = dma.hbm_to_vmem [thread:$0]  (!%p21308_p7), %s17009_s11, 1024, %s17041_s6, %s16846_s14, %s16464_s16, %s21299_s24, %s21298_s23  }
 0x1bb   : > { %s21309_s21 = sld [smem:[#allocation40_spill]] }
 0x1c1   : > { %p21310_p6 = scmp.ne.s32.totalorder %s21309_s21, 0 }
 0x1c3   : > { %841 = sbr.rel (%p21310_p6) target bundleno = 3714 (0xe82), region = 116 }
 0x1ca   : > { %s21311_s8 = sld [smem:[#allocation37_spill]]  ;;  %s21312_s28 = sld [smem:[#allocation43_spill]] }
 0x1d0   : > { %s17071_s17 = sand.u32 1, %s21311_s8   ;;  %p21313_p2 = scmp.ne.s32.totalorder %s21312_s28, 0 }
 0x1d1   : > { %s17074_s25 = sshll.u32 %s17071_s17, 6  ;;  %s844_s18 = scalar_lea.sflag [#allocation3], %s17071_s17 }
 0x1d2   : > { %s17078_s1 = scalar_lea.vmem [#allocation2], %s17074_s25 }
 0x1d3   : > { %16404 = dma.done.wait (%p21313_p2), %s844_s18, 1024  }
 0x1d4   : > { %16406 = vsyncadd (%p21313_p2), %s844_s18, 4294966272  ;;  %s21314_s14 = sld [smem:[#allocation39_spill]]  ;;  %s17086_s24 = scalar_lea.vmem [#allocation5], %s17074_s25 }
 0x1da   : > { %s852_s16 = sand.u32 1, %s21314_s14  }
 0x1db   : > { %s853_s23 = scalar_lea.sflag [#allocation6], %s852_s16 }
 0x1dc   : > { %16408 = dma.done.wait (%p21313_p2), %s853_s23, 2048  }
 0x1dd   : > { %16410 = vsyncadd (%p21313_p2), %s853_s23, 4294965248  ;;  %s17093_s11 = scalar_lea.vmem [#allocation7], %s17074_s25  ;;  %p21315_p7 = scmp.eq.s32.totalorder %s21314_s14, 0 }
 0x1df   : > { %16412 = dma.done.wait (%p21315_p7), [#allocation9], 640   ;;  %p21316_p0 = pmov %p21315_p7 }
 0x1e1   : > { %16414 = vsyncadd (%p21316_p0), [#allocation9], 4294966656  ;;  %p21317_p3 = pmov %p21316_p0 }
 0x1e2   : > { %p21318_p5 = pmov %p21316_p0 }
 0x1e3   : > { %16416 = dma.done.wait (%p21317_p3), [#allocation12], 32  }
 0x1e4   : > { %16418 = vsyncadd (%p21318_p5), [#allocation12], 4294967264  ;;  %p21319_p9 = pmov %p21316_p0 }
 0x1e5   : > { %p21320_p8 = pmov %p21316_p0 }
 0x1e6   : > { %16420 = dma.done.wait (%p21319_p9), [#allocation15], 32  }
 0x1e7   : > { %16422 = vsyncadd (%p21320_p8), [#allocation15], 4294967264  ;;  %p21321_p1 = pmov %p21316_p0 }
 0x1e8   : > { %p21322_p13 = pmov %p21316_p0 }
 0x1e9   : > { %16424 = dma.done.wait (%p21321_p1), [#allocation18], 32  }
 0x1ea   : > { %16426 = vsyncadd (%p21322_p13), [#allocation18], 4294967264  ;;  %p21323_p11 = pmov %p21316_p0 }
 0x1eb   : > { %p21324_p12 = pmov %p21316_p0 }
 0x1ec   : > { %16428 = dma.done.wait (%p21323_p11), [#allocation21], 528  }
 0x1ed   : > { %16430 = vsyncadd (%p21324_p12), [#allocation21], 4294966768  ;;  %p21325_p10 = pmov %p21316_p0 }
 0x1ee   : > { %p21326_p4 = pmov %p21316_p0 }
 0x1ef   : > { %16432 = dma.done.wait (%p21325_p10), [#allocation24], 1024  }
 0x1f0   : > { %16434 = vsyncadd (%p21326_p4), [#allocation24], 4294966272  ;;  %vm1016_vm0 = vcmask 261120   ;;  %s21327_s5 = sld [smem:[#allocation75_spill]]  ;;  %v1004_v5 = vld [vmem:[%s17093_s11] sm:$0xff]  ;;  %s21329_s28 = sld [smem:[#allocation76_spill]]  ;;  %v1497_v62 = vlaneseq }
 0x1f1   : > { %14845 = vmatprep.mubr.msk.f32.mxu0 %vm1016_vm0, %v1004_v5  ;;  %v1005_v12 = vld [vmem:[%s17093_s11 + $0x8] sm:$0xff]  ;;  %v1006_v13 = vld [vmem:[%s17093_s11 + $0x10] sm:$0xff]  ;;  %v1007_v15 = vld [vmem:[%s17093_s11 + $0x18] sm:$0xff]  ;;  %s21331_s30 = sld [smem:[#allocation77_spill]]  ;;  %s16473_s16 = smov 120   ;;  %v21162_v63 = vmov 0.0  }
 0x1f2   : > { %v1008_v16 = vld [vmem:[%s17093_s11 + $0x20] sm:$0xff]  ;;  %v1009_v17 = vld [vmem:[%s17093_s11 + $0x28] sm:$0xff]  ;;  %v1010_v18 = vld [vmem:[%s17093_s11 + $0x30] sm:$0xff]  ;;  %s16474_s23 = smov 112   ;;  %v16476_v60 = vmov 1983009808   ;;  %14897 = vmatprep.subr.mxu1 %v21162_v63 }
 0x1f3   : > { %v1011_v19 = vld [vmem:[%s17093_s11 + $0x38] sm:$0xff]  ;;  %v996_v20 = vld [vmem:[%s17086_s24] sm:$0xff]  ;;  %v997_v21 = vld [vmem:[%s17086_s24 + $0x8] sm:$0xff]  ;;  %v1495_v61 = vunpack.c.l.s4 %v16476_v60  ;;  %vm16478_vm1 = vmmov 0   ;;  %v16479_v5 = vmov 1934713408  }
 0x1f4   : > { %v998_v22 = vld [vmem:[%s17086_s24 + $0x10] sm:$0xff]  ;;  %v999_v23 = vld [vmem:[%s17086_s24 + $0x18] sm:$0xff]  ;;  %v1000_v24 = vld [vmem:[%s17086_s24 + $0x20] sm:$0xff]  ;;  %14899 = vmatprep.mubr.msk.f32.mxu1 %vm16478_vm1, %v21162_v63  ;;  %vm4916_vm2 = vcmask 64512   ;;  %s16480_s6 = smov 8   ;;  %s16481_s26 = smov 24  }
 0x1f5   : > { %v1001_v25 = vld [vmem:[%s17086_s24 + $0x28] sm:$0xff]  ;;  %v1002_v26 = vld [vmem:[%s17086_s24 + $0x30] sm:$0xff]  ;;  %v1003_v27 = vld [vmem:[%s17086_s24 + $0x38] sm:$0xff]  ;;  %vm11229_vm3 = vcmask 130048   ;;  %vm11238_vm4 = vcmask 195584   ;;  %s21587_s13 = sld [smem:[#allocation81_spill]] }
 0x1f6   : > { %s21328_s3 = smov %s21327_s5  ;;  %v1012_v0 = vld [vmem:[%s21327_s5] sm:$0xff]  ;;  %s21330_s18 = smov %s21329_s28  ;;  %v989_v35 = vld [vmem:[%s17078_s1 + $0x8] sm:$0xff]  ;;  %v990_v36 = vld [vmem:[%s17078_s1 + $0x10] sm:$0xff]  ;;  %vm11693_vm5 = vcmask 523264  }
 0x1f7   : > { %v1013_v1 = vld [vmem:[%s21328_s3 + $0x8] sm:$0xff]  ;;  %v1014_v2 = vld [vmem:[%s21328_s3 + $0x10] sm:$0xff]  ;;  %v1015_v4 = vld [vmem:[%s21328_s3 + $0x18] sm:$0xff]  ;;  %s16482_s5 = smov 16   ;;  %s21589_s29 = sld [smem:[#allocation82_spill]] }
 0x1f8   : > { %v15445_v3 = vpack.c.bf16 %v1013_v1, %v1012_v0  ;;  %v15449_v6 = vpack.c.bf16 %v1015_v4, %v1014_v2  ;;  %v1146_v7 = vld [vmem:[%s21329_s28] sm:$0xff]  ;;  %v1147_v8 = vld [vmem:[%s21330_s18 + $0x8] sm:$0xff]  ;;  %v1148_v10 = vld [vmem:[%s21330_s18 + $0x10] sm:$0xff]  ;;  %v1496_v1 = vunpack.c.0.s8 %v1495_v61  ;;  %v1498_v2 = vshrl.u32 %v1497_v62, 7  ;;  %s21592_s7 = sld [smem:[#allocation89_spill]]  ;;  %s21009_s21 = scalar_lea.vmem [#allocation26], %s17074_s25 }
 0x1f9   : > { %v15453_v9 = vpack.c.bf16 %v1147_v8, %v1146_v7  ;;  %v1149_v11 = vld [vmem:[%s21330_s18 + $0x18] sm:$0xff]  ;;  %v1279_v28 = vld [vmem:[%s21331_s30] sm:$0xff]  ;;  %v1280_v29 = vld [vmem:[%s21331_s30 + $0x8] sm:$0xff]  ;;  %s21593_s25 = sld [smem:[#allocation44_spill]]  ;;  %s14550_s8 = sshll.u32 %s21314_s14, 7 }
 0x1fa   : > { %15446 = vmatprep.subr.bf16.mxu0 %v15445_v3  ;;  %v15457_v14 = vpack.c.bf16 %v1149_v11, %v1148_v10  ;;  %v15461_v30 = vpack.c.bf16 %v1280_v29, %v1279_v28  ;;  %v1281_v31 = vld [vmem:[%s21331_s30 + $0x10] sm:$0xff]  ;;  %v1282_v32 = vld [vmem:[%s21331_s30 + $0x18] sm:$0xff]  ;;  %v988_v34 = vld [vmem:[%s17078_s1] sm:$0xff]  ;;  %v17343_v8 = vsub.s32 %v1496_v1, %v1498_v2  ;;  %s14007_s24 = sshll.u32 %s21009_s21, 4  ;;  %s13995_s14 = scalar_lea.sflag [#allocation4], %s17071_s17  ;;  %s21044_s24 = int_to_ptr.vmem [resolvable:$true] %s14007_s24 }
 0x1fb   : > { %15448 = vmatpush3.bf16.msra.mxu0 %v15445_v3  ;;  %v15465_v33 = vpack.c.bf16 %v1282_v32, %v1281_v31  ;;  %v991_v37 = vld [vmem:[%s17078_s1 + $0x18] sm:$0xff]  ;;  %v992_v38 = vld [vmem:[%s17078_s1 + $0x20] sm:$0xff]  ;;  %v993_v39 = vld [vmem:[%s17078_s1 + $0x28] sm:$0xff] }
 0x1fc   : > { %15450 = vmatprep.subr.bf16.mxu0 %v15449_v6  ;;  %v994_v40 = vld [vmem:[%s17078_s1 + $0x30] sm:$0xff]  ;;  %v995_v41 = vld [vmem:[%s17078_s1 + $0x38] sm:$0xff]  ;;  %s16475_s1 = smov 104   ;;  %21333 = vst [vmem:[#allocation47_spill] sm:$0xff] %v17343_v8 }
 0x1ff   : > { %15452 = vmatpush3.bf16.msra.mxu0 %v15449_v6  ;;  %v1527_v6 = vunpack.c.l.s4 %v16479_v5  ;;  %p21595_p2 = scmp.ne.s32.totalorder %s21593_s25, 0 }
 0x200   : > { %15454 = vmatprep.subr.bf16.mxu0 %v15453_v9 }
 0x202   : > { %14846 = vmatmul.mubr.msk.f32.vlgmr.msra.gmra.mrb[0].mxu0 %vm1016_vm0, %v1005_v12 }
 0x203   : > { %14848 = vmatprep.mubr.msk.f32.mxu0 %vm1016_vm0, %v1006_v13  ;;  %15456 = vmatpush3.bf16.msra.mxu0 %v15453_v9 }
 0x204   : > { %15458 = vmatprep.subr.bf16.mxu0 %v15457_v14 }
 0x206   : > { %14849 = vmatmul.mubr.msk.f32.gmra.mrb[2].mxu0 %vm1016_vm0, %v1007_v15 }
 0x207   : > { %14851 = vmatprep.mubr.msk.f32.mxu0 %vm1016_vm0, %v1008_v16  ;;  %15460 = vmatpush3.bf16.msra.mxu0 %v15457_v14 }
 0x208   : > { %15462 = vmatprep.subr.bf16.mxu0 %v15461_v30 }
 0x20a   : > { %14852 = vmatmul.mubr.msk.f32.gmra.mrb[4].mxu0 %vm1016_vm0, %v1009_v17  ;;  %v1528_v17 = vunpack.c.0.s8 %v1527_v6 }
 0x20b   : > { %14854 = vmatprep.mubr.msk.f32.mxu0 %vm1016_vm0, %v1010_v18 }
 0x20c   : > { %v17360_v29 = vsub.s32 %v1528_v17, %v1498_v2 }
 0x20e   : > { %14855 = vmatmul.mubr.msk.f32.gmra.mrb[6].mxu0 %vm1016_vm0, %v1011_v19 }
 0x20f   : > { %14865 = vmatprep.mubr.msk.f32.mxu0 %vm1016_vm0, %v996_v20 }
 0x212   : > { %14866 = vmatmul.mubr.msk.f32.vlgmr.msra.gmra.mrb[8].mxu0 %vm1016_vm0, %v997_v21 }
 0x213   : > { %14868 = vmatprep.mubr.msk.f32.mxu0 %vm1016_vm0, %v998_v22  ;;  %15464 = vmatpush3.bf16.msra.mxu0 %v15461_v30 }
 0x214   : > { %15466 = vmatprep.subr.bf16.mxu0 %v15465_v33 }
 0x216   : > { %14869 = vmatmul.mubr.msk.f32.gmra.mrb[10].mxu0 %vm1016_vm0, %v999_v23 }
 0x217   : > { %14871 = vmatprep.mubr.msk.f32.mxu0 %vm1016_vm0, %v1000_v24  ;;  %15468 = vmatpush3.bf16.msra.mxu0 %v15465_v33 }
 0x218   : > { %14917 = vmatprep.subr.mxu0 %v21162_v63 }
 0x21a   : > { %14872 = vmatmul.mubr.msk.f32.gmra.mrb[12].mxu0 %vm1016_vm0, %v1001_v25 }
 0x21b   : > { %14874 = vmatprep.mubr.msk.f32.mxu0 %vm1016_vm0, %v1002_v26 }
 0x21e   : > { %14875 = vmatmul.mubr.msk.f32.gmra.mrb[14].mxu0 %vm1016_vm0, %v1003_v27 }
 0x21f   : > { %14885 = vmatprep.mubr.msk.f32.mxu0 %vm1016_vm0, %v988_v34 }
 0x222   : > { %14886 = vmatmul.mubr.msk.f32.vlgmr.msra.gmra.mrb[16].mxu0 %vm1016_vm0, %v989_v35 }
 0x223   : > { %14888 = vmatprep.mubr.msk.f32.mxu0 %vm1016_vm0, %v990_v36 }
 0x226   : > { %14889 = vmatmul.mubr.msk.f32.gmra.mrb[18].mxu0 %vm1016_vm0, %v991_v37 }
 0x227   : > { %14891 = vmatprep.mubr.msk.f32.mxu0 %vm1016_vm0, %v992_v38 }
 0x22a   : > { %14892 = vmatmul.mubr.msk.f32.gmra.mrb[20].mxu0 %vm1016_vm0, %v993_v39 }
 0x22b   : > { %14894 = vmatprep.mubr.msk.f32.mxu0 %vm1016_vm0, %v994_v40 }
 0x22e   : > { %14895 = vmatmul.mubr.msk.f32.gmra.mrb[22].mxu0 %vm1016_vm0, %v995_v41 }
 0x22f   : > { %14919 = vmatprep.mubr.msk.f32.mxu0 %vm16478_vm1, %v21162_v63 }
 0x2d5   : > { %v17203_v42 = vpop.f32.mrb[0].mxu0 }
 0x2d6   : > { %1422 = vrot.lane.b32.xlu1 %v17203_v42, %s16473_s16  ;;  %v17207_v43 = vpop.f32.mrb[1].mxu0 }
 0x2d7   : > { %1420 = vrot.lane.b32.xlu0 %v17207_v43, %s16473_s16 }
 0x2d9   : > { %v17211_v44 = vpop.f32.mrb[2].mxu0 }
 0x2da   : > { %1446 = vrot.lane.b32.xlu1 %v17203_v42, %s16474_s23  ;;  %v17215_v45 = vpop.f32.mrb[3].mxu0 }
 0x2db   : > { %1444 = vrot.lane.b32.xlu0 %v17207_v43, %s16474_s23 }
 0x2dd   : > { %v17219_v46 = vpop.f32.mrb[4].mxu0 }
 0x2de   : > { %1470 = vrot.lane.b32.xlu1 %v17203_v42, %s16475_s1  ;;  %v17223_v47 = vpop.f32.mrb[5].mxu0 }
 0x2df   : > { %1468 = vrot.lane.b32.xlu0 %v17207_v43, %s16475_s1 }
 0x2e1   : > { %v17227_v48 = vpop.f32.mrb[6].mxu0 }
 0x2e2   : > { %1426 = vrot.lane.b32.xlu1 %v17211_v44, %s16473_s16  ;;  %v17231_v49 = vpop.f32.mrb[7].mxu0 }
 0x2e3   : > { %1424 = vrot.lane.b32.xlu0 %v17215_v45, %s16473_s16 }
 0x2e5   : > { %v17235_v50 = vpop.f32.mrb[8].mxu0 }
 0x2e6   : > { %1450 = vrot.lane.b32.xlu1 %v17211_v44, %s16474_s23  ;;  %v17239_v51 = vpop.f32.mrb[9].mxu0 }
 0x2e7   : > { %1448 = vrot.lane.b32.xlu0 %v17215_v45, %s16474_s23 }
 0x2e9   : > { %v17243_v52 = vpop.f32.mrb[10].mxu0 }
 0x2ea   : > { %1474 = vrot.lane.b32.xlu1 %v17211_v44, %s16475_s1  ;;  %v17247_v53 = vpop.f32.mrb[11].mxu0 }
 0x2eb   : > { %1472 = vrot.lane.b32.xlu0 %v17215_v45, %s16475_s1 }
 0x2ed   : > { %v17251_v54 = vpop.f32.mrb[12].mxu0 }
 0x2ee   : > { %1430 = vrot.lane.b32.xlu1 %v17219_v46, %s16473_s16  ;;  %v17255_v55 = vpop.f32.mrb[13].mxu0 }
 0x2ef   : > { %1428 = vrot.lane.b32.xlu0 %v17223_v47, %s16473_s16 }
 0x2f1   : > { %v17259_v56 = vpop.f32.mrb[14].mxu0 }
 0x2f2   : > { %1454 = vrot.lane.b32.xlu1 %v17219_v46, %s16474_s23  ;;  %v17263_v57 = vpop.f32.mrb[15].mxu0 }
 0x2f3   : > { %1452 = vrot.lane.b32.xlu0 %v17223_v47, %s16474_s23 }
 0x2f5   : > { %v17333_v4 = vpop.f32.mrb[16].mxu0 }
 0x2f6   : > { %1478 = vrot.lane.b32.xlu1 %v17219_v46, %s16475_s1  ;;  %21332 = vst [vmem:[#allocation46_spill] sm:$0xff] %v17333_v4  ;;  %v17357_v27 = vpop.f32.mrb[17].mxu0 }
 0x2f7   : > { %1476 = vrot.lane.b32.xlu0 %v17223_v47, %s16475_s1  ;;  %21334 = vst [vmem:[#allocation48_spill] sm:$0xff] %v17357_v27 }
 0x2f9   : > { %v17367_v41 = vpop.f32.mrb[18].mxu0 }
 0x2fa   : > { %1434 = vrot.lane.b32.xlu1 %v17227_v48, %s16473_s16  ;;  %21335 = vst [vmem:[#allocation49_spill] sm:$0xff] %v17367_v41 }
 0x2fb   : > { %1432 = vrot.lane.b32.xlu0 %v17231_v49, %s16473_s16 }
 0x2fe   : > { %1458 = vrot.lane.b32.xlu1 %v17227_v48, %s16474_s23 }
 0x2ff   : > { %1456 = vrot.lane.b32.xlu0 %v17231_v49, %s16474_s23 }
 0x302   : > { %2614 = vrot.lane.b32.xlu1 %v17235_v50, %s16474_s23 }
 0x303   : > { %2590 = vrot.lane.b32.xlu0 %v17235_v50, %s16473_s16 }
 0x306   : > { %2638 = vrot.lane.b32.xlu1 %v17235_v50, %s16475_s1 }
 0x307   : > { %2588 = vrot.lane.b32.xlu0 %v17239_v51, %s16473_s16 }
 0x30a   : > { %2594 = vrot.lane.b32.xlu1 %v17243_v52, %s16473_s16 }
 0x30b   : > { %2612 = vrot.lane.b32.xlu0 %v17239_v51, %s16474_s23 }
 0x30e   : > { %2618 = vrot.lane.b32.xlu1 %v17243_v52, %s16474_s23 }
 0x30f   : > { %2636 = vrot.lane.b32.xlu0 %v17239_v51, %s16475_s1 }
 0x312   : > { %2642 = vrot.lane.b32.xlu1 %v17243_v52, %s16475_s1 }
 0x313   : > { %2616 = vrot.lane.b32.xlu0 %v17247_v53, %s16474_s23 }
 0x316   : > { %2592 = vrot.lane.b32.xlu1 %v17247_v53, %s16473_s16 }
 0x317   : > { %2640 = vrot.lane.b32.xlu0 %v17247_v53, %s16475_s1 }
 0x31a   : > { %2598 = vrot.lane.b32.xlu1 %v17251_v54, %s16473_s16 }
 0x31b   : > { %2596 = vrot.lane.b32.xlu0 %v17255_v55, %s16473_s16 }
 0x31e   : > { %2622 = vrot.lane.b32.xlu1 %v17251_v54, %s16474_s23 }
 0x31f   : > { %2620 = vrot.lane.b32.xlu0 %v17255_v55, %s16474_s23 }
 0x322   : > { %2646 = vrot.lane.b32.xlu1 %v17251_v54, %s16475_s1 }
 0x323   : > { %2644 = vrot.lane.b32.xlu0 %v17255_v55, %s16475_s1 }
 0x326   : > { %2602 = vrot.lane.b32.xlu1 %v17259_v56, %s16473_s16 }
 0x327   : > { %2600 = vrot.lane.b32.xlu0 %v17263_v57, %s16473_s16 }
 0x32a   : > { %2626 = vrot.lane.b32.xlu1 %v17259_v56, %s16474_s23 }
 0x32b   : > { %2624 = vrot.lane.b32.xlu0 %v17263_v57, %s16474_s23 }
 0x32e   : > { %2650 = vrot.lane.b32.xlu1 %v17259_v56, %s16475_s1 }
 0x32f   : > { %2648 = vrot.lane.b32.xlu0 %v17263_v57, %s16475_s1 }
 0x332   : > { %1482 = vrot.lane.b32.xlu1 %v17227_v48, %s16475_s1 }
 0x333   : > { %1480 = vrot.lane.b32.xlu0 %v17231_v49, %s16475_s1 }
 0x336   : > { %3782 = vrot.lane.b32.xlu1 %v17333_v4, %s16474_s23 }
 0x337   : > { %3758 = vrot.lane.b32.xlu0 %v17333_v4, %s16473_s16 }
 0x33a   : > { %3806 = vrot.lane.b32.xlu1 %v17333_v4, %s16475_s1 }
 0x33b   : > { %3780 = vrot.lane.b32.xlu0 %v17357_v27, %s16474_s23 }
 0x33e   : > { %3756 = vrot.lane.b32.xlu1 %v17357_v27, %s16473_s16 }
 0x33f   : > { %3804 = vrot.lane.b32.xlu0 %v17357_v27, %s16475_s1 }
 0x342   : > { %3762 = vrot.lane.b32.xlu1 %v17367_v41, %s16473_s16 }
 0x346   : > { %3786 = vrot.lane.b32.xlu1 %v17367_v41, %s16474_s23 }
 0x348   : > { %v1423_v58 = vpop.permute.xlu1 %1422 }
 0x349   : > { %v1421_v59 = vpop.permute.xlu0 %1420 }
 0x34a   : > { %3810 = vrot.lane.b32.xlu1 %v17367_v41, %s16475_s1 }
 0x34c   : > { %v1447_v0 = vpop.permute.xlu1 %1446 }
 0x34d   : > { %v1445_v3 = vpop.permute.xlu0 %1444  ;;  %v1560_v9 = vcombine.low %v17203_v42, %v1447_v0  ;;  %v1561_v13 = vcombine.high %v17203_v42, %v1447_v0 }
 0x34e   : > { %v1492_v16 = vcombine.low %v17207_v43, %v1445_v3  ;;  %v1493_v19 = vcombine.high %v17207_v43, %v1445_v3 }
 0x34f   : > { %v1568_v22 = vrot.slane %v1560_v9, %v17343_v8  ;;  %v1575_v25 = vrot.slane %v1561_v13, %v17343_v8 }
 0x350   : > { %v1471_v7 = vpop.permute.xlu1 %1470  ;;  %v1500_v28 = vrot.slane %v1492_v16, %v17343_v8  ;;  %v1507_v32 = vrot.slane %v1493_v19, %v17343_v8 }
 0x351   : > { %v1576_v10 = vcombine.low %v1423_v58, %v1471_v7  ;;  %v1577_v11 = vcombine.high %v1423_v58, %v1471_v7  ;;  %v1469_v12 = vpop.permute.xlu0 %1468 }
 0x352   : > { %v1508_v14 = vcombine.low %v1421_v59, %v1469_v12  ;;  %v1509_v15 = vcombine.high %v1421_v59, %v1469_v12 }
 0x353   : > { %v1584_v18 = vrot.slane %v1576_v10, %v17343_v8  ;;  %v1591_v20 = vrot.slane %v1577_v11, %v17343_v8 }
 0x354   : > { %v1427_v21 = vpop.permute.xlu1 %1426  ;;  %v1516_v23 = vrot.slane %v1508_v14, %v17343_v8  ;;  %v1523_v26 = vrot.slane %v1509_v15, %v17343_v8 }
 0x355   : > { %v1425_v24 = vpop.permute.xlu0 %1424  ;;  %v1592_v30 = vcombine.low %v1568_v22, %v1584_v18  ;;  %v1593_v31 = vcombine.high %v1568_v22, %v1584_v18  ;;  %v1608_v33 = vcombine.low %v1575_v25, %v1591_v20  ;;  %v1609_v34 = vcombine.high %v1575_v25, %v1591_v20 }
 0x356   : > { %v1524_v36 = vcombine.low %v1500_v28, %v1516_v23  ;;  %v1525_v37 = vcombine.high %v1500_v28, %v1516_v23  ;;  %v1540_v39 = vcombine.low %v1507_v32, %v1523_v26  ;;  %v1541_v40 = vcombine.high %v1507_v32, %v1523_v26 }
 0x357   : > { %v17370_v42 = vrot.slane %v1592_v30, %v17360_v29  ;;  %v1607_v43 = vrot.slane %v1593_v31, %v17360_v29  ;;  %v1616_v60 = vrot.slane %v1608_v33, %v17360_v29  ;;  %v17379_v61 = vrot.slane %v1609_v34, %v17360_v29  ;;  %v17411_v31 = vpop.f32.mrb[19].mxu0 }
 0x358   : > { %v1451_v35 = vpop.permute.xlu1 %1450  ;;  %v17386_v2 = vrot.slane %v1524_v36, %v17360_v29  ;;  %v17392_v7 = vrot.slane %v1540_v39, %v17360_v29  ;;  %v17395_v9 = vrot.slane %v1541_v40, %v17360_v29  ;;  %21336 = vst [vmem:[#allocation50_spill] sm:$0xff] %v17411_v31  ;;  %3784 = vrot.lane.b32.xlu0 %v17411_v31, %s16474_s23 }
 0x359   : > { %v1449_v38 = vpop.permute.xlu0 %1448  ;;  %v1696_v58 = vcombine.low %v17211_v44, %v1451_v35  ;;  %v1697_v59 = vcombine.high %v17211_v44, %v1451_v35  ;;  %v17389_v44 = vrot.slane %v1525_v37, %v17360_v29  ;;  %3760 = vrot.lane.b32.xlu1 %v17411_v31, %s16473_s16 }
 0x35a   : > { %v1628_v62 = vcombine.low %v17215_v45, %v1449_v38  ;;  %v1629_v0 = vcombine.high %v17215_v45, %v1449_v38 }
 0x35b   : > { %v1704_v11 = vrot.slane %v1696_v58, %v17343_v8  ;;  %v1711_v12 = vrot.slane %v1697_v59, %v17343_v8 }
 0x35c   : > { %v1475_v1 = vpop.permute.xlu1 %1474  ;;  %v1636_v15 = vrot.slane %v1628_v62, %v17343_v8  ;;  %v1643_v16 = vrot.slane %v1629_v0, %v17343_v8  ;;  %3808 = vrot.lane.b32.xlu0 %v17411_v31, %s16475_s1 }
 0x35d   : > { %v1712_v3 = vcombine.low %v1427_v21, %v1475_v1  ;;  %v1713_v5 = vcombine.high %v1427_v21, %v1475_v1  ;;  %v1473_v6 = vpop.permute.xlu0 %1472 }
 0x35e   : > { %v1644_v45 = vcombine.low %v1425_v24, %v1473_v6  ;;  %v1645_v10 = vcombine.high %v1425_v24, %v1473_v6 }
 0x35f   : > { %v1720_v13 = vrot.slane %v1712_v3, %v17343_v8  ;;  %v1727_v14 = vrot.slane %v1713_v5, %v17343_v8 }
 0x360   : > { %v1652_v17 = vrot.slane %v1644_v45, %v17343_v8  ;;  %v1659_v18 = vrot.slane %v1645_v10, %v17343_v8  ;;  %v17407_v19 = vpop.permute.xlu1 %1430 }
 0x361   : > { %v1728_v20 = vcombine.low %v1704_v11, %v1720_v13  ;;  %v1729_v21 = vcombine.high %v1704_v11, %v1720_v13  ;;  %v1744_v22 = vcombine.low %v1711_v12, %v1727_v14  ;;  %v1745_v23 = vcombine.high %v1711_v12, %v1727_v14  ;;  %v17409_v24 = vpop.permute.xlu0 %1428 }
 0x362   : > { %v1660_v25 = vcombine.low %v1636_v15, %v1652_v17  ;;  %v1661_v26 = vcombine.high %v1636_v15, %v1652_v17  ;;  %v1676_v28 = vcombine.low %v1643_v16, %v1659_v18  ;;  %v1677_v30 = vcombine.high %v1643_v16, %v1659_v18 }
 0x363   : > { %v17414_v32 = vrot.slane %v1728_v20, %v17360_v29  ;;  %v1743_v33 = vrot.slane %v1729_v21, %v17360_v29  ;;  %v1752_v34 = vrot.slane %v1744_v22, %v17360_v29  ;;  %v1759_v35 = vrot.slane %v1745_v23, %v17360_v29 }
 0x364   : > { %v17422_v36 = vrot.slane %v1660_v25, %v17360_v29  ;;  %v1675_v37 = vrot.slane %v1661_v26, %v17360_v29  ;;  %v1684_v38 = vrot.slane %v1676_v28, %v17360_v29  ;;  %v1691_v39 = vrot.slane %v1677_v30, %v17360_v29  ;;  %v1455_v40 = vpop.permute.xlu1 %1454 }
 0x365   : > { %v2044_v58 = vcombine.low %v17370_v42, %v17414_v32  ;;  %v14300_v59 = vcombine.high %v17370_v42, %v17414_v32  ;;  %v2180_v62 = vcombine.low %v1607_v43, %v1743_v33  ;;  %v14304_v0 = vcombine.high %v1607_v43, %v1743_v33  ;;  %v17433_v1 = vpop.permute.xlu0 %1452 }
 0x366   : > { %v2316_v3 = vcombine.low %v1616_v60, %v1752_v34  ;;  %v14308_v5 = vcombine.high %v1616_v60, %v1752_v34  ;;  %v2452_v6 = vcombine.low %v17379_v61, %v1759_v35  ;;  %v14312_v45 = vcombine.high %v17379_v61, %v1759_v35 }
 0x367   : > { %v17438_v10 = vrot.slane %v14300_v59, %v17343_v8  ;;  %v17441_v11 = vrot.slane %v2180_v62, %v17343_v8  ;;  %v17444_v12 = vrot.slane %v14304_v0, %v17343_v8  ;;  %v2036_v43 = vcombine.low %v17386_v2, %v17422_v36 }
 0x368   : > { %v17451_v60 = vrot.slane %v2316_v3, %v17343_v8  ;;  %v17454_v61 = vrot.slane %v14308_v5, %v17343_v8  ;;  %v17457_v13 = vrot.slane %v2452_v6, %v17343_v8  ;;  %v17460_v14 = vrot.slane %v14312_v45, %v17343_v8  ;;  %v1479_v15 = vpop.permute.xlu1 %1478 }
 0x369   : > { %v14299_v16 = vcombine.high %v17386_v2, %v17422_v36  ;;  %v2172_v17 = vcombine.low %v17389_v44, %v1675_v37  ;;  %v14303_v18 = vcombine.high %v17389_v44, %v1675_v37  ;;  %v2308_v20 = vcombine.low %v17392_v7, %v1684_v38  ;;  %v1477_v21 = vpop.permute.xlu0 %1476 }
 0x36a   : > { %v14307_v22 = vcombine.high %v17392_v7, %v1684_v38  ;;  %v2444_v23 = vcombine.low %v17395_v9, %v1691_v39  ;;  %v14311_v25 = vcombine.high %v17395_v9, %v1691_v39  ;;  %v1832_v26 = vcombine.low %v17219_v46, %v1455_v40 }
 0x36b   : > { %v17474_v28 = vrot.slane %v14299_v16, %v17343_v8  ;;  %v17477_v30 = vrot.slane %v2172_v17, %v17343_v8  ;;  %v17480_v33 = vrot.slane %v14303_v18, %v17343_v8  ;;  %v17483_v44 = vrot.slane %v2308_v20, %v17343_v8 }
 0x36c   : > { %v17486_v7 = vrot.slane %v14307_v22, %v17343_v8  ;;  %v17489_v34 = vrot.slane %v2444_v23, %v17343_v8  ;;  %v17492_v9 = vrot.slane %v14311_v25, %v17343_v8  ;;  %v1833_v35 = vcombine.high %v17219_v46, %v1455_v40  ;;  %v17495_v37 = vpop.permute.xlu1 %1434 }
 0x36d   : > { %v2136_v38 = vcombine.low %v17474_v28, %v17438_v10  ;;  %v2137_v39 = vcombine.high %v17474_v28, %v17438_v10  ;;  %v17505_v0 = vpop.permute.xlu0 %1432  ;;  %v1840_v23 = vrot.slane %v1832_v26, %v17343_v8  ;;  %v1764_v63 = vcombine.low %v17223_v47, %v17433_v1 }
 0x36e   : > { %v1765_v17 = vcombine.high %v17223_v47, %v17433_v1  ;;  %v1848_v16 = vcombine.low %v17407_v19, %v1479_v15  ;;  %v1849_v45 = vcombine.high %v17407_v19, %v1479_v15  ;;  %v1780_v20 = vcombine.low %v17409_v24, %v1477_v21 }
 0x36f   : > { %v17516_v6 = vrot.slane %v2136_v38, %v17360_v29  ;;  %v1847_v38 = vrot.slane %v1833_v35, %v17343_v8  ;;  %v1781_v22 = vcombine.high %v17409_v24, %v1477_v21  ;;  %v1772_v5 = vrot.slane %v1764_v63, %v17343_v8 }
 0x370   : > { %v1459_v25 = vpop.permute.xlu1 %1458  ;;  %v1779_v35 = vrot.slane %v1765_v17, %v17343_v8  ;;  %v1856_v40 = vrot.slane %v1848_v16, %v17343_v8  ;;  %v1863_v47 = vrot.slane %v1849_v45, %v17343_v8  ;;  %v1788_v1 = vrot.slane %v1780_v20, %v17343_v8 }
 0x371   : > { %v1457_v18 = vpop.permute.xlu0 %1456  ;;  %v1968_v26 = vcombine.low %v17227_v48, %v1459_v25  ;;  %v1969_v46 = vcombine.high %v17227_v48, %v1459_v25  ;;  %v1795_v19 = vrot.slane %v1781_v22, %v17343_v8  ;;  %v21339_v10 = vcombine.low %v17477_v30, %v17441_v11 }
 0x372   : > { %v1864_v21 = vcombine.low %v1840_v23, %v1856_v40  ;;  %v1865_v3 = vcombine.high %v1840_v23, %v1856_v40  ;;  %v1900_v17 = vcombine.low %v17231_v49, %v1457_v18  ;;  %v1880_v62 = vcombine.low %v1847_v38, %v1863_v47 }
 0x373   : > { %v17549_v15 = vrot.slane %v1968_v26, %v17343_v8  ;;  %v17552_v63 = vrot.slane %v1969_v46, %v17343_v8  ;;  %v1881_v48 = vcombine.high %v1847_v38, %v1863_v47  ;;  %v1796_v25 = vcombine.low %v1772_v5, %v1788_v1  ;;  %v17573_v47 = vpop.f32.mrb[20].mxu0 }
 0x374   : > { %v2615_v24 = vpop.permute.xlu1 %2614  ;;  %v1797_v45 = vcombine.high %v1772_v5, %v1788_v1  ;;  %v17556_v20 = vrot.slane %v1864_v21, %v17360_v29  ;;  %v17559_v22 = vrot.slane %v1865_v3, %v17360_v29  ;;  %v1812_v26 = vcombine.low %v1779_v35, %v1795_v19  ;;  %21337 = vst [vmem:[#allocation51_spill] sm:$0xff] %v17573_v47 }
 0x375   : > { %v2591_v16 = vpop.permute.xlu0 %2590  ;;  %v1813_v59 = vcombine.high %v1779_v35, %v1795_v19  ;;  %v17562_v40 = vrot.slane %v1880_v62, %v17360_v29  ;;  %v17565_v46 = vrot.slane %v1881_v48, %v17360_v29  ;;  %v17568_v23 = vrot.slane %v1796_v25, %v17360_v29  ;;  %3766 = vrot.lane.b32.xlu1 %v17573_v47, %s16473_s16 }
 0x376   : > { %v17571_v38 = vrot.slane %v1797_v45, %v17360_v29  ;;  %v17576_v3 = vrot.slane %v1812_v26, %v17360_v29  ;;  %v1901_v62 = vcombine.high %v17231_v49, %v1457_v18  ;;  %v17583_v1 = vrot.slane %v1900_v17, %v17343_v8  ;;  %v17589_v26 = vpop.f32.mrb[21].mxu0 }
 0x377   : > { %v17579_v35 = vrot.slane %v1813_v59, %v17360_v29  ;;  %v2728_v21 = vcombine.low %v17235_v50, %v2615_v24  ;;  %v2729_v48 = vcombine.high %v17235_v50, %v2615_v24  ;;  %21338 = vst [vmem:[#allocation52_spill] sm:$0xff] %v17589_v26  ;;  %v2043_v49 = vrot.slane %v2036_v43, %v17343_v8 }
 0x378   : > { %v2639_v5 = vpop.permute.xlu1 %2638  ;;  %v17592_v59 = vrot.slane %v1901_v62, %v17343_v8  ;;  %v2051_v18 = vrot.slane %v2044_v58, %v17343_v8  ;;  %v17606_v50 = vrot.slane %v2137_v39, %v17360_v29  ;;  %3764 = vrot.lane.b32.xlu0 %v17589_v26, %s16473_s16  ;;  %v17618_v28 = vrot.slane %v21339_v10, %v17360_v29 }
 0x379   : > { %v2589_v19 = vpop.permute.xlu0 %2588  ;;  %v2744_v25 = vcombine.low %v2591_v16, %v2639_v5  ;;  %v2745_v45 = vcombine.high %v2591_v16, %v2639_v5  ;;  %v2736_v24 = vrot.slane %v2728_v21, %v17343_v8  ;;  %v2743_v17 = vrot.slane %v2729_v48, %v17343_v8  ;;  %3790 = vrot.lane.b32.xlu1 %v17573_v47, %s16474_s23 }
 0x37a   : > { %v2068_v32 = vcombine.low %v2043_v49, %v2051_v18  ;;  %v2069_v58 = vcombine.high %v2043_v49, %v2051_v18  ;;  %v21340_v39 = vcombine.high %v17477_v30, %v17441_v11 }
 0x37b   : > { %v2752_v2 = vrot.slane %v2744_v25, %v17343_v8  ;;  %v2759_v36 = vrot.slane %v2745_v45, %v17343_v8 }
 0x37c   : > { %v2595_v43 = vpop.permute.xlu1 %2594  ;;  %v17624_v16 = vrot.slane %v21340_v39, %v17360_v29  ;;  %v17631_v49 = vrot.slane %v2068_v32, %v17360_v29  ;;  %v17634_v18 = vrot.slane %v2069_v58, %v17360_v29  ;;  %3788 = vrot.lane.b32.xlu0 %v17589_v26, %s16474_s23 }
 0x37d   : > { %v2613_v42 = vpop.permute.xlu0 %2612  ;;  %v2760_v5 = vcombine.low %v2736_v24, %v2752_v2  ;;  %v2761_v62 = vcombine.high %v2736_v24, %v2752_v2  ;;  %v2776_v21 = vcombine.low %v2743_v17, %v2759_v36  ;;  %v2777_v48 = vcombine.high %v2743_v17, %v2759_v36  ;;  %3814 = vrot.lane.b32.xlu1 %v17573_v47, %s16475_s1 }
 0x37e   : > { %v2660_v25 = vcombine.low %v17239_v51, %v2613_v42  ;;  %v2661_v45 = vcombine.high %v17239_v51, %v2613_v42 }
 0x37f   : > { %v17639_v11 = vrot.slane %v2760_v5, %v17360_v29  ;;  %v17642_v30 = vrot.slane %v2761_v62, %v17360_v29  ;;  %v17645_v24 = vrot.slane %v2776_v21, %v17360_v29  ;;  %v17648_v51 = vrot.slane %v2777_v48, %v17360_v29 }
 0x380   : > { %v2619_v17 = vpop.permute.xlu1 %2618  ;;  %v2668_v2 = vrot.slane %v2660_v25, %v17343_v8  ;;  %v2675_v36 = vrot.slane %v2661_v45, %v17343_v8  ;;  %v21341_v5 = vcombine.low %v17480_v33, %v17444_v12  ;;  %v21342_v21 = vcombine.high %v17480_v33, %v17444_v12  ;;  %3812 = vrot.lane.b32.xlu0 %v17589_v26, %s16475_s1 }
 0x381   : > { %v2864_v42 = vcombine.low %v17243_v52, %v2619_v17  ;;  %v2865_v32 = vcombine.high %v17243_v52, %v2619_v17  ;;  %v2637_v58 = vpop.permute.xlu0 %2636  ;;  %v21346_v17 = vcombine.high %v17483_v44, %v17451_v60 }
 0x382   : > { %v2676_v10 = vcombine.low %v2589_v19, %v2637_v58  ;;  %v2677_v39 = vcombine.high %v2589_v19, %v2637_v58  ;;  %v17660_v62 = vrot.slane %v21341_v5, %v17360_v29  ;;  %v17666_v48 = vrot.slane %v21342_v21, %v17360_v29 }
 0x383   : > { %v2872_v52 = vrot.slane %v2864_v42, %v17343_v8  ;;  %v2879_v25 = vrot.slane %v2865_v32, %v17343_v8  ;;  %v21344_v19 = vcombine.low %v17483_v44, %v17451_v60  ;;  %v17680_v58 = vrot.slane %v21346_v17, %v17360_v29 }
 0x384   : > { %21343 = vst [vmem:[#allocation53_spill] sm:$0xff] %v17666_v48  ;;  %v2684_v12 = vrot.slane %v2676_v10, %v17343_v8  ;;  %v2691_v33 = vrot.slane %v2677_v39, %v17343_v8  ;;  %v2643_v42 = vpop.permute.xlu1 %2642  ;;  %v21348_v32 = vcombine.low %v17486_v7, %v17454_v61  ;;  %v21350_v60 = vcombine.high %v17486_v7, %v17454_v61 }
 0x385   : > { %v17674_v45 = vrot.slane %v21344_v19, %v17360_v29  ;;  %21347 = vst [vmem:[#allocation55_spill] sm:$0xff] %v17680_v58  ;;  %v2880_v21 = vcombine.low %v2595_v43, %v2643_v42  ;;  %v2881_v19 = vcombine.high %v2595_v43, %v2643_v42  ;;  %v2617_v17 = vpop.permute.xlu0 %2616  ;;  %v21352_v10 = vcombine.low %v17489_v34, %v17457_v13 }
 0x386   : > { %v17690_v5 = vrot.slane %v21348_v32, %v17360_v29  ;;  %v17696_v44 = vrot.slane %v21350_v60, %v17360_v29  ;;  %v21354_v32 = vcombine.high %v17489_v34, %v17457_v13  ;;  %v2692_v47 = vcombine.low %v2668_v2, %v2684_v12 }
 0x387   : > { %21345 = vst [vmem:[#allocation54_spill] sm:$0xff] %v17674_v45  ;;  %v17702_v39 = vrot.slane %v21352_v10, %v17360_v29  ;;  %v2693_v31 = vcombine.high %v2668_v2, %v2684_v12  ;;  %v2708_v61 = vcombine.low %v2675_v36, %v2691_v33  ;;  %v2709_v7 = vcombine.high %v2675_v36, %v2691_v33  ;;  %v17714_v10 = vpop.f32.mrb[22].mxu0 }
 0x388   : > { %21349 = vst [vmem:[#allocation56_spill] sm:$0xff] %v17690_v5  ;;  %21351 = vst [vmem:[#allocation57_spill] sm:$0xff] %v17696_v44  ;;  %v17708_v26 = vrot.slane %v21354_v32, %v17360_v29  ;;  %v2888_v60 = vrot.slane %v2880_v21, %v17343_v8  ;;  %v2895_v43 = vrot.slane %v2881_v19, %v17343_v8  ;;  %v2593_v36 = vpop.permute.xlu1 %2592  ;;  %3770 = vrot.lane.b32.xlu1 %v17714_v10, %s16473_s16 }
 0x389   : > { %21353 = vst [vmem:[#allocation58_spill] sm:$0xff] %v17702_v39  ;;  %v2796_v42 = vcombine.low %v17247_v53, %v2617_v17  ;;  %v2797_v41 = vcombine.high %v17247_v53, %v2617_v17  ;;  %21356 = vst [vmem:[#allocation60_spill] sm:$0xff] %v17714_v10  ;;  %v17717_v27 = vrot.slane %v2692_v47, %v17360_v29  ;;  %v2641_v19 = vpop.permute.xlu0 %2640 }
 0x38a   : > { %21355 = vst [vmem:[#allocation59_spill] sm:$0xff] %v17708_v26  ;;  %v17720_v13 = vrot.slane %v2693_v31, %v17360_v29  ;;  %v17723_v34 = vrot.slane %v2708_v61, %v17360_v29  ;;  %v17726_v2 = vrot.slane %v2709_v7, %v17360_v29  ;;  %v2896_v12 = vcombine.low %v2872_v52, %v2888_v60  ;;  %v17732_v61 = vpop.f32.mrb[23].mxu0 }
 0x38b   : > { %v2897_v53 = vcombine.high %v2872_v52, %v2888_v60  ;;  %v2912_v33 = vcombine.low %v2879_v25, %v2895_v43  ;;  %v2913_v21 = vcombine.high %v2879_v25, %v2895_v43  ;;  %v2804_v47 = vrot.slane %v2796_v42, %v17343_v8  ;;  %21357 = vst [vmem:[#allocation61_spill] sm:$0xff] %v17732_v61 }
 0x38c   : > { %v2811_v31 = vrot.slane %v2797_v41, %v17343_v8  ;;  %v2812_v17 = vcombine.low %v2593_v36, %v2641_v19  ;;  %v2813_v32 = vcombine.high %v2593_v36, %v2641_v19  ;;  %v17735_v7 = vrot.slane %v2896_v12, %v17360_v29  ;;  %3768 = vrot.lane.b32.xlu0 %v17732_v61, %s16473_s16  ;;  %v17744_v60 = vpop.permute.xlu1 %2598 }
 0x38d   : > { %v2911_v4 = vrot.slane %v2897_v53, %v17360_v29  ;;  %v2920_v26 = vrot.slane %v2912_v33, %v17360_v29  ;;  %v2927_v52 = vrot.slane %v2913_v21, %v17360_v29  ;;  %v21358_v43 = vcombine.low %v17492_v9, %v17460_v14  ;;  %3794 = vrot.lane.b32.xlu1 %v17714_v10, %s16474_s23 }
 0x38e   : > { %v2820_v25 = vrot.slane %v2812_v17, %v17343_v8  ;;  %v2827_v41 = vrot.slane %v2813_v32, %v17343_v8  ;;  %v21360_v36 = vcombine.high %v17492_v9, %v17460_v14  ;;  %v14316_v33 = vcombine.high %v17639_v11, %v17735_v7  ;;  %v17766_v17 = vpop.permute.xlu0 %2596 }
 0x38f   : > { %v17750_v42 = vrot.slane %v21358_v43, %v17360_v29  ;;  %v3348_v21 = vcombine.low %v17642_v30, %v2911_v4  ;;  %v14320_v19 = vcombine.high %v17642_v30, %v2911_v4  ;;  %v3484_v32 = vcombine.low %v17645_v24, %v2920_v26 }
 0x390   : > { %v17756_v12 = vrot.slane %v21360_v36, %v17360_v29  ;;  %v14324_v14 = vcombine.high %v17645_v24, %v2920_v26  ;;  %v3620_v9 = vcombine.low %v17648_v51, %v2927_v52  ;;  %v14328_v43 = vcombine.high %v17648_v51, %v2927_v52  ;;  %3792 = vrot.lane.b32.xlu0 %v17732_v61, %s16474_s23  ;;  %v2623_v52 = vpop.permute.xlu1 %2622  ;;  %s21588_s23 = sld [smem:[#allocation85_spill]] }
 0x391   : > { %21359 = vst [vmem:[#allocation62_spill] sm:$0xff] %v17750_v42  ;;  %v17773_v36 = vrot.slane %v14316_v33, %v17343_v8  ;;  %v17776_v53 = vrot.slane %v3348_v21, %v17343_v8  ;;  %v17779_v10 = vrot.slane %v14320_v19, %v17343_v8  ;;  %v2828_v4 = vcombine.low %v2804_v47, %v2820_v25 }
 0x392   : > { %21361 = vst [vmem:[#allocation63_spill] sm:$0xff] %v17756_v12  ;;  %v17784_v30 = vrot.slane %v3484_v32, %v17343_v8  ;;  %v17787_v26 = vrot.slane %v14324_v14, %v17343_v8  ;;  %v17790_v24 = vrot.slane %v3620_v9, %v17343_v8  ;;  %v17793_v51 = vrot.slane %v14328_v43, %v17343_v8  ;;  %v2621_v42 = vpop.permute.xlu0 %2620 }
 0x393   : > { %v2829_v33 = vcombine.high %v2804_v47, %v2820_v25  ;;  %v2836_v21 = vrot.slane %v2828_v4, %v17360_v29  ;;  %v2844_v19 = vcombine.low %v2811_v31, %v2827_v41  ;;  %v2845_v12 = vcombine.high %v2811_v31, %v2827_v41 }
 0x394   : > { %21362 = vst [vmem:[#allocation64_spill] sm:$0xff] %v17787_v26  ;;  %21363 = vst [vmem:[#allocation65_spill] sm:$0xff] %v17790_v24  ;;  %v3000_v61 = vcombine.low %v17251_v54, %v2623_v52  ;;  %v3001_v32 = vcombine.high %v17251_v54, %v2623_v52  ;;  %v2932_v14 = vcombine.low %v17255_v55, %v2621_v42 }
 0x395   : > { %21364 = vst [vmem:[#allocation66_spill] sm:$0xff] %v17793_v51  ;;  %v2933_v39 = vcombine.high %v17255_v55, %v2621_v42  ;;  %v2843_v9 = vrot.slane %v2829_v33, %v17360_v29  ;;  %v2852_v43 = vrot.slane %v2844_v19, %v17360_v29  ;;  %v2859_v44 = vrot.slane %v2845_v12, %v17360_v29  ;;  %v2647_v55 = vpop.permute.xlu1 %2646 }
 0x396   : > { %v3204_v47 = vcombine.low %v17717_v27, %v2836_v21  ;;  %v14315_v25 = vcombine.high %v17717_v27, %v2836_v21  ;;  %v17806_v31 = vrot.slane %v3000_v61, %v17343_v8  ;;  %v17809_v41 = vrot.slane %v3001_v32, %v17343_v8  ;;  %v2645_v33 = vpop.permute.xlu0 %2644 }
 0x397   : > { %v17812_v54 = vrot.slane %v2932_v14, %v17343_v8  ;;  %v3340_v42 = vcombine.low %v17720_v13, %v2843_v9  ;;  %v14319_v4 = vcombine.high %v17720_v13, %v2843_v9  ;;  %v3476_v12 = vcombine.low %v17723_v34, %v2852_v43 }
 0x398   : > { %v14323_v52 = vcombine.high %v17723_v34, %v2852_v43  ;;  %v17819_v27 = vrot.slane %v14315_v25, %v17343_v8  ;;  %v3612_v61 = vcombine.low %v17726_v2, %v2859_v44  ;;  %v14327_v21 = vcombine.high %v17726_v2, %v2859_v44 }
 0x399   : > { %v2947_v19 = vrot.slane %v2933_v39, %v17343_v8  ;;  %v17825_v32 = vrot.slane %v3340_v42, %v17343_v8  ;;  %v17828_v14 = vrot.slane %v14319_v4, %v17343_v8  ;;  %v17831_v13 = vrot.slane %v3476_v12, %v17343_v8  ;;  %v2603_v43 = vpop.permute.xlu1 %2602 }
 0x39a   : > { %v17834_v34 = vrot.slane %v14323_v52, %v17343_v8  ;;  %v17841_v39 = vrot.slane %v3612_v61, %v17343_v8  ;;  %v17844_v2 = vrot.slane %v14327_v21, %v17343_v8  ;;  %v2601_v52 = vpop.permute.xlu0 %2600  ;;  %v3016_v21 = vcombine.low %v17744_v60, %v2647_v55 }
 0x39b   : > { %v3017_v9 = vcombine.high %v17744_v60, %v2647_v55  ;;  %v2948_v44 = vcombine.low %v17766_v17, %v2645_v33  ;;  %v2949_v25 = vcombine.high %v17766_v17, %v2645_v33  ;;  %v17877_v24 = vrot.slane %v3204_v47, %v17343_v8 }
 0x39c   : > { %21365 = vst [vmem:[#allocation67_spill] sm:$0xff] %v17834_v34  ;;  %21366 = vst [vmem:[#allocation68_spill] sm:$0xff] %v17841_v39  ;;  %v21368_v61 = vcombine.low %v17639_v11, %v17735_v7  ;;  %v3024_v60 = vrot.slane %v3016_v21, %v17343_v8 }
 0x39d   : > { %21367 = vst [vmem:[#allocation69_spill] sm:$0xff] %v17844_v2  ;;  %v2627_v5 = vpop.permute.xlu1 %2626  ;;  %v3031_v55 = vrot.slane %v3017_v9, %v17343_v8  ;;  %v2956_v17 = vrot.slane %v2948_v44, %v17343_v8  ;;  %v2963_v33 = vrot.slane %v2949_v25, %v17343_v8 }
 0x39e   : > { %v3136_v42 = vcombine.low %v17259_v56, %v2627_v5  ;;  %v3137_v58 = vcombine.high %v17259_v56, %v2627_v5  ;;  %v2625_v4 = vpop.permute.xlu0 %2624  ;;  %v17883_v12 = vrot.slane %v21368_v61, %v17343_v8  ;;  %v3032_v11 = vcombine.low %v17806_v31, %v3024_v60 }
 0x39f   : > { %v3068_v47 = vcombine.low %v17263_v57, %v2625_v4  ;;  %v3069_v51 = vcombine.high %v17263_v57, %v2625_v4  ;;  %v3033_v7 = vcombine.high %v17806_v31, %v3024_v60  ;;  %v3048_v61 = vcombine.low %v17809_v41, %v3031_v55 }
 0x3a0   : > { %v3144_v56 = vrot.slane %v3136_v42, %v17343_v8  ;;  %v3151_v5 = vrot.slane %v3137_v58, %v17343_v8  ;;  %v3049_v9 = vcombine.high %v17809_v41, %v3031_v55  ;;  %v2964_v44 = vcombine.low %v17812_v54, %v2956_v17 }
 0x3a1   : > { %v2651_v21 = vpop.permute.xlu1 %2650  ;;  %v2965_v25 = vcombine.high %v17812_v54, %v2956_v17  ;;  %v2980_v42 = vcombine.low %v2947_v19, %v2963_v33  ;;  %v2981_v2 = vcombine.high %v2947_v19, %v2963_v33  ;;  %v17900_v39 = vrot.slane %v3032_v11, %v17360_v29 }
 0x3a2   : > { %v2649_v58 = vpop.permute.xlu0 %2648  ;;  %v3047_v57 = vrot.slane %v3033_v7, %v17360_v29  ;;  %v3056_v4 = vrot.slane %v3048_v61, %v17360_v29  ;;  %v3063_v31 = vrot.slane %v3049_v9, %v17360_v29  ;;  %v17906_v60 = vrot.slane %v2964_v44, %v17360_v29 }
 0x3a3   : > { %v17909_v41 = vrot.slane %v2965_v25, %v17360_v29  ;;  %v17912_v54 = vrot.slane %v2980_v42, %v17360_v29  ;;  %v17915_v19 = vrot.slane %v2981_v2, %v17360_v29  ;;  %v3076_v55 = vrot.slane %v3068_v47, %v17343_v8 }
 0x3a4   : > { %v3083_v17 = vrot.slane %v3069_v51, %v17343_v8  ;;  %v3152_v33 = vcombine.low %v2603_v43, %v2651_v21  ;;  %v3153_v11 = vcombine.high %v2603_v43, %v2651_v21  ;;  %v3084_v61 = vcombine.low %v2601_v52, %v2649_v58 }
 0x3a5   : > { %v1483_v7 = vpop.permute.xlu1 %1482  ;;  %v3085_v9 = vcombine.high %v2601_v52, %v2649_v58 }
 0x3a6   : > { %v1984_v44 = vcombine.low %v17495_v37, %v1483_v7  ;;  %v1985_v25 = vcombine.high %v17495_v37, %v1483_v7  ;;  %v17921_v26 = vpop.permute.xlu0 %1480  ;;  %v3160_v42 = vrot.slane %v3152_v33, %v17343_v8  ;;  %v3167_v2 = vrot.slane %v3153_v11, %v17343_v8 }
 0x3a7   : > { %v3092_v43 = vrot.slane %v3084_v61, %v17343_v8  ;;  %v3099_v52 = vrot.slane %v3085_v9, %v17343_v8 }
 0x3a8   : > { %v17932_v21 = vrot.slane %v1984_v44, %v17343_v8  ;;  %v17935_v37 = vrot.slane %v1985_v25, %v17343_v8  ;;  %v3168_v58 = vcombine.low %v3144_v56, %v3160_v42  ;;  %v3169_v33 = vcombine.high %v3144_v56, %v3160_v42 }
 0x3a9   : > { %v3184_v7 = vcombine.low %v3151_v5, %v3167_v2  ;;  %v3185_v11 = vcombine.high %v3151_v5, %v3167_v2  ;;  %v3100_v34 = vcombine.low %v3076_v55, %v3092_v43  ;;  %v3101_v45 = vcombine.high %v3076_v55, %v3092_v43 }
 0x3aa   : > { %v3116_v47 = vcombine.low %v3083_v17, %v3099_v52  ;;  %v3117_v48 = vcombine.high %v3083_v17, %v3099_v52  ;;  %v17938_v51 = vrot.slane %v3168_v58, %v17360_v29  ;;  %v3183_v61 = vrot.slane %v3169_v33, %v17360_v29 }
 0x3ab   : > { %v3192_v9 = vrot.slane %v3184_v7, %v17360_v29  ;;  %v3199_v44 = vrot.slane %v3185_v11, %v17360_v29  ;;  %v17944_v25 = vrot.slane %v3100_v34, %v17360_v29  ;;  %v3115_v56 = vrot.slane %v3101_v45, %v17360_v29 }
 0x3ac   : > { %v3124_v5 = vrot.slane %v3116_v47, %v17360_v29  ;;  %v3131_v55 = vrot.slane %v3117_v48, %v17360_v29  ;;  %v14318_v42 = vcombine.high %v17900_v39, %v17938_v51  ;;  %v3364_v2 = vcombine.low %v3047_v57, %v3183_v61 }
 0x3ad   : > { %v14322_v43 = vcombine.high %v3047_v57, %v3183_v61  ;;  %v3500_v52 = vcombine.low %v3056_v4, %v3192_v9  ;;  %v14326_v58 = vcombine.high %v3056_v4, %v3192_v9  ;;  %v3636_v33 = vcombine.low %v3063_v31, %v3199_v44 }
 0x3ae   : > { %v14330_v7 = vcombine.high %v3063_v31, %v3199_v44  ;;  %v17954_v34 = vrot.slane %v14318_v42, %v17343_v8  ;;  %v17957_v45 = vrot.slane %v3364_v2, %v17343_v8  ;;  %v14317_v61 = vcombine.high %v17906_v60, %v17944_v25 }
 0x3af   : > { %v17960_v48 = vrot.slane %v14322_v43, %v17343_v8  ;;  %v17965_v11 = vrot.slane %v3500_v52, %v17343_v8  ;;  %v17968_v57 = vrot.slane %v14326_v58, %v17343_v8  ;;  %v17971_v4 = vrot.slane %v3636_v33, %v17343_v8 }
 0x3b0   : > { %v17974_v31 = vrot.slane %v14330_v7, %v17343_v8  ;;  %v3356_v9 = vcombine.low %v17909_v41, %v3115_v56  ;;  %v14321_v44 = vcombine.high %v17909_v41, %v3115_v56  ;;  %v3492_v42 = vcombine.low %v17912_v54, %v3124_v5 }
 0x3b1   : > { %v14325_v2 = vcombine.high %v17912_v54, %v3124_v5  ;;  %v3628_v43 = vcombine.low %v17915_v19, %v3131_v55  ;;  %v14329_v52 = vcombine.high %v17915_v19, %v3131_v55  ;;  %v2000_v58 = vcombine.low %v17549_v15, %v17932_v21 }
 0x3b2   : > { %21369 = vst [vmem:[#allocation70_spill] sm:$0xff] %v17974_v31  ;;  %v17987_v33 = vrot.slane %v14317_v61, %v17343_v8  ;;  %v17990_v7 = vrot.slane %v3356_v9, %v17343_v8  ;;  %v17993_v17 = vrot.slane %v14321_v44, %v17343_v8  ;;  %v17996_v41 = vrot.slane %v3492_v42, %v17343_v8 }
 0x3b3   : > { %v17999_v54 = vrot.slane %v14325_v2, %v17343_v8  ;;  %v18002_v19 = vrot.slane %v3628_v43, %v17343_v8  ;;  %v18005_v56 = vrot.slane %v14329_v52, %v17343_v8  ;;  %v2001_v5 = vcombine.high %v17549_v15, %v17932_v21 }
 0x3b4   : > { %v18038_v21 = vrot.slane %v2000_v58, %v17360_v29  ;;  %v2016_v52 = vcombine.low %v17552_v63, %v17935_v37  ;;  %v2017_v44 = vcombine.high %v17552_v63, %v17935_v37  ;;  %v21370_v42 = vcombine.low %v17505_v0, %v17921_v26 }
 0x3b5   : > { %v2015_v43 = vrot.slane %v2001_v5, %v17360_v29  ;;  %v21371_v15 = vcombine.high %v17505_v0, %v17921_v26 }
 0x3b6   : > { %v1924_v9 = vrot.slane %v21370_v42, %v17343_v8  ;;  %v14302_v5 = vcombine.high %v17556_v20, %v18038_v21  ;;  %v2024_v37 = vrot.slane %v2016_v52, %v17360_v29  ;;  %v2031_v55 = vrot.slane %v2017_v44, %v17360_v29 }
 0x3b7   : > { %v1931_v2 = vrot.slane %v21371_v15, %v17343_v8  ;;  %v2196_v61 = vcombine.low %v17559_v22, %v2015_v43  ;;  %v14306_v63 = vcombine.high %v17559_v22, %v2015_v43 }
 0x3b8   : > { %v1932_v42 = vcombine.low %v17583_v1, %v1924_v9  ;;  %v1933_v47 = vcombine.high %v17583_v1, %v1924_v9  ;;  %v18064_v0 = vrot.slane %v14302_v5, %v17343_v8  ;;  %v2332_v22 = vcombine.low %v17562_v40, %v2024_v37 }
 0x3b9   : > { %v18067_v26 = vrot.slane %v2196_v61, %v17343_v8  ;;  %v18070_v15 = vrot.slane %v14306_v63, %v17343_v8  ;;  %v1948_v58 = vcombine.low %v17592_v59, %v1931_v2  ;;  %v14310_v43 = vcombine.high %v17562_v40, %v2024_v37 }
 0x3ba   : > { %v2468_v44 = vcombine.low %v17565_v46, %v2031_v55  ;;  %v14314_v52 = vcombine.high %v17565_v46, %v2031_v55  ;;  %v1940_v1 = vrot.slane %v1932_v42, %v17360_v29  ;;  %v1947_v9 = vrot.slane %v1933_v47, %v17360_v29 }
 0x3bb   : > { %v1949_v61 = vcombine.high %v17592_v59, %v1931_v2  ;;  %v1956_v5 = vrot.slane %v1948_v58, %v17360_v29  ;;  %v18082_v63 = vrot.slane %v2332_v22, %v17343_v8  ;;  %v18085_v31 = vrot.slane %v14310_v43, %v17343_v8 }
 0x3bc   : > { %v18088_v40 = vrot.slane %v2468_v44, %v17343_v8  ;;  %v18091_v37 = vrot.slane %v14314_v52, %v17343_v8  ;;  %v2052_v47 = vcombine.low %v17568_v23, %v1940_v1  ;;  %v14301_v59 = vcombine.high %v17568_v23, %v1940_v1 }
 0x3bd   : > { %v1963_v46 = vrot.slane %v1949_v61, %v17360_v29  ;;  %v2188_v55 = vcombine.low %v17571_v38, %v1947_v9  ;;  %v14305_v2 = vcombine.high %v17571_v38, %v1947_v9  ;;  %v2324_v58 = vcombine.low %v17576_v3, %v1956_v5 }
 0x3be   : > { %v14309_v42 = vcombine.high %v17576_v3, %v1956_v5  ;;  %v21372_v22 = vcombine.low %v17906_v60, %v17944_v25  ;;  %v2127_v44 = vrot.slane %v14301_v59, %v17343_v8  ;;  %v21373_v60 = vcombine.low %v17900_v39, %v17938_v51 }
 0x3bf   : > { %v18106_v52 = vrot.slane %v2188_v55, %v17343_v8  ;;  %v2460_v23 = vcombine.low %v17579_v35, %v1963_v46  ;;  %v14313_v1 = vcombine.high %v17579_v35, %v1963_v46  ;;  %v18111_v38 = vrot.slane %v14305_v2, %v17343_v8 }
 0x3c0   : > { %v3227_v43 = vrot.slane %v21372_v22, %v17343_v8  ;;  %v18114_v3 = vrot.slane %v2324_v58, %v17343_v8  ;;  %v18117_v9 = vrot.slane %v14309_v42, %v17343_v8  ;;  %v3235_v25 = vrot.slane %v21373_v60, %v17343_v8 }
 0x3c1   : > { %v2152_v61 = vcombine.low %v2127_v44, %v18064_v0  ;;  %v2153_v5 = vcombine.high %v2127_v44, %v18064_v0  ;;  %v2220_v35 = vcombine.low %v18106_v52, %v18067_v26  ;;  %v2221_v46 = vcombine.high %v18106_v52, %v18067_v26 }
 0x3c2   : > { %v2288_v59 = vcombine.low %v18111_v38, %v18070_v15  ;;  %v18145_v58 = vrot.slane %v2460_v23, %v17343_v8  ;;  %v18148_v42 = vrot.slane %v14313_v1, %v17343_v8  ;;  %v3236_v22 = vcombine.low %v17877_v24, %v17883_v12 }
 0x3c3   : > { %v18138_v0 = vrot.slane %v2152_v61, %v17360_v29  ;;  %v3237_v44 = vcombine.high %v17877_v24, %v17883_v12  ;;  %v3252_v52 = vcombine.low %v3227_v43, %v3235_v25  ;;  %v3253_v26 = vcombine.high %v3227_v43, %v3235_v25 }
 0x3c4   : > { %v21374_v23 = vcombine.low %v17819_v27, %v17773_v36  ;;  %v3244_v12 = vrot.slane %v3236_v22, %v17360_v29  ;;  %v21375_v43 = vcombine.low %v17987_v33, %v17954_v34  ;;  %v2059_v61 = vrot.slane %v2052_v47, %v17343_v8 }
 0x3c5   : > { %v3260_v60 = vrot.slane %v3252_v52, %v17360_v29  ;;  %v2168_v24 = vcombine.low %v17516_v6, %v18138_v0  ;;  %v21377_v52 = vcombine.high %v17819_v27, %v17773_v36  ;;  %v21378_v47 = vcombine.high %v17987_v33, %v17954_v34 }
 0x3c6   : > { %v18162_v1 = vrot.slane %v21374_v23, %v17360_v29  ;;  %v18174_v25 = vrot.slane %v21375_v43, %v17360_v29  ;;  %v21376_v23 = vcombine.low %v17556_v20, %v18038_v21  ;;  %v18198_v55 = vrot.slane %v3237_v44, %v17360_v29 }
 0x3c7   : > { %v3268_v51 = vcombine.low %v3244_v12, %v3260_v60  ;;  %v3269_v22 = vcombine.high %v3244_v12, %v3260_v60  ;;  %v18187_v39 = vrot.slane %v21377_v52, %v17360_v29  ;;  %v18193_v43 = vrot.slane %v21378_v47, %v17360_v29 }
 0x3c8   : > { %v2067_v2 = vrot.slane %v21376_v23, %v17343_v8  ;;  %v3336_v20 = vcombine.low %v18162_v1, %v18174_v25  ;;  %v18204_v27 = vrot.slane %v3253_v26, %v17360_v29  ;;  %v18207_v34 = vrot.slane %v2153_v5, %v17360_v29 }
 0x3c9   : > { %14898 = vmatpush3.xpose.msk.msra.mxu1 %vm4916_vm2, %v3268_v51  ;;  %v3338_v36 = vcombine.low %v18187_v39, %v18193_v43  ;;  %v21379_v33 = vcombine.low %v17825_v32, %v17776_v53  ;;  %v21381_v26 = vcombine.low %v17990_v7, %v17957_v45  ;;  %v18235_v47 = vrot.slane %v2220_v35, %v17360_v29 }
 0x3ca   : > { %v2084_v21 = vcombine.low %v2059_v61, %v2067_v2  ;;  %v2085_v23 = vcombine.high %v2059_v61, %v2067_v2  ;;  %14918 = vmatpush3.xpose.msk.msra.mxu0 %vm4916_vm2, %v3336_v20  ;;  %v21380_v2 = vmov 0.0   ;;  %v3270_v61 = vcombine.low %v18198_v55, %v18204_v27 }
 0x3cb   : > { %v18213_v60 = vrot.slane %v21379_v33, %v17360_v29  ;;  %14902 = vmatprep.subr.mxu1 %v21380_v2  ;;  %v18222_v44 = vrot.slane %v21381_v26, %v17360_v29  ;;  %14927 = vmatprep.subr.mxu0 %v21380_v2  ;;  %v2170_v12 = vcombine.low %v17606_v50, %v18207_v34 }
 0x3cc   : > { %v2092_v51 = vrot.slane %v2084_v21, %v17360_v29  ;;  %v18225_v5 = vrot.slane %v2085_v23, %v17360_v29  ;;  %v3271_v52 = vcombine.high %v18198_v55, %v18204_v27  ;;  %v2236_v26 = vcombine.low %v17618_v28, %v18235_v47 }
 0x3cd   : > { %v3404_v23 = vcombine.low %v18213_v60, %v18222_v44  ;;  %14920 = vmatmul.mubr.msk.f32.vlgmr.msra.gmra.mrb[24].mxu0 %vm4916_vm2, %v2168_v24  ;;  %v21382_v35 = vcombine.high %v17825_v32, %v17776_v53  ;;  %v18265_v53 = vrot.slane %v2221_v46, %v17360_v29  ;;  %v21384_v32 = vcombine.low %v17828_v14, %v17779_v10 }
 0x3ce   : > { %v2100_v20 = vcombine.low %v17631_v49, %v2092_v51  ;;  %v2101_v21 = vcombine.high %v17631_v49, %v2092_v51  ;;  %v2102_v33 = vcombine.low %v17634_v18, %v18225_v5  ;;  %v21383_v49 = vcombine.high %v17990_v7, %v17957_v45  ;;  %14928 = vmatpush3.xpose.msk.msra.mxu0 %vm4916_vm2, %v3338_v36  ;;  %v18273_v7 = vpop.permute.xlu1 %3782 }
 0x3cf   : > { %v18250_v55 = vrot.slane %v21382_v35, %v17360_v29  ;;  %v18271_v45 = vrot.slane %v21384_v32, %v17360_v29  ;;  %v21385_v46 = vcombine.low %v17993_v17, %v17960_v48  ;;  %14929 = vmatprep.mubr.msk.f32.mxu0 %vm16478_vm1, %v21380_v2  ;;  %v18299_v32 = vrot.slane %v2288_v59, %v17360_v29 }
 0x3d0   : > { %v18256_v27 = vrot.slane %v21383_v49, %v17360_v29  ;;  %14900 = vmatmul.mubr.msk.f32.vlgmr.msra.gmra.mrb[0].mxu1 %vm4916_vm2, %v2100_v20  ;;  %14937 = vmatprep.subr.mxu0 %v21380_v2  ;;  %v21386_v35 = vcombine.high %v17828_v14, %v17779_v10  ;;  %v21387_v49 = vcombine.high %v17993_v17, %v17960_v48 }
 0x3d1   : > { %14903 = vmatpush3.xpose.msk.msra.mxu1 %vm4916_vm2, %v3269_v22  ;;  %14904 = vmatprep.mubr.msk.f32.mxu1 %vm16478_vm1, %v21380_v2  ;;  %v18284_v20 = vrot.slane %v21385_v46, %v17360_v29  ;;  %v2238_v22 = vcombine.low %v17624_v16, %v18265_v53  ;;  %v2304_v59 = vcombine.low %v17660_v62, %v18299_v32 }
 0x3d2   : > { %v3406_v36 = vcombine.low %v18250_v55, %v18256_v27  ;;  %14907 = vmatprep.subr.mxu1 %v21380_v2  ;;  %14930 = vmatmul.mubr.msk.f32.vlgmr.msra.gmra.mrb[26].mxu0 %vm4916_vm2, %v2170_v12  ;;  %v18309_v24 = vrot.slane %v21386_v35, %v17360_v29  ;;  %v18315_v51 = vrot.slane %v21387_v49, %v17360_v29  ;;  %v18355_v49 = vpop.permute.xlu1 %3806 }
 0x3d3   : > { %v3472_v46 = vcombine.low %v18271_v45, %v18284_v20  ;;  %14938 = vmatpush3.xpose.msk.msra.mxu0 %vm4916_vm2, %v3404_v23  ;;  %v21388_v17 = vcombine.high %v18111_v38, %v18070_v15  ;;  %14939 = vmatprep.mubr.msk.f32.mxu0 %vm16478_vm1, %v21380_v2  ;;  %v21393_v15 = vcombine.high %v17831_v13, %v17784_v30 }
 0x3d4   : > { %14905 = vmatmul.mubr.msk.f32.vlgmr.msra.gmra.mrb[2].mxu1 %vm4916_vm2, %v2101_v21  ;;  %v3474_v14 = vcombine.low %v18309_v24, %v18315_v51  ;;  %v21389_v21 = vcombine.low %v17831_v13, %v17784_v30  ;;  %14947 = vmatprep.subr.mxu0 %v21380_v2  ;;  %v21394_v12 = vcombine.high %v17996_v41, %v17965_v11  ;;  %v21395_v30 = vld [vmem:[#allocation54_spill] sm:$0xff] }
 0x3d5   : > { %14908 = vmatpush3.xpose.msk.msra.mxu1 %vm4916_vm2, %v3270_v61  ;;  %14909 = vmatprep.mubr.msk.f32.mxu1 %vm16478_vm1, %v21380_v2  ;;  %v18334_v48 = vrot.slane %v21388_v17, %v17360_v29  ;;  %v21390_v61 = vcombine.low %v17996_v41, %v17965_v11  ;;  %v21391_v17 = vld [vmem:[#allocation53_spill] sm:$0xff]  ;;  %v18371_v38 = vrot.slane %v21393_v15, %v17360_v29 }
 0x3d6   : > { %v18340_v23 = vrot.slane %v21389_v21, %v17360_v29  ;;  %14912 = vmatprep.subr.mxu1 %v21380_v2  ;;  %14940 = vmatmul.mubr.msk.f32.vlgmr.msra.gmra.mrb[28].mxu0 %vm4916_vm2, %v2236_v26  ;;  %v18381_v21 = vrot.slane %v21394_v12, %v17360_v29  ;;  %v21396_v11 = vcombine.high %v18114_v3, %v18082_v63  ;;  %v21398_v12 = vld [vmem:[#allocation64_spill] sm:$0xff] }
 0x3d7   : > { %v18349_v35 = vrot.slane %v21390_v61, %v17360_v29  ;;  %v21392_v61 = vcombine.low %v18114_v3, %v18082_v63  ;;  %14948 = vmatpush3.xpose.msk.msra.mxu0 %vm4916_vm2, %v3406_v36  ;;  %14949 = vmatprep.mubr.msk.f32.mxu0 %vm16478_vm1, %v21380_v2  ;;  %v21397_v36 = vld [vmem:[#allocation67_spill] sm:$0xff]  ;;  %v21400_v63 = vcombine.low %v17999_v54, %v17968_v57 }
 0x3d8   : > { %14910 = vmatmul.mubr.msk.f32.vlgmr.msra.gmra.mrb[4].mxu1 %vm4916_vm2, %v2102_v33  ;;  %v18396_v41 = vrot.slane %v21396_v11, %v17360_v29  ;;  %v21399_v15 = vcombine.low %v21397_v36, %v21398_v12  ;;  %14957 = vmatprep.subr.mxu0 %v21380_v2  ;;  %v21401_v11 = vld [vmem:[#allocation55_spill] sm:$0xff]  ;;  %v21402_v13 = vcombine.high %v17634_v18, %v18225_v5  ;;  %v18442_v18 = vpop.permute.xlu0 %3758  ;;  %v18444_v5 = vpop.permute.xlu1 %3756 }
 0x3d9   : > { %v18365_v10 = vrot.slane %v21392_v61, %v17360_v29  ;;  %v3540_v26 = vcombine.low %v18340_v23, %v18349_v35  ;;  %14913 = vmatpush3.xpose.msk.msra.mxu1 %vm4916_vm2, %v3271_v52  ;;  %14914 = vmatprep.mubr.msk.f32.mxu1 %vm16478_vm1, %v21380_v2  ;;  %v18413_v3 = vrot.slane %v21400_v63, %v17360_v29 }
 0x3da   : > { %14922 = vmatprep.subr.mxu1 %v21380_v2  ;;  %v18407_v61 = vrot.slane %v21399_v15, %v17360_v29  ;;  %14950 = vmatmul.mubr.msk.f32.vlgmr.msra.gmra.mrb[30].mxu0 %vm4916_vm2, %v2238_v22  ;;  %v21403_v22 = vcombine.low %v18117_v9, %v18085_v31  ;;  %v21404_v15 = vcombine.high %v21397_v36, %v21398_v12  ;;  %v21423_v12 = vld [vmem:[#allocation66_spill] sm:$0xff] }
 0x3db   : > { %14958 = vmatpush3.xpose.msk.msra.mxu0 %vm4916_vm2, %v3472_v46  ;;  %v21405_v46 = vcombine.high %v18162_v1, %v18174_v25  ;;  %14959 = vmatprep.mubr.msk.f32.mxu0 %vm16478_vm1, %v21380_v2  ;;  %v21407_v1 = vld [vmem:[#allocation56_spill] sm:$0xff]  ;;  %v21412_v25 = vcombine.low %v18002_v19, %v17971_v4 }
 0x3dc   : > { %14915 = vmatmul.mubr.msk.f32.vlgmr.msra.gmra.mrb[6].mxu1 %vm4916_vm2, %v21402_v13  ;;  %v18434_v33 = vrot.slane %v21403_v22, %v17360_v29  ;;  %v18440_v52 = vrot.slane %v21404_v15, %v17360_v29  ;;  %v21406_v13 = vcombine.high %v17999_v54, %v17968_v57  ;;  %v21408_v57 = vcombine.high %v18117_v9, %v18085_v31  ;;  %v21409_v15 = vld [vmem:[#allocation68_spill] sm:$0xff] }
 0x3dd   : > { %14923 = vmatpush3.xpose.msk.msra.mxu1 %vm4916_vm2, %v21405_v46  ;;  %14924 = vmatprep.mubr.msk.f32.mxu1 %vm16478_vm1, %v21380_v2  ;;  %v21410_v46 = vld [vmem:[#allocation65_spill] sm:$0xff]  ;;  %v18487_v31 = vrot.slane %v21412_v25, %v17360_v29  ;;  %v21415_v25 = vcombine.low %v18145_v58, %v18088_v40  ;;  %v21416_v9 = vcombine.high %v18187_v39, %v18193_v43  ;;  %v21419_v39 = vld [vmem:[#allocation58_spill] sm:$0xff] }
 0x3de   : > { %v18456_v22 = vrot.slane %v21406_v13, %v17360_v29  ;;  %14932 = vmatprep.subr.mxu1 %v21380_v2  ;;  %v18471_v54 = vrot.slane %v21408_v57, %v17360_v29  ;;  %v21411_v13 = vcombine.low %v21409_v15, %v21410_v46  ;;  %14967 = vmatprep.subr.mxu0 %v21380_v2 }
 0x3df   : > { %14960 = vmatmul.mubr.msk.f32.vlgmr.msra.gmra.mrb[32].mxu0 %vm4916_vm2, %v2304_v59  ;;  %v21413_v57 = vcombine.high %v17516_v6, %v18138_v0  ;;  %v21414_v59 = vld [vmem:[#allocation57_spill] sm:$0xff]  ;;  %v18504_v63 = vrot.slane %v21415_v25, %v17360_v29  ;;  %v21417_v0 = vcombine.high %v21409_v15, %v21410_v46  ;;  %v18535_v46 = vpop.permute.xlu0 %3780 }
 0x3e0   : > { %v18477_v36 = vrot.slane %v21411_v13, %v17360_v29  ;;  %14968 = vmatpush3.xpose.msk.msra.mxu0 %vm4916_vm2, %v3474_v14  ;;  %14969 = vmatprep.mubr.msk.f32.mxu0 %vm16478_vm1, %v21380_v2  ;;  %v21422_v15 = vld [vmem:[#allocation69_spill] sm:$0xff]  ;;  %v21425_v13 = vcombine.high %v17606_v50, %v18207_v34  ;;  %v21428_v50 = vcombine.high %v18213_v60, %v18222_v44  ;;  %v21429_v34 = vld [vmem:[#allocation59_spill] sm:$0xff] }
 0x3e1   : > { %14925 = vmatmul.mubr.msk.f32.vlgmr.msra.gmra.mrb[8].mxu1 %vm4916_vm2, %v21413_v57  ;;  %v18518_v14 = vrot.slane %v21417_v0, %v17360_v29  ;;  %v21418_v57 = vcombine.high %v18002_v19, %v17971_v4  ;;  %v18537_v0 = vpop.permute.xlu1 %3762  ;;  %14977 = vmatprep.subr.mxu0 %v21380_v2  ;;  %v21420_v4 = vcombine.low %v21391_v17, %v18334_v48 }
 0x3e2   : > { %14933 = vmatpush3.xpose.msk.msra.mxu1 %vm4916_vm2, %v21416_v9  ;;  %14934 = vmatprep.mubr.msk.f32.mxu1 %vm16478_vm1, %v21380_v2  ;;  %v21424_v43 = vcombine.low %v21422_v15, %v21423_v12 }
 0x3e3   : > { %v18524_v25 = vrot.slane %v21418_v57, %v17360_v29  ;;  %14942 = vmatprep.subr.mxu1 %v21380_v2  ;;  %14970 = vmatmul.mubr.msk.f32.vlgmr.msra.gmra.mrb[34].mxu0 %vm4916_vm2, %v21420_v4  ;;  %v21421_v57 = vcombine.high %v18145_v58, %v18088_v40  ;;  %v21426_v40 = vld [vmem:[#allocation70_spill] sm:$0xff] }
 0x3e4   : > { %v18556_v6 = vrot.slane %v21424_v43, %v17360_v29  ;;  %14978 = vmatpush3.xpose.msk.msra.mxu0 %vm4916_vm2, %v3540_v26  ;;  %v21427_v58 = vcombine.low %v18005_v56, %v21426_v40  ;;  %14979 = vmatprep.mubr.msk.f32.mxu0 %vm16478_vm1, %v21380_v2  ;;  %v21432_v44 = vcombine.high %v18005_v56, %v21426_v40 }
 0x3e5   : > { %v3678_v19 = vcombine.low %v18518_v14, %v18524_v25  ;;  %v18550_v9 = vrot.slane %v21421_v57, %v17360_v29  ;;  %14935 = vmatmul.mubr.msk.f32.vlgmr.msra.gmra.mrb[10].mxu1 %vm4916_vm2, %v21425_v13  ;;  %v21430_v13 = vcombine.low %v18148_v42, %v18091_v37  ;;  %v21431_v57 = vcombine.high %v21422_v15, %v21423_v12  ;;  %v21434_v15 = vld [vmem:[#allocation62_spill] sm:$0xff] }
 0x3e6   : > { %v18570_v4 = vrot.slane %v21427_v58, %v17360_v29  ;;  %14943 = vmatpush3.xpose.msk.msra.mxu1 %vm4916_vm2, %v21428_v50  ;;  %14944 = vmatprep.mubr.msk.f32.mxu1 %vm16478_vm1, %v21380_v2  ;;  %v18605_v50 = vrot.slane %v21432_v44, %v17360_v29  ;;  %v21433_v12 = vcombine.low %v21395_v30, %v18365_v10 }
 0x3e7   : > { %v2510_v26 = vcombine.low %v21429_v34, %v18550_v9  ;;  %v18588_v58 = vrot.slane %v21430_v13, %v17360_v29  ;;  %v18594_v43 = vrot.slane %v21431_v57, %v17360_v29  ;;  %14952 = vmatprep.subr.mxu1 %v21380_v2  ;;  %14987 = vmatprep.subr.mxu0 %v21380_v2  ;;  %v21444_v13 = vld [vmem:[#allocation48_spill] sm:$0xff] }
 0x3e8   : > { %14980 = vmatmul.mubr.msk.f32.vlgmr.msra.gmra.mrb[36].mxu0 %vm4916_vm2, %v21433_v12  ;;  %v21435_v56 = vcombine.high %v18148_v42, %v18091_v37  ;;  %v21436_v44 = vcombine.high %v17618_v28, %v18235_v47  ;;  %v21437_v12 = vcombine.low %v18371_v38, %v18381_v21  ;;  %v3805_v42 = vpop.permute.xlu0 %3804  ;;  %v21438_v28 = vcombine.high %v18250_v55, %v18256_v27  ;;  %v21439_v47 = vld [vmem:[#allocation63_spill] sm:$0xff]  ;;  %v21441_v37 = vld [vmem:[#allocation46_spill] sm:$0xff] }
 0x3e9   : > { %14989 = vmatprep.mubr.msk.f32.mxu0 %vm16478_vm1, %v21380_v2  ;;  %v3896_v60 = vcombine.low %v21441_v37, %v18273_v7  ;;  %v3912_v55 = vcombine.low %v18442_v18, %v18355_v49  ;;  %v21442_v27 = vcombine.high %v17624_v16, %v18265_v53  ;;  %v3828_v57 = vcombine.low %v21444_v13, %v18535_v46 }
 0x3ea   : > { %v18622_v40 = vrot.slane %v21435_v56, %v17360_v29  ;;  %14945 = vmatmul.mubr.msk.f32.vlgmr.msra.gmra.mrb[12].mxu1 %vm4916_vm2, %v21436_v44  ;;  %14988 = vmatpush3.xpose.msk.msra.mxu0 %vm4916_vm2, %v21437_v12  ;;  %v18638_v56 = vpop.permute.xlu1 %3786  ;;  %v21440_v12 = vcombine.low %v21401_v11, %v18396_v41  ;;  %v3897_v44 = vcombine.high %v21441_v37, %v18273_v7 }
 0x3eb   : > { %14953 = vmatpush3.xpose.msk.msra.mxu1 %vm4916_vm2, %v21438_v28  ;;  %14954 = vmatprep.mubr.msk.f32.mxu1 %vm16478_vm1, %v21380_v2  ;;  %v21443_v28 = vcombine.low %v18407_v61, %v18413_v3  ;;  %v3829_v7 = vcombine.high %v21444_v13, %v18535_v46  ;;  %v21445_v37 = vcombine.high %v18271_v45, %v18284_v20 }
 0x3ec   : > { %14962 = vmatprep.subr.mxu1 %v21380_v2  ;;  %14997 = vmatprep.subr.mxu0 %v21380_v2  ;;  %v3904_v16 = vrot.slane %v3896_v60, %v17343_v8  ;;  %v3911_v53 = vrot.slane %v3897_v44, %v17343_v8  ;;  %v3836_v45 = vrot.slane %v3828_v57, %v17343_v8  ;;  %v18701_v13 = vpop.permute.xlu0 %3784 }
 0x3ed   : > { %14990 = vmatmul.mubr.msk.f32.vlgmr.msra.gmra.mrb[38].mxu0 %vm4916_vm2, %v21440_v12  ;;  %v3913_v12 = vcombine.high %v18442_v18, %v18355_v49  ;;  %v3920_v49 = vrot.slane %v3912_v55, %v17343_v8  ;;  %v3843_v20 = vrot.slane %v3829_v7, %v17343_v8  ;;  %v21446_v60 = vcombine.low %v21407_v1, %v18434_v33 }
 0x3ee   : > { %14955 = vmatmul.mubr.msk.f32.vlgmr.msra.gmra.mrb[14].mxu1 %vm4916_vm2, %v21442_v27  ;;  %14998 = vmatpush3.xpose.msk.msra.mxu0 %vm4916_vm2, %v21443_v28  ;;  %v3811_v46 = vpop.permute.xlu1 %3810  ;;  %v3844_v27 = vcombine.low %v18444_v5, %v3805_v42  ;;  %v21447_v28 = vcombine.high %v17660_v62, %v18299_v32  ;;  %v21448_v57 = vcombine.low %v18440_v52, %v18456_v22 }
 0x3ef   : > { %14963 = vmatpush3.xpose.msk.msra.mxu1 %vm4916_vm2, %v21445_v37  ;;  %14964 = vmatprep.mubr.msk.f32.mxu1 %vm16478_vm1, %v21380_v2  ;;  %v3927_v18 = vrot.slane %v3913_v12, %v17343_v8  ;;  %v3928_v44 = vcombine.low %v3904_v16, %v3920_v49  ;;  %v3929_v55 = vcombine.high %v3904_v16, %v3920_v49 }
 0x3f0   : > { %14972 = vmatprep.subr.mxu1 %v21380_v2  ;;  %14999 = vmatprep.mubr.msk.f32.mxu0 %vm16478_vm1, %v21380_v2  ;;  %v3845_v37 = vcombine.high %v18444_v5, %v3805_v42  ;;  %v3852_v16 = vrot.slane %v3844_v27, %v17343_v8  ;;  %v21450_v42 = vcombine.low %v21414_v59, %v18471_v54 }
 0x3f1   : > { %15007 = vmatprep.subr.mxu0 %v21380_v2  ;;  %15000 = vmatmul.mubr.msk.f32.vlgmr.msra.gmra.mrb[40].mxu0 %vm4916_vm2, %v21446_v60  ;;  %v3944_v12 = vcombine.low %v3911_v53, %v3927_v18  ;;  %v3945_v7 = vcombine.high %v3911_v53, %v3927_v18  ;;  %v21449_v60 = vcombine.high %v18309_v24, %v18315_v51  ;;  %v21451_v18 = vld [vmem:[#allocation49_spill] sm:$0xff] }
 0x3f2   : > { %14965 = vmatmul.mubr.msk.f32.vlgmr.msra.gmra.mrb[16].mxu1 %vm4916_vm2, %v21447_v28  ;;  %15008 = vmatpush3.xpose.msk.msra.mxu0 %vm4916_vm2, %v21448_v57  ;;  %v18725_v62 = vrot.slane %v3928_v44, %v17360_v29  ;;  %v18728_v32 = vrot.slane %v3929_v55, %v17360_v29  ;;  %v3859_v5 = vrot.slane %v3845_v37, %v17343_v8 }
 0x3f3   : > { %14973 = vmatpush3.xpose.msk.msra.mxu1 %vm4916_vm2, %v21449_v60  ;;  %14974 = vmatprep.mubr.msk.f32.mxu1 %vm16478_vm1, %v21380_v2  ;;  %v18735_v51 = vrot.slane %v3944_v12, %v17360_v29  ;;  %v18738_v24 = vrot.slane %v3945_v7, %v17360_v29  ;;  %v3860_v53 = vcombine.low %v3836_v45, %v3852_v16  ;;  %v3809_v7 = vpop.permute.xlu0 %3808 }
 0x3f4   : > { %14982 = vmatprep.subr.mxu1 %v21380_v2  ;;  %15009 = vmatprep.mubr.msk.f32.mxu0 %vm16478_vm1, %v21380_v2  ;;  %v3861_v49 = vcombine.high %v3836_v45, %v3852_v16  ;;  %v4032_v44 = vcombine.low %v21451_v18, %v18638_v56  ;;  %v21452_v55 = vcombine.high %v21391_v17, %v18334_v48  ;;  %v3761_v45 = vpop.permute.xlu1 %3760 }
 0x3f5   : > { %15017 = vmatprep.subr.mxu0 %v21380_v2  ;;  %15010 = vmatmul.mubr.msk.f32.vlgmr.msra.gmra.mrb[42].mxu0 %vm4916_vm2, %v21450_v42  ;;  %v21453_v27 = vcombine.low %v18477_v36, %v18487_v31  ;;  %v3876_v28 = vcombine.low %v3843_v20, %v3859_v5  ;;  %v3877_v57 = vcombine.high %v3843_v20, %v3859_v5  ;;  %v21456_v42 = vld [vmem:[#allocation50_spill] sm:$0xff] }
 0x3f6   : > { %14975 = vmatmul.mubr.msk.f32.vlgmr.msra.gmra.mrb[18].mxu1 %vm4916_vm2, %v21452_v55  ;;  %v4033_v12 = vcombine.high %v21451_v18, %v18638_v56  ;;  %v21454_v37 = vcombine.high %v18340_v23, %v18349_v35  ;;  %v18765_v48 = vrot.slane %v3860_v53, %v17360_v29  ;;  %v18768_v17 = vrot.slane %v3861_v49, %v17360_v29 }
 0x3f7   : > { %15018 = vmatpush3.xpose.msk.msra.mxu0 %vm4916_vm2, %v21453_v27  ;;  %14984 = vmatprep.mubr.msk.f32.mxu1 %vm16478_vm1, %v21380_v2  ;;  %v4040_v20 = vrot.slane %v4032_v44, %v17343_v8  ;;  %v18775_v23 = vrot.slane %v3876_v28, %v17360_v29  ;;  %v18778_v35 = vrot.slane %v3877_v57, %v17360_v29 }
 0x3f8   : > { %14983 = vmatpush3.xpose.msk.msra.mxu1 %vm4916_vm2, %v21454_v37  ;;  %15019 = vmatprep.mubr.msk.f32.mxu0 %vm16478_vm1, %v21380_v2  ;;  %v4047_v56 = vrot.slane %v4033_v12, %v17343_v8  ;;  %v21455_v60 = vcombine.low %v21419_v39, %v18504_v63  ;;  %v4048_v16 = vcombine.low %v18537_v0, %v3811_v46  ;;  %v18800_v27 = vpop.permute.xlu1 %3766 }
 0x3f9   : > { %14992 = vmatprep.subr.mxu1 %v21380_v2  ;;  %15027 = vmatprep.subr.mxu0 %v21380_v2  ;;  %v4049_v5 = vcombine.high %v18537_v0, %v3811_v46  ;;  %v3964_v53 = vcombine.low %v21456_v42, %v18701_v13  ;;  %v21457_v49 = vcombine.high %v21395_v30, %v18365_v10  ;;  %v18802_v0 = vpop.permute.xlu0 %3764 }
 0x3fa   : > { %15020 = vmatmul.mubr.msk.f32.vlgmr.msra.gmra.mrb[44].mxu0 %vm4916_vm2, %v21455_v60  ;;  %v3965_v18 = vcombine.high %v21456_v42, %v18701_v13  ;;  %v3980_v44 = vcombine.low %v3761_v45, %v3809_v7  ;;  %v3981_v55 = vcombine.high %v3761_v45, %v3809_v7  ;;  %v21458_v46 = vcombine.high %v18371_v38, %v18381_v21 }
 0x3fb   : > { %14985 = vmatmul.mubr.msk.f32.vlgmr.msra.gmra.mrb[20].mxu1 %vm4916_vm2, %v21457_v49  ;;  %15028 = vmatpush3.xpose.msk.msra.mxu0 %vm4916_vm2, %v3678_v19  ;;  %v4056_v10 = vrot.slane %v4048_v16, %v17343_v8  ;;  %v4063_v30 = vrot.slane %v4049_v5, %v17343_v8  ;;  %v3972_v19 = vrot.slane %v3964_v53, %v17343_v8 }
 0x3fc   : > { %14993 = vmatpush3.xpose.msk.msra.mxu1 %vm4916_vm2, %v21458_v46  ;;  %14994 = vmatprep.mubr.msk.f32.mxu1 %vm16478_vm1, %v21380_v2  ;;  %v3979_v13 = vrot.slane %v3965_v18, %v17343_v8  ;;  %v3988_v38 = vrot.slane %v3980_v44, %v17343_v8  ;;  %v3995_v21 = vrot.slane %v3981_v55, %v17343_v8 }
 0x3fd   : > { %15002 = vmatprep.subr.mxu1 %v21380_v2  ;;  %15029 = vmatprep.mubr.msk.f32.mxu0 %vm16478_vm1, %v21380_v2  ;;  %v4064_v28 = vcombine.low %v4040_v20, %v4056_v10  ;;  %v4065_v57 = vcombine.high %v4040_v20, %v4056_v10  ;;  %v4080_v12 = vcombine.low %v4047_v56, %v4063_v30  ;;  %v18861_v42 = vpop.permute.xlu0 %3788 }
 0x3fe   : > { %15037 = vmatprep.subr.mxu0 %v21380_v2  ;;  %15030 = vmatmul.mubr.msk.f32.vlgmr.msra.gmra.mrb[46].mxu0 %vm4916_vm2, %v2510_v26  ;;  %v21459_v7 = vcombine.high %v21401_v11, %v18396_v41  ;;  %v21460_v45 = vcombine.low %v18556_v6, %v18570_v4  ;;  %v4081_v37 = vcombine.high %v4047_v56, %v4063_v30  ;;  %v18859_v56 = vpop.permute.xlu1 %3790 }
 0x3ff   : > { %v3996_v60 = vcombine.low %v3972_v19, %v3988_v38  ;;  %v3997_v16 = vcombine.high %v3972_v19, %v3988_v38  ;;  %v21461_v5 = vcombine.high %v18407_v61, %v18413_v3  ;;  %v18839_v41 = vrot.slane %v4064_v28, %v17360_v29  ;;  %15039 = vmatprep.mubr.msk.f32.mxu0 %vm16478_vm1, %v21380_v2 }
 0x400   : > { %14995 = vmatmul.mubr.msk.f32.vlgmr.msra.gmra.mrb[22].mxu1 %vm4916_vm2, %v21459_v7  ;;  %15038 = vmatpush3.xpose.msk.msra.mxu0 %vm4916_vm2, %v21460_v45  ;;  %v18842_v11 = vrot.slane %v4065_v57, %v17360_v29  ;;  %v18845_v26 = vrot.slane %v4080_v12, %v17360_v29  ;;  %v18851_v61 = vrot.slane %v4081_v37, %v17360_v29  ;;  %v21469_v37 = vld [vmem:[#allocation52_spill] sm:$0xff] }
 0x401   : > { %15003 = vmatpush3.xpose.msk.msra.mxu1 %vm4916_vm2, %v21461_v5  ;;  %15004 = vmatprep.mubr.msk.f32.mxu1 %vm16478_vm1, %v21380_v2  ;;  %v18854_v3 = vrot.slane %v3996_v60, %v17360_v29  ;;  %v18857_v20 = vrot.slane %v3997_v16, %v17360_v29  ;;  %v21462_v53 = vcombine.low %v21434_v15, %v18588_v58  ;;  %v18925_v5 = vpop.permute.xlu0 %3812 }
 0x402   : > { %15012 = vmatprep.subr.mxu1 %v21380_v2  ;;  %15047 = vmatprep.subr.mxu0 %v21380_v2  ;;  %v4380_v49 = vcombine.low %v18725_v62, %v18839_v41  ;;  %v14332_v18 = vcombine.high %v18725_v62, %v18839_v41  ;;  %v4516_v44 = vcombine.low %v18728_v32, %v18842_v11  ;;  %v18923_v16 = vpop.permute.xlu1 %3814 }
 0x403   : > { %15040 = vmatmul.mubr.msk.f32.vlgmr.msra.gmra.mrb[48].mxu0 %vm4916_vm2, %v21462_v53  ;;  %v21463_v55 = vcombine.high %v21407_v1, %v18434_v33  ;;  %v21464_v46 = vcombine.low %v18594_v43, %v18605_v50  ;;  %v14336_v10 = vcombine.high %v18728_v32, %v18842_v11  ;;  %v4652_v30 = vcombine.low %v18735_v51, %v18845_v26 }
 0x404   : > { %v14340_v62 = vcombine.high %v18735_v51, %v18845_v26  ;;  %v21465_v19 = vcombine.high %v18440_v52, %v18456_v22  ;;  %v4788_v33 = vcombine.low %v18738_v24, %v18851_v61  ;;  %v14344_v1 = vcombine.high %v18738_v24, %v18851_v61  ;;  %15049 = vmatprep.mubr.msk.f32.mxu0 %vm16478_vm1, %v21380_v2 }
 0x405   : > { %15005 = vmatmul.mubr.msk.f32.vlgmr.msra.gmra.mrb[24].mxu1 %vm4916_vm2, %v21463_v55  ;;  %15048 = vmatpush3.xpose.msk.msra.mxu0 %vm4916_vm2, %v21464_v46  ;;  %v4012_v32 = vcombine.low %v3979_v13, %v3995_v21  ;;  %v4013_v38 = vcombine.high %v3979_v13, %v3995_v21  ;;  %v4372_v52 = vcombine.low %v18765_v48, %v18854_v3  ;;  %v21467_v13 = vld [vmem:[#allocation51_spill] sm:$0xff] }
 0x406   : > { %15013 = vmatpush3.xpose.msk.msra.mxu1 %vm4916_vm2, %v21465_v19  ;;  %15014 = vmatprep.mubr.msk.f32.mxu1 %vm16478_vm1, %v21380_v2  ;;  %v14331_v22 = vcombine.high %v18765_v48, %v18854_v3  ;;  %v21466_v28 = vcombine.low %v21439_v47, %v18622_v40  ;;  %v4508_v12 = vcombine.low %v18768_v17, %v18857_v20 }
 0x407   : > { %15022 = vmatprep.subr.mxu1 %v21380_v2  ;;  %v4020_v57 = vrot.slane %v4012_v32, %v17360_v29  ;;  %v14335_v7 = vcombine.high %v18768_v17, %v18857_v20  ;;  %v4168_v21 = vcombine.low %v21467_v13, %v18859_v56  ;;  %v21468_v45 = vcombine.high %v21414_v59, %v18471_v54 }
 0x408   : > { %15050 = vmatmul.mubr.msk.f32.vlgmr.msra.gmra.mrb[50].mxu0 %vm4916_vm2, %v21466_v28  ;;  %v4027_v48 = vrot.slane %v4013_v38, %v17360_v29  ;;  %v4100_v60 = vcombine.low %v21469_v37, %v18861_v42  ;;  %v21470_v17 = vcombine.high %v18477_v36, %v18487_v31  ;;  %v4184_v36 = vcombine.low %v18800_v27, %v18923_v16 }
 0x409   : > { %15015 = vmatmul.mubr.msk.f32.vlgmr.msra.gmra.mrb[26].mxu1 %vm4916_vm2, %v21468_v45  ;;  %v4644_v54 = vcombine.low %v18775_v23, %v4020_v57  ;;  %v14339_v59 = vcombine.high %v18775_v23, %v4020_v57  ;;  %v18939_v3 = vrot.slane %v4168_v21, %v17343_v8  ;;  %v4116_v31 = vcombine.low %v18802_v0, %v18925_v5 }
 0x40a   : > { %15023 = vmatpush3.xpose.msk.msra.mxu1 %vm4916_vm2, %v21470_v17  ;;  %15024 = vmatprep.mubr.msk.f32.mxu1 %vm16478_vm1, %v21380_v2  ;;  %v4780_v41 = vcombine.low %v18778_v35, %v4027_v48  ;;  %v14343_v11 = vcombine.high %v18778_v35, %v4027_v48  ;;  %v21471_v23 = vcombine.high %v21419_v39, %v18504_v63 }
 0x40b   : > { %15032 = vmatprep.subr.mxu1 %v21380_v2  ;;  %15057 = vmatprep.subr.mxu0 %v21380_v2  ;;  %v18951_v20 = vrot.slane %v4100_v60, %v17343_v8  ;;  %v21472_v35 = vcombine.high %v18518_v14, %v18524_v25  ;;  %v18960_v53 = vrot.slane %v4184_v36, %v17343_v8 }
 0x40c   : > { %v18963_v55 = vrot.slane %v4116_v31, %v17343_v8  ;;  %15059 = vmatprep.mubr.msk.f32.mxu0 %vm16478_vm1, %v21380_v2  ;;  %v21473_v14 = vcombine.high %v21429_v34, %v18550_v9  ;;  %v21474_v39 = vcombine.high %v18556_v6, %v18570_v4  ;;  %v21475_v46 = vcombine.high %v21434_v15, %v18588_v58 }
 0x40d   : > { %15025 = vmatmul.mubr.msk.f32.vlgmr.msra.gmra.mrb[28].mxu1 %vm4916_vm2, %v21471_v23  ;;  %v21476_v9 = vcombine.high %v18594_v43, %v18605_v50  ;;  %v21477_v6 = vcombine.high %v21439_v47, %v18622_v40  ;;  %v19001_v4 = vrot.slane %v4372_v52, %v17343_v8  ;;  %v19004_v43 = vrot.slane %v4380_v49, %v17343_v8 }
 0x40e   : > { %15033 = vmatpush3.xpose.msk.msra.mxu1 %vm4916_vm2, %v21472_v35  ;;  %15034 = vmatprep.mubr.msk.f32.mxu1 %vm16478_vm1, %v21380_v2  ;;  %v19007_v34 = vrot.slane %v14331_v22, %v17343_v8  ;;  %v19010_v58 = vrot.slane %v14332_v18, %v17343_v8  ;;  %v19013_v50 = vrot.slane %v4508_v12, %v17343_v8 }
 0x40f   : > { %15042 = vmatprep.subr.mxu1 %v21380_v2  ;;  %21478 = vst [vmem:[#allocation53_spill] sm:$0xff] %v19001_v4  ;;  %21479 = vst [vmem:[#allocation54_spill] sm:$0xff] %v19004_v43  ;;  %v19016_v15 = vrot.slane %v4516_v44, %v17343_v8  ;;  %v19019_v40 = vrot.slane %v14335_v7, %v17343_v8  ;;  %v19022_v47 = vrot.slane %v14336_v10, %v17343_v8 }
 0x410   : > { %21480 = vst [vmem:[#allocation67_spill] sm:$0xff] %v19007_v34  ;;  %21481 = vst [vmem:[#allocation64_spill] sm:$0xff] %v19010_v58  ;;  %v19041_v22 = vrot.slane %v4644_v54, %v17343_v8  ;;  %v19047_v28 = vrot.slane %v4652_v30, %v17343_v8  ;;  %v19050_v57 = vrot.slane %v14339_v59, %v17343_v8 }
 0x411   : > { %15035 = vmatmul.mubr.msk.f32.vlgmr.msra.gmra.mrb[30].mxu1 %vm4916_vm2, %v21473_v14  ;;  %21482 = vst [vmem:[#allocation55_spill] sm:$0xff] %v19013_v50  ;;  %21483 = vst [vmem:[#allocation56_spill] sm:$0xff] %v19016_v15  ;;  %v19056_v12 = vrot.slane %v14340_v62, %v17343_v8  ;;  %v19059_v7 = vrot.slane %v4780_v41, %v17343_v8  ;;  %v19065_v21 = vrot.slane %v4788_v33, %v17343_v8 }
 0x412   : > { %15043 = vmatpush3.xpose.msk.msra.mxu1 %vm4916_vm2, %v21474_v39  ;;  %15044 = vmatprep.mubr.msk.f32.mxu1 %vm16478_vm1, %v21380_v2  ;;  %21484 = vst [vmem:[#allocation68_spill] sm:$0xff] %v19019_v40  ;;  %21485 = vst [vmem:[#allocation65_spill] sm:$0xff] %v19022_v47  ;;  %v19068_v30 = vrot.slane %v14343_v11, %v17343_v8  ;;  %v19074_v45 = vrot.slane %v14344_v1, %v17343_v8 }
 0x413   : > { %15052 = vmatprep.subr.mxu1 %v21380_v2  ;;  %21486 = vst [vmem:[#allocation57_spill] sm:$0xff] %v19041_v22  ;;  %21487 = vst [vmem:[#allocation58_spill] sm:$0xff] %v19047_v28 }
 0x414   : > { %21488 = vst [vmem:[#allocation69_spill] sm:$0xff] %v19050_v57  ;;  %21489 = vst [vmem:[#allocation66_spill] sm:$0xff] %v19056_v12 }
 0x415   : > { %15045 = vmatmul.mubr.msk.f32.vlgmr.msra.gmra.mrb[32].mxu1 %vm4916_vm2, %v21475_v46  ;;  %21490 = vst [vmem:[#allocation70_spill] sm:$0xff] %v19059_v7  ;;  %21491 = vst [vmem:[#allocation59_spill] sm:$0xff] %v19065_v21 }
 0x416   : > { %15053 = vmatpush3.xpose.msk.msra.mxu1 %vm4916_vm2, %v21476_v9  ;;  %15054 = vmatprep.mubr.msk.f32.mxu1 %vm16478_vm1, %v21380_v2  ;;  %21492 = vst [vmem:[#allocation62_spill] sm:$0xff] %v19068_v30  ;;  %21493 = vst [vmem:[#allocation63_spill] sm:$0xff] %v19074_v45 }
 0x417   : > { %15062 = vmatprep.subr.mxu1 %v21380_v2 }
 0x419   : > { %15055 = vmatmul.mubr.msk.f32.vlgmr.msra.gmra.mrb[34].mxu1 %vm4916_vm2, %v21477_v6 }
 0x41a   : > { %15064 = vmatprep.mubr.msk.f32.mxu1 %vm16478_vm1, %v21380_v2 }
 0x4a0   : > { %v19092_v60 = vpop.f32.mrb[24].mxu0 }
 0x4a1   : > { %v14921_v54 = vpop.f32.mrb[25].mxu0  ;;  %v7361_v59 = vsel %vm4916_vm2, %v19092_v60, -inf }
 0x4a2   : > { %7362 = vmax.xlane.f32.xlu1 %v7361_v59 }
 0x4a3   : > { %v19094_v17 = vpop.f32.mrb[0].mxu1 }
 0x4a4   : > { %v14901_v41 = vpop.f32.mrb[1].mxu1  ;;  %v7349_v11 = vsel %vm4916_vm2, %v19094_v17, -inf }
 0x4a5   : > { %7350 = vmax.xlane.f32.xlu0 %v7349_v11  ;;  %v19100_v36 = vpop.f32.mrb[26].mxu0 }
 0x4a6   : > { %v14931_v23 = vpop.f32.mrb[27].mxu0  ;;  %v7367_v59 = vsel %vm4916_vm2, %v19100_v36, -inf }
 0x4a7   : > { %v19102_v31 = vpop.f32.mrb[2].mxu1 }
 0x4a8   : > { %v14906_v35 = vpop.f32.mrb[3].mxu1  ;;  %v7352_v14 = vsel %vm4916_vm2, %v19102_v31, -inf }
 0x4a9   : > { %7353 = vmax.xlane.f32.xlu1 %v7352_v14  ;;  %v19106_v39 = vpop.f32.mrb[28].mxu0 }
 0x4aa   : > { %v14941_v9 = vpop.f32.mrb[29].mxu0 }
 0x4ab   : > { %v19108_v46 = vpop.f32.mrb[4].mxu1  ;;  %v7373_v9 = vsel %vm4916_vm2, %v19106_v39, -inf }
 0x4ac   : > { %v14911_v6 = vpop.f32.mrb[5].mxu1  ;;  %v7355_v54 = vsel %vm4916_vm2, %v19108_v46, -inf }
 0x4ad   : > { %7356 = vmax.xlane.f32.xlu0 %v7355_v54  ;;  %7368 = vmax.xlane.f32.xlu1 %v7367_v59  ;;  %v19114_v41 = vpop.f32.mrb[30].mxu0 }
 0x4ae   : > { %v14951_v23 = vpop.f32.mrb[31].mxu0 }
 0x4af   : > { %v19116_v11 = vpop.f32.mrb[6].mxu1  ;;  %v7379_v23 = vsel %vm4916_vm2, %v19114_v41, -inf }
 0x4b0   : > { %v14916_v35 = vpop.f32.mrb[7].mxu1  ;;  %v7358_v14 = vsel %vm4916_vm2, %v19116_v11, -inf }
 0x4b1   : > { %7359 = vmax.xlane.f32.xlu0 %v7358_v14  ;;  %7374 = vmax.xlane.f32.xlu1 %v7373_v9 }
 0x4b2   : > { %v19122_v6 = vpop.f32.mrb[32].mxu0 }
 0x4b3   : > { %v14961_v54 = vpop.f32.mrb[33].mxu0 }
 0x4b4   : > { %v19124_v1 = vpop.f32.mrb[8].mxu1  ;;  %v7385_v54 = vsel %vm4916_vm2, %v19122_v6, -inf }
 0x4b5   : > { %v14926_v59 = vpop.f32.mrb[9].mxu1  ;;  %v7364_v61 = vsel %vm4916_vm2, %v19124_v1, -inf  ;;  %7380 = vmax.xlane.f32.xlu1 %v7379_v23 }
 0x4b6   : > { %7365 = vmax.xlane.f32.xlu0 %v7364_v61  ;;  %v19130_v35 = vpop.f32.mrb[34].mxu0 }
 0x4b7   : > { %v14971_v14 = vpop.f32.mrb[35].mxu0 }
 0x4b8   : > { %v19132_v24 = vpop.f32.mrb[10].mxu1  ;;  %v7391_v14 = vsel %vm4916_vm2, %v19130_v35, -inf }
 0x4b9   : > { %v14936_v9 = vpop.f32.mrb[11].mxu1  ;;  %v7370_v48 = vsel %vm4916_vm2, %v19132_v24, -inf  ;;  %7386 = vmax.xlane.f32.xlu1 %v7385_v54 }
 0x4ba   : > { %7371 = vmax.xlane.f32.xlu0 %v7370_v48 }
 0x4bb   : > { %v19138_v59 = vpop.f32.mrb[36].mxu0 }
 0x4bc   : > { %v14981_v61 = vpop.f32.mrb[37].mxu0 }
 0x4bd   : > { %v19140_v33 = vpop.f32.mrb[12].mxu1  ;;  %7392 = vmax.xlane.f32.xlu1 %v7391_v14  ;;  %v7397_v61 = vsel %vm4916_vm2, %v19138_v59, -inf }
 0x4be   : > { %v14946_v23 = vpop.f32.mrb[13].mxu1  ;;  %v7376_v62 = vsel %vm4916_vm2, %v19140_v33, -inf }
 0x4bf   : > { %7377 = vmax.xlane.f32.xlu0 %v7376_v62 }
 0x4c0   : > { %v19146_v9 = vpop.f32.mrb[38].mxu0 }
 0x4c1   : > { %v19148_v26 = vpop.f32.mrb[14].mxu1  ;;  %v14991_v48 = vpop.f32.mrb[39].mxu0  ;;  %7398 = vmax.xlane.f32.xlu1 %v7397_v61 }
 0x4c2   : > { %v14956_v54 = vpop.f32.mrb[15].mxu1  ;;  %v7382_v51 = vsel %vm4916_vm2, %v19148_v26, -inf  ;;  %v7403_v48 = vsel %vm4916_vm2, %v19146_v9, -inf }
 0x4c3   : > { %7383 = vmax.xlane.f32.xlu0 %v7382_v51 }
 0x4c4   : > { %v19154_v23 = vpop.f32.mrb[40].mxu0 }
 0x4c5   : > { %v19156_v52 = vpop.f32.mrb[16].mxu1  ;;  %v15001_v62 = vpop.f32.mrb[41].mxu0  ;;  %7404 = vmax.xlane.f32.xlu1 %v7403_v48 }
 0x4c6   : > { %v14966_v14 = vpop.f32.mrb[17].mxu1  ;;  %v7388_v10 = vsel %vm4916_vm2, %v19156_v52, -inf  ;;  %v7409_v62 = vsel %vm4916_vm2, %v19154_v23, -inf }
 0x4c7   : > { %7389 = vmax.xlane.f32.xlu0 %v7388_v10 }
 0x4c8   : > { %v19162_v54 = vpop.f32.mrb[42].mxu0 }
 0x4c9   : > { %v19164_v38 = vpop.f32.mrb[18].mxu1  ;;  %v15011_v51 = vpop.f32.mrb[43].mxu0  ;;  %7410 = vmax.xlane.f32.xlu1 %v7409_v62 }
 0x4ca   : > { %v14976_v61 = vpop.f32.mrb[19].mxu1  ;;  %v7394_v44 = vsel %vm4916_vm2, %v19164_v38, -inf  ;;  %v7415_v51 = vsel %vm4916_vm2, %v19162_v54, -inf }
 0x4cb   : > { %7395 = vmax.xlane.f32.xlu0 %v7394_v44 }
 0x4cd   : > { %v19170_v14 = vpop.f32.mrb[44].mxu0  ;;  %7416 = vmax.xlane.f32.xlu1 %v7415_v51 }
 0x4ce   : > { %v19172_v32 = vpop.f32.mrb[20].mxu1  ;;  %v15021_v10 = vpop.f32.mrb[45].mxu0 }
 0x4cf   : > { %v14986_v48 = vpop.f32.mrb[21].mxu1  ;;  %v7400_v18 = vsel %vm4916_vm2, %v19172_v32, -inf  ;;  %v7421_v10 = vsel %vm4916_vm2, %v19170_v14, -inf }
 0x4d0   : > { %7401 = vmax.xlane.f32.xlu0 %v7400_v18 }
 0x4d1   : > { %v19178_v61 = vpop.f32.mrb[46].mxu0  ;;  %7422 = vmax.xlane.f32.xlu1 %v7421_v10 }
 0x4d2   : > { %v15031_v44 = vpop.f32.mrb[47].mxu0 }
 0x4d3   : > { %v19180_v19 = vpop.f32.mrb[22].mxu1  ;;  %v7427_v44 = vsel %vm4916_vm2, %v19178_v61, -inf }
 0x4d4   : > { %v14996_v62 = vpop.f32.mrb[23].mxu1  ;;  %v7406_v49 = vsel %vm4916_vm2, %v19180_v19, -inf }
 0x4d5   : > { %7407 = vmax.xlane.f32.xlu0 %v7406_v49  ;;  %7428 = vmax.xlane.f32.xlu1 %v7427_v44 }
 0x4d6   : > { %v19186_v48 = vpop.f32.mrb[48].mxu0 }
 0x4d7   : > { %v15041_v18 = vpop.f32.mrb[49].mxu0 }
 0x4d8   : > { %v19188_v25 = vpop.f32.mrb[24].mxu1  ;;  %v7433_v18 = vsel %vm4916_vm2, %v19186_v48, -inf }
 0x4d9   : > { %v15006_v51 = vpop.f32.mrb[25].mxu1  ;;  %v7412_v63 = vsel %vm4916_vm2, %v19188_v25, -inf  ;;  %7434 = vmax.xlane.f32.xlu1 %v7433_v18 }
 0x4da   : > { %7413 = vmax.xlane.f32.xlu0 %v7412_v63 }
 0x4db   : > { %v19194_v62 = vpop.f32.mrb[50].mxu0 }
 0x4dc   : > { %v19196_v45 = vpop.f32.mrb[26].mxu1  ;;  %v15051_v49 = vpop.f32.mrb[51].mxu0  ;;  %v7439_v44 = vsel %vm4916_vm2, %v19194_v62, -inf }
 0x4dd   : > { %v15016_v10 = vpop.f32.mrb[27].mxu1  ;;  %v7418_v30 = vsel %vm4916_vm2, %v19196_v45, -inf  ;;  %7440 = vmax.xlane.f32.xlu1 %v7439_v44  ;;  %v21496_v44 = vld [vmem:[#allocation60_spill] sm:$0xff] }
 0x4de   : > { %7419 = vmax.xlane.f32.xlu0 %v7418_v30 }
 0x4e0   : > { %v19202_v51 = vpop.f32.mrb[28].mxu1 }
 0x4e1   : > { %v15026_v2 = vpop.f32.mrb[29].mxu1  ;;  %v7424_v63 = vsel %vm4916_vm2, %v19202_v51, -inf }
 0x4e2   : > { %7425 = vmax.xlane.f32.xlu0 %v7424_v63 }
 0x4e4   : > { %v19208_v49 = vpop.f32.mrb[30].mxu1 }
 0x4e5   : > { %v15036_v10 = vpop.f32.mrb[31].mxu1  ;;  %v7430_v21 = vsel %vm4916_vm2, %v19208_v49, -inf }
 0x4e6   : > { %7431 = vmax.xlane.f32.xlu0 %v7430_v21  ;;  %v21497_v10 = vld [vmem:[#allocation61_spill] sm:$0xff]  ;;  %v19224_v21 = vpop.permute.xlu1 %3770 }
 0x4e8   : > { %v19212_v30 = vpop.f32.mrb[32].mxu1 }
 0x4e9   : > { %21494 = vst [vmem:[#allocation46_spill] sm:$0xff] %v19212_v30  ;;  %v15046_v18 = vpop.f32.mrb[33].mxu1  ;;  %v7436_v2 = vsel %vm4916_vm2, %v19212_v30, -inf }
 0x4ea   : > { %7437 = vmax.xlane.f32.xlu0 %v7436_v2  ;;  %v19226_v18 = vpop.permute.xlu0 %3768  ;;  %v19228_v57 = vpop.permute.xlu1 %3794 }
 0x4eb   : > { %21498 = vst [vmem:[#allocation49_spill] sm:$0xff] %v19226_v18 }
 0x4ec   : > { %v19216_v7 = vpop.f32.mrb[34].mxu1 }
 0x4ed   : > { %21495 = vst [vmem:[#allocation48_spill] sm:$0xff] %v19216_v7  ;;  %v15056_v12 = vpop.f32.mrb[35].mxu1  ;;  %v7442_v63 = vsel %vm4916_vm2, %v19216_v7, -inf }
 0x4ee   : > { %7443 = vmax.xlane.f32.xlu0 %v7442_v63  ;;  %3818 = vrot.lane.b32.xlu1 %v21496_v44, %s16475_s1  ;;  %v19230_v2 = vpop.permute.xlu0 %3792 }
 0x504   : > { %3816 = vrot.lane.b32.xlu0 %v21497_v10, %s16475_s1  ;;  %s21590_s1 = sld [smem:[#allocation86_spill]] }
 0x52f   : > { %v7363_v28 = vpop.xlane.xlu1 %7362 }
 0x530   : > { %v7449_v22 = vsub.f32 %v19092_v60, %v7363_v28 }
 0x532   : > { %v7351_v12 = vpop.xlane.xlu0 %7350  ;;  %v7485_v7 = vmul.f32 1.442695, %v7449_v22 }
 0x533   : > { %v7445_v63 = vsub.f32 %v19094_v17, %v7351_v12 }
 0x534   : > { %15733 = vpow2.f32 %v7485_v7 }
 0x535   : > { %v7477_v47 = vmul.f32 1.442695, %v7445_v63 }
 0x536   : > { %v7354_v40 = vpop.xlane.xlu1 %7353 }
 0x537   : > { %15735 = vpow2.f32 %v7477_v47  ;;  %v7446_v15 = vsub.f32 %v19102_v31, %v7354_v40 }
 0x539   : > { %v7479_v50 = vmul.f32 1.442695, %v7446_v15 }
 0x53a   : > { %v7357_v58 = vpop.xlane.xlu0 %7356  ;;  %v7369_v18 = vpop.xlane.xlu1 %7368 }
 0x53b   : > { %15737 = vpow2.f32 %v7479_v50  ;;  %v7447_v34 = vsub.f32 %v19108_v46, %v7357_v58  ;;  %v7451_v43 = vsub.f32 %v19100_v36, %v7369_v18 }
 0x53d   : > { %v7481_v30 = vmul.f32 1.442695, %v7447_v34  ;;  %v7489_v47 = vmul.f32 1.442695, %v7451_v43 }
 0x53e   : > { %v7360_v4 = vpop.xlane.xlu0 %7359  ;;  %v7375_v28 = vpop.xlane.xlu1 %7374 }
 0x53f   : > { %15739 = vpow2.f32 %v7481_v30  ;;  %v7448_v22 = vsub.f32 %v19116_v11, %v7360_v4  ;;  %v19238_v60 = vpop.eup %15733  ;;  %v7453_v15 = vsub.f32 %v19106_v39, %v7375_v28 }
 0x540   : > { %v7553_v50 = vsel %vm4916_vm2, %v19238_v60, 0.0 }
 0x541   : > { %v19240_v7 = vpop.eup %15735  ;;  %v7483_v40 = vmul.f32 1.442695, %v7448_v22  ;;  %7554 = vadd.xlane.f32.xlu0 %v7553_v50  ;;  %v7493_v43 = vmul.f32 1.442695, %v7453_v15 }
 0x542   : > { %v7381_v34 = vpop.xlane.xlu1 %7380  ;;  %v7541_v17 = vsel %vm4916_vm2, %v19240_v7, 0.0 }
 0x543   : > { %v7366_v58 = vpop.xlane.xlu0 %7365  ;;  %15741 = vpow2.f32 %v7483_v40  ;;  %7542 = vadd.xlane.f32.xlu1 %v7541_v17  ;;  %v7455_v39 = vsub.f32 %v19114_v41, %v7381_v34 }
 0x544   : > { %v7450_v4 = vsub.f32 %v19124_v1, %v7366_v58  ;;  %15743 = vpow2.f32 %v7489_v47 }
 0x545   : > { %v19248_v36 = vpop.eup %15737  ;;  %v7497_v1 = vmul.f32 1.442695, %v7455_v39 }
 0x546   : > { %v7487_v31 = vmul.f32 1.442695, %v7450_v4  ;;  %v7387_v11 = vpop.xlane.xlu1 %7386  ;;  %v7544_v30 = vsel %vm4916_vm2, %v19248_v36, 0.0 }
 0x547   : > { %v7372_v46 = vpop.xlane.xlu0 %7371  ;;  %7545 = vadd.xlane.f32.xlu0 %v7544_v30  ;;  %v7457_v28 = vsub.f32 %v19122_v6, %v7387_v11 }
 0x548   : > { %15745 = vpow2.f32 %v7487_v31  ;;  %v7452_v18 = vsub.f32 %v19132_v24, %v7372_v46 }
 0x549   : > { %v19254_v12 = vpop.eup %15739  ;;  %15747 = vpow2.f32 %v7493_v43  ;;  %v7501_v24 = vmul.f32 1.442695, %v7457_v28 }
 0x54a   : > { %v7491_v63 = vmul.f32 1.442695, %v7452_v18  ;;  %v7393_v47 = vpop.xlane.xlu1 %7392  ;;  %v7547_v41 = vsel %vm4916_vm2, %v19254_v12, 0.0 }
 0x54b   : > { %7548 = vadd.xlane.f32.xlu1 %v7547_v41  ;;  %v7459_v58 = vsub.f32 %v19130_v35, %v7393_v47 }
 0x54c   : > { %v7378_v22 = vpop.xlane.xlu0 %7377  ;;  %15749 = vpow2.f32 %v7491_v63 }
 0x54d   : > { %v7454_v40 = vsub.f32 %v19140_v33, %v7378_v22  ;;  %v19260_v15 = vpop.eup %15741  ;;  %15751 = vpow2.f32 %v7497_v1  ;;  %v7505_v31 = vmul.f32 1.442695, %v7459_v58 }
 0x54e   : > { %v7399_v17 = vpop.xlane.xlu1 %7398  ;;  %v7550_v6 = vsel %vm4916_vm2, %v19260_v15, 0.0  ;;  %v19265_v4 = vpop.eup %15743 }
 0x54f   : > { %v7495_v50 = vmul.f32 1.442695, %v7454_v40  ;;  %7551 = vadd.xlane.f32.xlu0 %v7550_v6  ;;  %v7461_v46 = vsub.f32 %v19138_v59, %v7399_v17  ;;  %v7559_v30 = vsel %vm4916_vm2, %v19265_v4, 0.0 }
 0x550   : > { %v7384_v34 = vpop.xlane.xlu0 %7383 }
 0x551   : > { %15753 = vpow2.f32 %v7495_v50  ;;  %v7456_v43 = vsub.f32 %v19148_v26, %v7384_v34  ;;  %v7509_v28 = vmul.f32 1.442695, %v7461_v46 }
 0x552   : > { %v19268_v33 = vpop.eup %15745  ;;  %15755 = vpow2.f32 %v7501_v24  ;;  %v7405_v35 = vpop.xlane.xlu1 %7404 }
 0x553   : > { %v7499_v39 = vmul.f32 1.442695, %v7456_v43  ;;  %v7556_v18 = vsel %vm4916_vm2, %v19268_v33, 0.0  ;;  %v19275_v1 = vpop.eup %15747  ;;  %7560 = vadd.xlane.f32.xlu0 %v7559_v30  ;;  %v7463_v22 = vsub.f32 %v19146_v9, %v7405_v35 }
 0x554   : > { %v7390_v11 = vpop.xlane.xlu0 %7389  ;;  %7557 = vadd.xlane.f32.xlu1 %v7556_v18  ;;  %v7565_v24 = vsel %vm4916_vm2, %v19275_v1, 0.0 }
 0x555   : > { %15757 = vpow2.f32 %v7499_v39  ;;  %v7458_v26 = vsub.f32 %v19156_v52, %v7390_v11  ;;  %v7513_v34 = vmul.f32 1.442695, %v7463_v22 }
 0x556   : > { %v19278_v63 = vpop.eup %15749  ;;  %15759 = vpow2.f32 %v7505_v31  ;;  %v7411_v41 = vpop.xlane.xlu1 %7410 }
 0x557   : > { %v7503_v59 = vmul.f32 1.442695, %v7458_v26  ;;  %v7562_v40 = vsel %vm4916_vm2, %v19278_v63, 0.0  ;;  %v19285_v50 = vpop.eup %15751  ;;  %v7465_v17 = vsub.f32 %v19154_v23, %v7411_v41 }
 0x558   : > { %v7396_v47 = vpop.xlane.xlu0 %7395  ;;  %7563 = vadd.xlane.f32.xlu0 %v7562_v40  ;;  %7566 = vadd.xlane.f32.xlu1 %v7565_v24  ;;  %v7571_v39 = vsel %vm4916_vm2, %v19285_v50, 0.0 }
 0x559   : > { %15761 = vpow2.f32 %v7503_v59  ;;  %v7460_v52 = vsub.f32 %v19164_v38, %v7396_v47  ;;  %v7517_v35 = vmul.f32 1.442695, %v7465_v17  ;;  %v4169_v47 = vcombine.high %v21467_v13, %v18859_v56 }
 0x55a   : > { %15763 = vpow2.f32 %v7509_v28  ;;  %v7417_v43 = vpop.xlane.xlu1 %7416 }
 0x55b   : > { %v19288_v58 = vpop.eup %15753  ;;  %v7507_v9 = vmul.f32 1.442695, %v7460_v52  ;;  %v7467_v30 = vsub.f32 %v19162_v54, %v7417_v43  ;;  %v4185_v54 = vcombine.high %v18800_v27, %v18923_v16  ;;  %v4117_v27 = vcombine.high %v18802_v0, %v18925_v5 }
 0x55c   : > { %v7568_v31 = vsel %vm4916_vm2, %v19288_v58, 0.0  ;;  %v19295_v46 = vpop.eup %15755  ;;  %7572 = vadd.xlane.f32.xlu1 %v7571_v39  ;;  %v4304_v16 = vcombine.low %v21496_v44, %v19228_v57 }
 0x55d   : > { %v7402_v6 = vpop.xlane.xlu0 %7401  ;;  %15765 = vpow2.f32 %v7507_v9  ;;  %7569 = vadd.xlane.f32.xlu0 %v7568_v31  ;;  %v7577_v59 = vsel %vm4916_vm2, %v19295_v46, 0.0  ;;  %v7521_v40 = vmul.f32 1.442695, %v7467_v30  ;;  %v4131_v30 = vrot.slane %v4117_v27, %v17343_v8 }
 0x55e   : > { %v7462_v38 = vsub.f32 %v19172_v32, %v7402_v6  ;;  %15767 = vpow2.f32 %v7513_v34  ;;  %v7423_v26 = vpop.xlane.xlu1 %7422  ;;  %v4101_v34 = vcombine.high %v21469_v37, %v18861_v42  ;;  %v4183_v42 = vrot.slane %v4169_v47, %v17343_v8 }
 0x55f   : > { %v19298_v11 = vpop.eup %15757  ;;  %v7469_v52 = vsub.f32 %v19170_v14, %v7423_v26  ;;  %v4199_v37 = vrot.slane %v4185_v54, %v17343_v8  ;;  %v4305_v6 = vcombine.high %v21496_v44, %v19228_v57  ;;  %v4200_v26 = vcombine.low %v18939_v3, %v18960_v53 }
 0x560   : > { %v7511_v23 = vmul.f32 1.442695, %v7462_v38  ;;  %v7574_v28 = vsel %vm4916_vm2, %v19298_v11, 0.0  ;;  %v19305_v22 = vpop.eup %15759  ;;  %7578 = vadd.xlane.f32.xlu1 %v7577_v59  ;;  %v4115_v39 = vrot.slane %v4101_v34, %v17343_v8 }
 0x561   : > { %7575 = vadd.xlane.f32.xlu0 %v7574_v28  ;;  %v7583_v56 = vsel %vm4916_vm2, %v19305_v22, 0.0  ;;  %v7525_v31 = vmul.f32 1.442695, %v7469_v52  ;;  %v4216_v28 = vcombine.low %v4183_v42, %v4199_v37  ;;  %v19352_v59 = vrot.slane %v4305_v6, %v17343_v8 }
 0x562   : > { %v7408_v18 = vpop.xlane.xlu0 %7407  ;;  %15769 = vpow2.f32 %v7511_v23  ;;  %v4217_v54 = vcombine.high %v4183_v42, %v4199_v37  ;;  %v4237_v52 = vcombine.high %v21497_v10, %v19230_v2  ;;  %v4149_v27 = vcombine.high %v4115_v39, %v4131_v30 }
 0x563   : > { %v7464_v32 = vsub.f32 %v19180_v19, %v7408_v18  ;;  %v19312_v41 = vpop.eup %15761  ;;  %15771 = vpow2.f32 %v7517_v35  ;;  %v7429_v19 = vpop.xlane.xlu1 %7428  ;;  %v19346_v18 = vrot.slane %v4304_v16, %v17343_v8  ;;  %v19378_v42 = vrot.slane %v4216_v28, %v17360_v29 }
 0x564   : > { %v7580_v17 = vsel %vm4916_vm2, %v19312_v41, 0.0  ;;  %v19321_v13 = vpop.eup %15763  ;;  %7584 = vadd.xlane.f32.xlu1 %v7583_v56  ;;  %v7471_v5 = vsub.f32 %v19178_v61, %v7429_v19  ;;  %v4148_v56 = vcombine.low %v4115_v39, %v4131_v30 }
 0x565   : > { %v7515_v24 = vmul.f32 1.442695, %v7464_v32  ;;  %7581 = vadd.xlane.f32.xlu0 %v7580_v17  ;;  %v7589_v57 = vsel %vm4916_vm2, %v19321_v13, 0.0 }
 0x567   : > { %v7414_v9 = vpop.xlane.xlu0 %7413  ;;  %15773 = vpow2.f32 %v7515_v24  ;;  %v19332_v43 = vpop.eup %15765 }
 0x568   : > { %v7466_v14 = vsub.f32 %v19188_v25, %v7414_v9  ;;  %15775 = vpow2.f32 %v7521_v40  ;;  %v4236_v25 = vcombine.low %v21497_v10, %v19230_v2  ;;  %v7435_v35 = vpop.xlane.xlu1 %7434  ;;  %v7586_v23 = vsel %vm4916_vm2, %v19332_v43, 0.0  ;;  %v19342_v44 = vpop.eup %15767  ;;  %7590 = vadd.xlane.f32.xlu1 %v7589_v57 }
 0x569   : > { %7587 = vadd.xlane.f32.xlu0 %v7586_v23  ;;  %v7473_v32 = vsub.f32 %v19186_v48, %v7435_v35  ;;  %v7529_v40 = vmul.f32 1.442695, %v7471_v5  ;;  %v7595_v48 = vsel %vm4916_vm2, %v19342_v44, 0.0  ;;  %v21500_v10 = vcombine.high %v18939_v3, %v18960_v53 }
 0x56a   : > { %v7519_v0 = vmul.f32 1.442695, %v7466_v14  ;;  %v19369_v14 = vrot.slane %v4200_v26, %v17360_v29  ;;  %v21502_v3 = vcombine.high %v18951_v20, %v18963_v55  ;;  %v19411_v26 = vrot.slane %v4236_v25, %v17343_v8 }
 0x56b   : > { %v7420_v38 = vpop.xlane.xlu0 %7419  ;;  %v19375_v2 = vrot.slane %v21500_v10, %v17360_v29  ;;  %v7533_v37 = vmul.f32 1.442695, %v7473_v32 }
 0x56c   : > { %15777 = vpow2.f32 %v7519_v0  ;;  %v7468_v61 = vsub.f32 %v19196_v45, %v7420_v38  ;;  %v19355_v47 = vpop.eup %15769  ;;  %v4132_v45 = vcombine.low %v18951_v20, %v18963_v55  ;;  %v7441_v9 = vpop.xlane.xlu1 %7440  ;;  %7596 = vadd.xlane.f32.xlu1 %v7595_v48  ;;  %v19393_v53 = vrot.slane %v21502_v3, %v17360_v29 }
 0x56d   : > { %15779 = vpow2.f32 %v7525_v31  ;;  %v7592_v19 = vsel %vm4916_vm2, %v19355_v47, 0.0  ;;  %v19365_v17 = vpop.eup %15771  ;;  %v19383_v31 = vrot.slane %v4217_v54, %v17360_v29  ;;  %v7475_v0 = vsub.f32 %v19194_v62, %v7441_v9  ;;  %v21506_v9 = vld [vmem:[#allocation54_spill] sm:$0xff] }
 0x56e   : > { %v7523_v24 = vmul.f32 1.442695, %v7468_v61  ;;  %21499 = vst [vmem:[#allocation50_spill] sm:$0xff] %v19365_v17  ;;  %7593 = vadd.xlane.f32.xlu0 %v7592_v19  ;;  %v19387_v5 = vrot.slane %v4132_v45, %v17360_v29  ;;  %v7601_v23 = vsel %vm4916_vm2, %v19365_v17, 0.0  ;;  %v19405_v20 = vrot.slane %v4148_v56, %v17360_v29 }
 0x56f   : > { %v7426_v34 = vpop.xlane.xlu0 %7425  ;;  %v19408_v55 = vrot.slane %v4149_v27, %v17360_v29  ;;  %v7537_v32 = vmul.f32 1.442695, %v7475_v0 }
 0x570   : > { %15781 = vpow2.f32 %v7523_v24  ;;  %v7470_v16 = vsub.f32 %v19202_v51, %v7426_v34  ;;  %v3819_v38 = vpop.permute.xlu1 %3818  ;;  %7602 = vadd.xlane.f32.xlu1 %v7601_v23  ;;  %v21505_v34 = vld [vmem:[#allocation53_spill] sm:$0xff] }
 0x571   : > { %v19380_v6 = vpop.eup %15773  ;;  %15783 = vpow2.f32 %v7529_v40  ;;  %v4320_v30 = vcombine.low %v19224_v21, %v3819_v38  ;;  %v4321_v61 = vcombine.high %v19224_v21, %v3819_v38  ;;  %v19418_v40 = vrot.slane %v4237_v52, %v17343_v8  ;;  %v21512_v38 = vld [vmem:[#allocation64_spill] sm:$0xff] }
 0x572   : > { %21501 = vst [vmem:[#allocation51_spill] sm:$0xff] %v19380_v6  ;;  %v7527_v51 = vmul.f32 1.442695, %v7470_v16  ;;  %v7598_v35 = vsel %vm4916_vm2, %v19380_v6, 0.0  ;;  %v19399_v57 = vpop.eup %15775  ;;  %v21507_v19 = vcombine.low %v21505_v34, %v21506_v9  ;;  %v21510_v0 = vcombine.high %v21505_v34, %v21506_v9 }
 0x573   : > { %v7432_v39 = vpop.xlane.xlu0 %7431  ;;  %21503 = vst [vmem:[#allocation52_spill] sm:$0xff] %v19399_v57  ;;  %7599 = vadd.xlane.f32.xlu0 %v7598_v35  ;;  %v4328_v54 = vrot.slane %v4320_v30, %v17343_v8  ;;  %v4335_v21 = vrot.slane %v4321_v61, %v17343_v8  ;;  %v7607_v25 = vsel %vm4916_vm2, %v19399_v57, 0.0  ;;  %v21532_v57 = vld [vmem:[#allocation49_spill] sm:$0xff] }
 0x574   : > { %15785 = vpow2.f32 %v7527_v51  ;;  %v7472_v62 = vsub.f32 %v19208_v49, %v7432_v39  ;;  %v19428_v48 = vrot.slane %v21507_v19, %v17360_v29  ;;  %7608 = vadd.xlane.f32.xlu1 %v7607_v25  ;;  %v19441_v3 = vrot.slane %v21510_v0, %v17360_v29  ;;  %v21511_v39 = vld [vmem:[#allocation67_spill] sm:$0xff] }
 0x575   : > { %15787 = vpow2.f32 %v7533_v37  ;;  %v4336_v27 = vcombine.low %v19346_v18, %v4328_v54  ;;  %v4337_v52 = vcombine.high %v19346_v18, %v4328_v54  ;;  %v4352_v16 = vcombine.low %v19352_v59, %v4335_v21  ;;  %v21509_v37 = vld [vmem:[#allocation46_spill] sm:$0xff] }
 0x576   : > { %v19413_v28 = vpop.eup %15777  ;;  %v7531_v49 = vmul.f32 1.442695, %v7472_v62  ;;  %v4353_v10 = vcombine.high %v19352_v59, %v4335_v21  ;;  %v21513_v35 = vcombine.low %v21511_v39, %v21512_v38 }
 0x577   : > { %21504 = vst [vmem:[#allocation60_spill] sm:$0xff] %v19413_v28  ;;  %v7438_v24 = vpop.xlane.xlu0 %7437  ;;  %v7604_v45 = vsel %vm4916_vm2, %v19413_v28, 0.0  ;;  %v19430_v56 = vpop.eup %15779  ;;  %v4344_v62 = vrot.slane %v4336_v27, %v17360_v29  ;;  %v4351_v59 = vrot.slane %v4337_v52, %v17360_v29  ;;  %v4360_v30 = vrot.slane %v4352_v16, %v17360_v29 }
 0x578   : > { %21508 = vst [vmem:[#allocation61_spill] sm:$0xff] %v19430_v56  ;;  %15789 = vpow2.f32 %v7531_v49  ;;  %7605 = vadd.xlane.f32.xlu0 %v7604_v45  ;;  %v7474_v51 = vsub.f32 %v21509_v37, %v7438_v24  ;;  %v19447_v23 = vrot.slane %v21513_v35, %v17360_v29  ;;  %v19455_v61 = vrot.slane %v4353_v10, %v17360_v29 }
 0x579   : > { %15791 = vpow2.f32 %v7537_v32  ;;  %v7613_v24 = vsel %vm4916_vm2, %v19430_v56, 0.0  ;;  %v4396_v32 = vcombine.low %v19369_v14, %v4344_v62  ;;  %v14334_v25 = vcombine.high %v19369_v14, %v4344_v62  ;;  %v21522_v62 = vld [vmem:[#allocation68_spill] sm:$0xff] }
 0x57a   : > { %v19449_v18 = vpop.eup %15781  ;;  %v7535_v49 = vmul.f32 1.442695, %v7474_v51  ;;  %v4532_v34 = vcombine.low %v19375_v2, %v4351_v59  ;;  %v14338_v9 = vcombine.high %v19375_v2, %v4351_v59  ;;  %v4668_v19 = vcombine.low %v19378_v42, %v4360_v30  ;;  %7614 = vadd.xlane.f32.xlu1 %v7613_v24  ;;  %v21518_v2 = vld [vmem:[#allocation55_spill] sm:$0xff]  ;;  %v21519_v51 = vld [vmem:[#allocation56_spill] sm:$0xff]  ;;  %v21523_v59 = vld [vmem:[#allocation65_spill] sm:$0xff] }
 0x57b   : > { %21514 = vst [vmem:[#allocation53_spill] sm:$0xff] %v19449_v18  ;;  %v7444_v54 = vpop.xlane.xlu0 %7443  ;;  %v7610_v21 = vsel %vm4916_vm2, %v19449_v18, 0.0  ;;  %v19461_v45 = vpop.eup %15783  ;;  %v14342_v27 = vcombine.high %v19378_v42, %v4360_v30  ;;  %v4804_v52 = vcombine.low %v19383_v31, %v19455_v61  ;;  %v14346_v16 = vcombine.high %v19383_v31, %v19455_v61 }
 0x57c   : > { %21515 = vst [vmem:[#allocation54_spill] sm:$0xff] %v19461_v45  ;;  %7611 = vadd.xlane.f32.xlu0 %v7610_v21  ;;  %v21517_v14 = vcombine.high %v21511_v39, %v21512_v38  ;;  %v21520_v0 = vcombine.low %v21518_v2, %v21519_v51  ;;  %v21521_v35 = vcombine.high %v21518_v2, %v21519_v51  ;;  %v7619_v21 = vsel %vm4916_vm2, %v19461_v45, 0.0  ;;  %v21527_v2 = vld [vmem:[#allocation57_spill] sm:$0xff]  ;;  %v21528_v51 = vld [vmem:[#allocation58_spill] sm:$0xff]  ;;  %v21531_v45 = vld [vmem:[#allocation48_spill] sm:$0xff] }
 0x57d   : > { %v21524_v30 = vcombine.low %v21522_v62, %v21523_v59  ;;  %v21526_v24 = vcombine.high %v21522_v62, %v21523_v59  ;;  %15793 = vpow2.f32 %v7535_v49  ;;  %v7476_v18 = vsub.f32 %v21531_v45, %v7444_v54  ;;  %v21537_v54 = vld [vmem:[#allocation70_spill] sm:$0xff]  ;;  %v21538_v45 = vld [vmem:[#allocation59_spill] sm:$0xff] }
 0x57e   : > { %v19473_v10 = vpop.eup %15785  ;;  %v19479_v37 = vrot.slane %v21517_v14, %v17360_v29  ;;  %v19485_v42 = vrot.slane %v21520_v0, %v17360_v29  ;;  %v19491_v31 = vrot.slane %v21521_v35, %v17360_v29  ;;  %v21529_v0 = vcombine.low %v21527_v2, %v21528_v51  ;;  %7620 = vadd.xlane.f32.xlu1 %v7619_v21 }
 0x57f   : > { %21516 = vst [vmem:[#allocation46_spill] sm:$0xff] %v19473_v10  ;;  %v19497_v61 = vrot.slane %v21524_v30, %v17360_v29  ;;  %v19499_v39 = vpop.eup %15787  ;;  %v3817_v38 = vpop.permute.xlu0 %3816  ;;  %v19507_v14 = vrot.slane %v21526_v24, %v17360_v29  ;;  %v21530_v30 = vcombine.high %v21527_v2, %v21528_v51  ;;  %v7616_v59 = vsel %vm4916_vm2, %v19473_v10, 0.0  ;;  %v21533_v24 = vld [vmem:[#allocation69_spill] sm:$0xff] }
 0x580   : > { %21525 = vst [vmem:[#allocation67_spill] sm:$0xff] %v19499_v39  ;;  %v19513_v35 = vrot.slane %v21529_v0, %v17360_v29  ;;  %v4252_v28 = vcombine.low %v21532_v57, %v3817_v38  ;;  %v4253_v62 = vcombine.high %v21532_v57, %v3817_v38  ;;  %v21534_v0 = vld [vmem:[#allocation66_spill] sm:$0xff]  ;;  %v21539_v57 = vcombine.low %v21537_v54, %v21538_v45 }
 0x581   : > { %v19519_v56 = vrot.slane %v21530_v30, %v17360_v29  ;;  %v21535_v17 = vcombine.low %v21533_v24, %v21534_v0  ;;  %v21536_v49 = vcombine.high %v21533_v24, %v21534_v0  ;;  %v7539_v21 = vmul.f32 1.442695, %v7476_v18  ;;  %7617 = vadd.xlane.f32.xlu0 %v7616_v59 }
 0x582   : > { %v19542_v38 = vrot.slane %v21539_v57, %v17360_v29  ;;  %v19544_v51 = vpop.eup %15789  ;;  %v4260_v30 = vrot.slane %v4252_v28, %v17343_v8  ;;  %v21541_v24 = vcombine.high %v21537_v54, %v21538_v45  ;;  %v4471_v10 = vrot.slane %v14334_v25, %v17343_v8 }
 0x583   : > { %v19530_v6 = vrot.slane %v21535_v17, %v17360_v29  ;;  %v19536_v2 = vrot.slane %v21536_v49, %v17360_v29  ;;  %21540 = vst [vmem:[#allocation64_spill] sm:$0xff] %v19544_v51  ;;  %v4267_v17 = vrot.slane %v4253_v62, %v17343_v8  ;;  %v4403_v49 = vrot.slane %v4396_v32, %v17343_v8  ;;  %v19560_v28 = vpop.eup %15791 }
 0x584   : > { %v19552_v0 = vrot.slane %v21541_v24, %v17360_v29  ;;  %v7622_v57 = vsel %vm4916_vm2, %v19544_v51, 0.0  ;;  %v7625_v18 = vsel %vm4916_vm2, %v19499_v39, 0.0  ;;  %21542 = vst [vmem:[#allocation55_spill] sm:$0xff] %v19560_v28  ;;  %15795 = vpow2.f32 %v7539_v21 }
 0x585   : > { %v4268_v62 = vcombine.low %v19411_v26, %v4260_v30  ;;  %v4269_v59 = vcombine.high %v19411_v26, %v4260_v30  ;;  %v4284_v54 = vcombine.low %v19418_v40, %v4267_v17  ;;  %v4539_v45 = vrot.slane %v4532_v34, %v17343_v8  ;;  %7626 = vadd.xlane.f32.xlu1 %v7625_v18 }
 0x586   : > { %v19567_v32 = vrot.slane %v14338_v9, %v17343_v8  ;;  %v19570_v25 = vrot.slane %v4668_v19, %v17343_v8  ;;  %v4285_v24 = vcombine.high %v19418_v40, %v4267_v17  ;;  %v19574_v51 = vrot.slane %v14342_v27, %v17343_v8  ;;  %7623 = vadd.xlane.f32.xlu0 %v7622_v57 }
 0x587   : > { %v4276_v21 = vrot.slane %v4268_v62, %v17360_v29  ;;  %v4283_v26 = vrot.slane %v4269_v59, %v17360_v29  ;;  %v4292_v30 = vrot.slane %v4284_v54, %v17360_v29  ;;  %v19580_v34 = vrot.slane %v4804_v52, %v17343_v8  ;;  %v19596_v54 = vpop.eup %15793 }
 0x588   : > { %v19583_v9 = vrot.slane %v14346_v16, %v17343_v8  ;;  %v4299_v19 = vrot.slane %v4285_v24, %v17360_v29  ;;  %v7631_v40 = vsel %vm4916_vm2, %v19560_v28, 0.0 }
 0x589   : > { %v4388_v27 = vcombine.low %v19387_v5, %v4276_v21  ;;  %v14333_v17 = vcombine.high %v19387_v5, %v4276_v21  ;;  %v4524_v18 = vcombine.low %v19393_v53, %v4283_v26  ;;  %v14337_v62 = vcombine.high %v19393_v53, %v4283_v26  ;;  %7632 = vadd.xlane.f32.xlu1 %v7631_v40 }
 0x58a   : > { %v4660_v57 = vcombine.low %v19405_v20, %v4292_v30  ;;  %v14341_v52 = vcombine.high %v19405_v20, %v4292_v30  ;;  %v4796_v16 = vcombine.low %v19408_v55, %v4299_v19  ;;  %v14345_v59 = vcombine.high %v19408_v55, %v4299_v19 }
 0x58b   : > { %v4395_v24 = vrot.slane %v4388_v27, %v17343_v8  ;;  %v4463_v28 = vrot.slane %v14333_v17, %v17343_v8  ;;  %v4531_v5 = vrot.slane %v4524_v18, %v17343_v8  ;;  %v4599_v21 = vrot.slane %v14337_v62, %v17343_v8 }
 0x58c   : > { %v4667_v53 = vrot.slane %v4660_v57, %v17343_v8  ;;  %v4735_v26 = vrot.slane %v14341_v52, %v17343_v8  ;;  %v19605_v20 = vrot.slane %v4796_v16, %v17343_v8  ;;  %v19608_v55 = vrot.slane %v14345_v59, %v17343_v8 }
 0x58d   : > { %v7628_v30 = vsel %vm4916_vm2, %v19596_v54, 0.0  ;;  %v4420_v19 = vcombine.low %v4395_v24, %v4403_v49  ;;  %v4421_v40 = vcombine.high %v4395_v24, %v4403_v49  ;;  %v4488_v27 = vcombine.low %v4463_v28, %v4471_v10 }
 0x58e   : > { %7629 = vadd.xlane.f32.xlu0 %v7628_v30  ;;  %v4489_v17 = vcombine.high %v4463_v28, %v4471_v10  ;;  %v4556_v18 = vcombine.low %v4531_v5, %v4539_v45  ;;  %v4557_v62 = vcombine.high %v4531_v5, %v4539_v45  ;;  %v4624_v57 = vcombine.low %v4599_v21, %v19567_v32  ;;  %v19613_v39 = vpop.eup %15795 }
 0x58f   : > { %v4428_v52 = vrot.slane %v4420_v19, %v17360_v29  ;;  %v19617_v16 = vrot.slane %v4421_v40, %v17360_v29  ;;  %v19620_v59 = vrot.slane %v4488_v27, %v17360_v29  ;;  %v4625_v8 = vcombine.high %v4599_v21, %v19567_v32 }
 0x590   : > { %v7634_v49 = vsel %vm4916_vm2, %v19613_v39, 0.0  ;;  %v19626_v10 = vrot.slane %v4489_v17, %v17360_v29  ;;  %v19629_v28 = vrot.slane %v4556_v18, %v17360_v29  ;;  %v19632_v45 = vrot.slane %v4557_v62, %v17360_v29 }
 0x591   : > { %v4436_v24 = vcombine.low %v19428_v48, %v4428_v52  ;;  %v4437_v5 = vcombine.high %v19428_v48, %v4428_v52  ;;  %v4438_v30 = vcombine.low %v19441_v3, %v19617_v16  ;;  %v21543_v62 = vmov 0.0  }
 0x592   : > { %7635 = vadd.xlane.f32.xlu0 %v7634_v49  ;;  %v19659_v49 = vrot.slane %v4624_v57, %v17360_v29  ;;  %v4693_v17 = vcombine.high %v4667_v53, %v19570_v25  ;;  %v4760_v27 = vcombine.low %v4735_v26, %v19574_v51  ;;  %v4761_v18 = vcombine.high %v4735_v26, %v19574_v51 }
 0x593   : > { %15058 = vmatpush3.msra.mxu0 %v4436_v24  ;;  %15063 = vmatpush3.msra.mxu1 %v4437_v5  ;;  %v19662_v24 = vrot.slane %v4625_v8, %v17360_v29  ;;  %v4692_v5 = vcombine.low %v4667_v53, %v19570_v25  ;;  %v4828_v26 = vcombine.low %v19605_v20, %v19580_v34 }
 0x594   : > { %15067 = vmatprep.subr.mxu0 %v21543_v62  ;;  %15072 = vmatprep.subr.mxu1 %v21543_v62  ;;  %v19680_v25 = vrot.slane %v4693_v17, %v17360_v29  ;;  %v19683_v51 = vrot.slane %v4760_v27, %v17360_v29  ;;  %v19686_v53 = vrot.slane %v4761_v18, %v17360_v29  ;;  %v21545_v17 = vld [vmem:[#allocation63_spill] sm:$0xff] }
 0x595   : > { %v19677_v40 = vrot.slane %v4692_v5, %v17360_v29  ;;  %v4829_v57 = vcombine.high %v19605_v20, %v19580_v34  ;;  %v4896_v8 = vcombine.low %v19608_v55, %v19583_v9  ;;  %v4897_v5 = vcombine.high %v19608_v55, %v19583_v9  ;;  %v21544_v20 = vld [vmem:[#allocation62_spill] sm:$0xff] }
 0x596   : > { %v19713_v27 = vrot.slane %v4828_v26, %v17360_v29  ;;  %v21546_v48 = vcombine.low %v21544_v20, %v21545_v17  ;;  %v21547_v26 = vcombine.high %v21544_v20, %v21545_v17 }
 0x597   : > { %v19716_v18 = vrot.slane %v4829_v57, %v17360_v29  ;;  %v19719_v52 = vrot.slane %v4896_v8, %v17360_v29  ;;  %v19722_v34 = vrot.slane %v4897_v5, %v17360_v29 }
 0x598   : > { %v19728_v9 = vrot.slane %v21546_v48, %v17360_v29  ;;  %v19734_v55 = vrot.slane %v21547_v26, %v17360_v29 }
 0x59a   : > { %v4914_v20 = vcombine.low %v19734_v55, %v19722_v34  ;;  %v4915_v26 = vcombine.high %v19734_v55, %v19722_v34 }
 0x5ce   : > { %v7555_v57 = vpop.xlane.xlu0 %7554 }
 0x5d0   : > { %v7543_v8 = vpop.xlane.xlu1 %7542 }
 0x5d1   : > { %15797 = vrcp.f32 %v7543_v8 }
 0x5d4   : > { %v7546_v21 = vpop.xlane.xlu0 %7545 }
 0x5d5   : > { %15799 = vrcp.f32 %v7546_v21 }
 0x5d8   : > { %v7549_v5 = vpop.xlane.xlu1 %7548 }
 0x5d9   : > { %15801 = vrcp.f32 %v7549_v5 }
 0x5da   : > { %15803 = vrcp.f32 %v7555_v57 }
 0x5db   : > { %v15798_v19 = vpop.eup %15797 }
 0x5dc   : > { %v7638_v48 = vmul.f32 %v15798_v19, %v19240_v7  ;;  %v7552_v32 = vpop.xlane.xlu0 %7551 }
 0x5dd   : > { %15805 = vrcp.f32 %v7552_v32  ;;  %v21548_v32 = vcombine.high %v19441_v3, %v19617_v16 }
 0x5de   : > { %15060 = vmatmul.mubr.msk.f32.vlgmr.msra.gmra.mrb[52].mxu0 %vm4916_vm2, %v7638_v48 }
 0x5df   : > { %v15800_v17 = vpop.eup %15799  ;;  %15068 = vmatpush3.msra.mxu0 %v4438_v30  ;;  %15069 = vmatprep.mubr.msk.f32.mxu0 %vm16478_vm1, %v21543_v62 }
 0x5e0   : > { %v7640_v21 = vmul.f32 %v15800_v17, %v19248_v36  ;;  %v7561_v8 = vpop.xlane.xlu0 %7560  ;;  %15077 = vmatprep.subr.mxu0 %v21543_v62  ;;  %v21549_v17 = vcombine.low %v19447_v23, %v19620_v59 }
 0x5e1   : > { %v7558_v5 = vpop.xlane.xlu1 %7557  ;;  %15807 = vrcp.f32 %v7561_v8 }
 0x5e2   : > { %15809 = vrcp.f32 %v7558_v5  ;;  %15065 = vmatmul.mubr.msk.f32.vlgmr.msra.gmra.mrb[36].mxu1 %vm4916_vm2, %v7640_v21  ;;  %v21550_v5 = vcombine.high %v19447_v23, %v19620_v59 }
 0x5e3   : > { %v15802_v7 = vpop.eup %15801  ;;  %15073 = vmatpush3.msra.mxu1 %v21548_v32  ;;  %15074 = vmatprep.mubr.msk.f32.mxu1 %vm16478_vm1, %v21543_v62 }
 0x5e4   : > { %v7642_v30 = vmul.f32 %v15802_v7, %v19254_v12  ;;  %15082 = vmatprep.subr.mxu1 %v21543_v62  ;;  %v15804_v57 = vpop.eup %15803 }
 0x5e5   : > { %v7564_v19 = vpop.xlane.xlu0 %7563  ;;  %v7567_v36 = vpop.xlane.xlu1 %7566  ;;  %v7646_v3 = vmul.f32 %v15804_v57, %v19238_v60  ;;  %v21551_v60 = vcombine.low %v19479_v37, %v19626_v10 }
 0x5e6   : > { %15811 = vrcp.f32 %v7564_v19  ;;  %15070 = vmatmul.mubr.msk.f32.vlgmr.msra.gmra.mrb[54].mxu0 %vm4916_vm2, %v7642_v30 }
 0x5e7   : > { %15813 = vrcp.f32 %v7567_v36  ;;  %v15806_v48 = vpop.eup %15805  ;;  %15078 = vmatpush3.msra.mxu0 %v21549_v17  ;;  %15079 = vmatprep.mubr.msk.f32.mxu0 %vm16478_vm1, %v21543_v62 }
 0x5e8   : > { %v7644_v12 = vmul.f32 %v15806_v48, %v19260_v15  ;;  %15087 = vmatprep.subr.mxu0 %v21543_v62 }
 0x5e9   : > { %v7573_v21 = vpop.xlane.xlu1 %7572 }
 0x5ea   : > { %v7570_v16 = vpop.xlane.xlu0 %7569  ;;  %15075 = vmatmul.mubr.msk.f32.vlgmr.msra.gmra.mrb[38].mxu1 %vm4916_vm2, %v7644_v12  ;;  %15080 = vmatmul.mubr.msk.f32.vlgmr.msra.gmra.mrb[56].mxu0 %vm4916_vm2, %v7646_v3  ;;  %v21555_v3 = vcombine.low %v19491_v31, %v19632_v45 }
 0x5eb   : > { %15815 = vrcp.f32 %v7570_v16  ;;  %v15808_v8 = vpop.eup %15807  ;;  %15083 = vmatpush3.msra.mxu1 %v21550_v5  ;;  %15088 = vmatpush3.msra.mxu0 %v21551_v60 }
 0x5ec   : > { %15817 = vrcp.f32 %v7573_v21  ;;  %v15810_v15 = vpop.eup %15809  ;;  %v7650_v7 = vmul.f32 %v15808_v8, %v19265_v4  ;;  %15084 = vmatprep.mubr.msk.f32.mxu1 %vm16478_vm1, %v21543_v62  ;;  %15089 = vmatprep.mubr.msk.f32.mxu0 %vm16478_vm1, %v21543_v62  ;;  %v21552_v4 = vcombine.low %v19485_v42, %v19629_v28  ;;  %v21557_v8 = vcombine.low %v19497_v61, %v19659_v49 }
 0x5ed   : > { %v7579_v30 = vpop.xlane.xlu1 %7578  ;;  %v7648_v19 = vmul.f32 %v15810_v15, %v19268_v33  ;;  %15092 = vmatprep.subr.mxu1 %v21543_v62  ;;  %15097 = vmatprep.subr.mxu0 %v21543_v62  ;;  %v21553_v33 = vcombine.high %v19479_v37, %v19626_v10 }
 0x5ee   : > { %v7576_v32 = vpop.xlane.xlu0 %7575  ;;  %15090 = vmatmul.mubr.msk.f32.vlgmr.msra.gmra.mrb[58].mxu0 %vm4916_vm2, %v7650_v7  ;;  %v21559_v7 = vcombine.low %v19507_v14, %v19662_v24 }
 0x5ef   : > { %15819 = vrcp.f32 %v7576_v32  ;;  %15085 = vmatmul.mubr.msk.f32.vlgmr.msra.gmra.mrb[40].mxu1 %vm4916_vm2, %v7648_v19  ;;  %15098 = vmatpush3.msra.mxu0 %v21552_v4 }
 0x5f0   : > { %15821 = vrcp.f32 %v7579_v30  ;;  %v15812_v23 = vpop.eup %15811  ;;  %15093 = vmatpush3.msra.mxu1 %v21553_v33  ;;  %15094 = vmatprep.mubr.msk.f32.mxu1 %vm16478_vm1, %v21543_v62  ;;  %v21563_v33 = vcombine.low %v19519_v56, %v19680_v25 }
 0x5f1   : > { %v15814_v59 = vpop.eup %15813  ;;  %v7652_v36 = vmul.f32 %v15812_v23, %v19278_v63  ;;  %v7585_v48 = vpop.xlane.xlu1 %7584  ;;  %15099 = vmatprep.mubr.msk.f32.mxu0 %vm16478_vm1, %v21543_v62  ;;  %15102 = vmatprep.subr.mxu1 %v21543_v62  ;;  %v21561_v23 = vcombine.low %v19513_v35, %v19677_v40 }
 0x5f2   : > { %v7582_v57 = vpop.xlane.xlu0 %7581  ;;  %v7654_v17 = vmul.f32 %v15814_v59, %v19275_v1  ;;  %15107 = vmatprep.subr.mxu0 %v21543_v62  ;;  %v21554_v1 = vcombine.high %v19485_v42, %v19629_v28  ;;  %v21556_v28 = vcombine.high %v19491_v31, %v19632_v45  ;;  %v21558_v45 = vcombine.high %v19497_v61, %v19659_v49 }
 0x5f3   : > { %15823 = vrcp.f32 %v7582_v57  ;;  %15095 = vmatmul.mubr.msk.f32.vlgmr.msra.gmra.mrb[42].mxu1 %vm4916_vm2, %v7652_v36  ;;  %v21560_v49 = vcombine.high %v19507_v14, %v19662_v24  ;;  %v21562_v24 = vcombine.high %v19513_v35, %v19677_v40 }
 0x5f4   : > { %15825 = vrcp.f32 %v7585_v48  ;;  %15100 = vmatmul.mubr.msk.f32.vlgmr.msra.gmra.mrb[60].mxu0 %vm4916_vm2, %v7654_v17  ;;  %15103 = vmatpush3.msra.mxu1 %v21554_v1 }
 0x5f5   : > { %v15816_v63 = vpop.eup %15815  ;;  %15108 = vmatpush3.msra.mxu0 %v21555_v3  ;;  %v7591_v16 = vpop.xlane.xlu1 %7590  ;;  %15104 = vmatprep.mubr.msk.f32.mxu1 %vm16478_vm1, %v21543_v62 }
 0x5f6   : > { %v15818_v37 = vpop.eup %15817  ;;  %v7656_v10 = vmul.f32 %v15816_v63, %v19288_v58  ;;  %v7588_v12 = vpop.xlane.xlu0 %7587  ;;  %15109 = vmatprep.mubr.msk.f32.mxu0 %vm16478_vm1, %v21543_v62  ;;  %15112 = vmatprep.subr.mxu1 %v21543_v62  ;;  %v21565_v63 = vcombine.high %v19519_v56, %v19680_v25 }
 0x5f7   : > { %v7658_v21 = vmul.f32 %v15818_v37, %v19285_v50  ;;  %15827 = vrcp.f32 %v7588_v12  ;;  %15117 = vmatprep.subr.mxu0 %v21543_v62  ;;  %v21566_v37 = vcombine.low %v19530_v6, %v19683_v51 }
 0x5f8   : > { %15829 = vrcp.f32 %v7591_v16  ;;  %15105 = vmatmul.mubr.msk.f32.vlgmr.msra.gmra.mrb[44].mxu1 %vm4916_vm2, %v7656_v10  ;;  %v21567_v10 = vld [vmem:[#allocation50_spill] sm:$0xff]  ;;  %v21568_v16 = vld [vmem:[#allocation60_spill] sm:$0xff] }
 0x5f9   : > { %v15820_v58 = vpop.eup %15819  ;;  %15110 = vmatmul.mubr.msk.f32.vlgmr.msra.gmra.mrb[62].mxu0 %vm4916_vm2, %v7658_v21  ;;  %15113 = vmatpush3.msra.mxu1 %v21556_v28  ;;  %v7597_v60 = vpop.xlane.xlu1 %7596 }
 0x5fa   : > { %v15822_v42 = vpop.eup %15821  ;;  %v7660_v50 = vmul.f32 %v15820_v58, %v19298_v11  ;;  %15118 = vmatpush3.msra.mxu0 %v21557_v8  ;;  %15114 = vmatprep.mubr.msk.f32.mxu1 %vm16478_vm1, %v21543_v62  ;;  %v21569_v58 = vcombine.high %v19530_v6, %v19683_v51 }
 0x5fb   : > { %v7594_v5 = vpop.xlane.xlu0 %7593  ;;  %v7662_v15 = vmul.f32 %v15822_v42, %v19295_v46  ;;  %15119 = vmatprep.mubr.msk.f32.mxu0 %vm16478_vm1, %v21543_v62  ;;  %15122 = vmatprep.subr.mxu1 %v21543_v62  ;;  %v21570_v42 = vcombine.low %v19536_v2, %v19686_v53 }
 0x5fc   : > { %15831 = vrcp.f32 %v7594_v5  ;;  %15127 = vmatprep.subr.mxu0 %v21543_v62  ;;  %15115 = vmatmul.mubr.msk.f32.vlgmr.msra.gmra.mrb[46].mxu1 %vm4916_vm2, %v7660_v50  ;;  %v21571_v50 = vld [vmem:[#allocation52_spill] sm:$0xff] }
 0x5fd   : > { %15833 = vrcp.f32 %v7597_v60  ;;  %v15824_v11 = vpop.eup %15823  ;;  %15120 = vmatmul.mubr.msk.f32.vlgmr.msra.gmra.mrb[64].mxu0 %vm4916_vm2, %v7662_v15  ;;  %15123 = vmatpush3.msra.mxu1 %v21558_v45  ;;  %v7603_v30 = vpop.xlane.xlu1 %7602  ;;  %v21572_v60 = vld [vmem:[#allocation53_spill] sm:$0xff] }
 0x5fe   : > { %v15826_v31 = vpop.eup %15825  ;;  %v7664_v46 = vmul.f32 %v15824_v11, %v19312_v41  ;;  %15128 = vmatpush3.msra.mxu0 %v21559_v7  ;;  %15124 = vmatprep.mubr.msk.f32.mxu1 %vm16478_vm1, %v21543_v62  ;;  %v21573_v11 = vcombine.high %v19536_v2, %v19686_v53  ;;  %v21576_v53 = vcombine.high %v19542_v38, %v19713_v27 }
 0x5ff   : > { %v7666_v19 = vmul.f32 %v15826_v31, %v19305_v22  ;;  %15129 = vmatprep.mubr.msk.f32.mxu0 %vm16478_vm1, %v21543_v62  ;;  %15132 = vmatprep.subr.mxu1 %v21543_v62  ;;  %v21574_v31 = vcombine.low %v19542_v38, %v19713_v27  ;;  %v21580_v27 = vcombine.low %v19728_v9, %v19719_v52 }
 0x600   : > { %v7600_v32 = vpop.xlane.xlu0 %7599  ;;  %15137 = vmatprep.subr.mxu0 %v21543_v62  ;;  %15125 = vmatmul.mubr.msk.f32.vlgmr.msra.gmra.mrb[48].mxu1 %vm4916_vm2, %v7664_v46  ;;  %v21575_v46 = vld [vmem:[#allocation61_spill] sm:$0xff] }
 0x601   : > { %15835 = vrcp.f32 %v7600_v32  ;;  %v15828_v41 = vpop.eup %15827  ;;  %15130 = vmatmul.mubr.msk.f32.vlgmr.msra.gmra.mrb[66].mxu0 %vm4916_vm2, %v7666_v19  ;;  %15133 = vmatpush3.msra.mxu1 %v21560_v49  ;;  %v7609_v59 = vpop.xlane.xlu1 %7608  ;;  %v21577_v32 = vcombine.low %v19552_v0, %v19716_v18  ;;  %v21578_v19 = vld [vmem:[#allocation54_spill] sm:$0xff] }
 0x602   : > { %15837 = vrcp.f32 %v7603_v30  ;;  %v15830_v61 = vpop.eup %15829  ;;  %v7668_v22 = vmul.f32 %v15828_v41, %v19332_v43  ;;  %15138 = vmatpush3.msra.mxu0 %v21561_v23  ;;  %15134 = vmatprep.mubr.msk.f32.mxu1 %vm16478_vm1, %v21543_v62 }
 0x603   : > { %v7670_v36 = vmul.f32 %v15830_v61, %v19321_v13  ;;  %15139 = vmatprep.mubr.msk.f32.mxu0 %vm16478_vm1, %v21543_v62  ;;  %15142 = vmatprep.subr.mxu1 %v21543_v62 }
 0x604   : > { %15147 = vmatprep.subr.mxu0 %v21543_v62  ;;  %15135 = vmatmul.mubr.msk.f32.vlgmr.msra.gmra.mrb[50].mxu1 %vm4916_vm2, %v7668_v22  ;;  %v21579_v22 = vld [vmem:[#allocation46_spill] sm:$0xff] }
 0x605   : > { %v7606_v4 = vpop.xlane.xlu0 %7605  ;;  %15140 = vmatmul.mubr.msk.f32.vlgmr.msra.gmra.mrb[68].mxu0 %vm4916_vm2, %v7670_v36  ;;  %15143 = vmatpush3.msra.mxu1 %v21562_v24 }
 0x606   : > { %15839 = vrcp.f32 %v7606_v4  ;;  %v15832_v43 = vpop.eup %15831  ;;  %15148 = vmatpush3.msra.mxu0 %v21563_v33  ;;  %15144 = vmatprep.mubr.msk.f32.mxu1 %vm16478_vm1, %v21543_v62  ;;  %v21581_v4 = vld [vmem:[#allocation67_spill] sm:$0xff]  ;;  %v21585_v33 = vcombine.high %v19728_v9, %v19719_v52 }
 0x607   : > { %15841 = vrcp.f32 %v7609_v59  ;;  %v15834_v14 = vpop.eup %15833  ;;  %v7672_v13 = vmul.f32 %v15832_v43, %v19355_v47  ;;  %v7615_v17 = vpop.xlane.xlu1 %7614  ;;  %15149 = vmatprep.mubr.msk.f32.mxu0 %vm16478_vm1, %v21543_v62  ;;  %15152 = vmatprep.subr.mxu1 %v21543_v62  ;;  %v21582_v43 = vcombine.high %v19552_v0, %v19716_v18  ;;  %v21584_v0 = vld [vmem:[#allocation55_spill] sm:$0xff] }
 0x608   : > { %v7674_v48 = vmul.f32 %v15834_v14, %v19342_v44  ;;  %15157 = vmatprep.subr.mxu0 %v21543_v62  ;;  %v21564_v44 = vld [vmem:[#allocation51_spill] sm:$0xff]  ;;  %v21583_v14 = vld [vmem:[#allocation64_spill] sm:$0xff] }
 0x609   : > { %v7612_v57 = vpop.xlane.xlu0 %7611  ;;  %15145 = vmatmul.mubr.msk.f32.vlgmr.msra.gmra.mrb[52].mxu1 %vm4916_vm2, %v7672_v13 }
 0x60a   : > { %15843 = vrcp.f32 %v7612_v57  ;;  %15150 = vmatmul.mubr.msk.f32.vlgmr.msra.gmra.mrb[70].mxu0 %vm4916_vm2, %v7674_v48  ;;  %15153 = vmatpush3.msra.mxu1 %v21565_v63 }
 0x60b   : > { %15845 = vrcp.f32 %v7615_v17  ;;  %v15836_v47 = vpop.eup %15835  ;;  %15158 = vmatpush3.msra.mxu0 %v21566_v37  ;;  %v7621_v3 = vpop.xlane.xlu1 %7620  ;;  %15154 = vmatprep.mubr.msk.f32.mxu1 %vm16478_vm1, %v21543_v62 }
 0x60c   : > { %v15838_v35 = vpop.eup %15837  ;;  %v7676_v40 = vmul.f32 %v15836_v47, %v21564_v44  ;;  %15159 = vmatprep.mubr.msk.f32.mxu0 %vm16478_vm1, %v21543_v62  ;;  %15847 = vrcp.f32 %v7621_v3  ;;  %15162 = vmatprep.subr.mxu1 %v21543_v62  ;;  %v21586_v3 = vld [vmem:[#allocation47_spill] sm:$0xff] }
 0x60d   : > { %v7678_v1 = vmul.f32 %v15838_v35, %v21567_v10  ;;  %15167 = vmatprep.subr.mxu0 %v21543_v62 }
 0x60e   : > { %v7618_v12 = vpop.xlane.xlu0 %7617  ;;  %15155 = vmatmul.mubr.msk.f32.vlgmr.msra.gmra.mrb[54].mxu1 %vm4916_vm2, %v7676_v40 }
 0x60f   : > { %15849 = vrcp.f32 %v7618_v12  ;;  %15160 = vmatmul.mubr.msk.f32.vlgmr.msra.gmra.mrb[72].mxu0 %vm4916_vm2, %v7678_v1  ;;  %15163 = vmatpush3.msra.mxu1 %v21569_v58 }
 0x610   : > { %v15840_v56 = vpop.eup %15839  ;;  %15168 = vmatpush3.msra.mxu0 %v21570_v42  ;;  %15164 = vmatprep.mubr.msk.f32.mxu1 %vm16478_vm1, %v21543_v62 }
 0x611   : > { %v15842_v25 = vpop.eup %15841  ;;  %v7680_v21 = vmul.f32 %v15840_v56, %v21568_v16  ;;  %15169 = vmatprep.mubr.msk.f32.mxu0 %vm16478_vm1, %v21543_v62  ;;  %15172 = vmatprep.subr.mxu1 %v21543_v62 }
 0x612   : > { %v7682_v28 = vmul.f32 %v15842_v25, %v21571_v50  ;;  %v7627_v8 = vpop.xlane.xlu1 %7626  ;;  %15177 = vmatprep.subr.mxu0 %v21543_v62 }
 0x613   : > { %v7624_v5 = vpop.xlane.xlu0 %7623  ;;  %15851 = vrcp.f32 %v7627_v8  ;;  %15165 = vmatmul.mubr.msk.f32.vlgmr.msra.gmra.mrb[56].mxu1 %vm4916_vm2, %v7680_v21 }
 0x614   : > { %v15844_v6 = vpop.eup %15843  ;;  %15853 = vrcp.f32 %v7624_v5  ;;  %15170 = vmatmul.mubr.msk.f32.vlgmr.msra.gmra.mrb[74].mxu0 %vm4916_vm2, %v7682_v28  ;;  %15173 = vmatpush3.msra.mxu1 %v21573_v11 }
 0x615   : > { %v15846_v51 = vpop.eup %15845  ;;  %v7684_v15 = vmul.f32 %v15844_v6, %v21572_v60  ;;  %15178 = vmatpush3.msra.mxu0 %v21574_v31  ;;  %15174 = vmatprep.mubr.msk.f32.mxu1 %vm16478_vm1, %v21543_v62 }
 0x616   : > { %v7686_v45 = vmul.f32 %v15846_v51, %v21575_v46  ;;  %v7633_v7 = vpop.xlane.xlu1 %7632  ;;  %15179 = vmatprep.mubr.msk.f32.mxu0 %vm16478_vm1, %v21543_v62  ;;  %15182 = vmatprep.subr.mxu1 %v21543_v62  ;;  %v15848_v2 = vpop.eup %15847 }
 0x617   : > { %15855 = vrcp.f32 %v7633_v7  ;;  %15187 = vmatprep.subr.mxu0 %v21543_v62  ;;  %15175 = vmatmul.mubr.msk.f32.vlgmr.msra.gmra.mrb[58].mxu1 %vm4916_vm2, %v7684_v15  ;;  %v7690_v41 = vmul.f32 %v15848_v2, %v21578_v19 }
 0x618   : > { %15180 = vmatmul.mubr.msk.f32.vlgmr.msra.gmra.mrb[76].mxu0 %vm4916_vm2, %v7686_v45  ;;  %15183 = vmatpush3.msra.mxu1 %v21576_v53 }
 0x619   : > { %15188 = vmatpush3.msra.mxu0 %v21577_v32  ;;  %v15850_v30 = vpop.eup %15849  ;;  %15184 = vmatprep.mubr.msk.f32.mxu1 %vm16478_vm1, %v21543_v62 }
 0x61a   : > { %15189 = vmatprep.mubr.msk.f32.mxu0 %vm16478_vm1, %v21543_v62  ;;  %v7688_v49 = vmul.f32 %v15850_v30, %v21579_v22  ;;  %15192 = vmatprep.subr.mxu1 %v21543_v62 }
 0x61b   : > { %v7630_v61 = vpop.xlane.xlu0 %7629  ;;  %15197 = vmatprep.subr.mxu0 %v21543_v62 }
 0x61c   : > { %15857 = vrcp.f32 %v7630_v61  ;;  %15190 = vmatmul.mubr.msk.f32.vlgmr.msra.gmra.mrb[78].mxu0 %vm4916_vm2, %v7690_v41  ;;  %15185 = vmatmul.mubr.msk.f32.vlgmr.msra.gmra.mrb[60].mxu1 %vm4916_vm2, %v7688_v49 }
 0x61d   : > { %v15852_v38 = vpop.eup %15851  ;;  %15198 = vmatpush3.msra.mxu0 %v21580_v27  ;;  %15193 = vmatpush3.msra.mxu1 %v21582_v43 }
 0x61e   : > { %v15854_v23 = vpop.eup %15853  ;;  %v7694_v59 = vmul.f32 %v15852_v38, %v21581_v4  ;;  %15194 = vmatprep.mubr.msk.f32.mxu1 %vm16478_vm1, %v21543_v62  ;;  %15199 = vmatprep.mubr.msk.f32.mxu0 %vm16478_vm1, %v21543_v62 }
 0x61f   : > { %v7636_v36 = vpop.xlane.xlu0 %7635  ;;  %v7692_v13 = vmul.f32 %v15854_v23, %v21583_v14  ;;  %15202 = vmatprep.subr.mxu1 %v21543_v62  ;;  %15207 = vmatprep.subr.mxu0 %v21543_v62 }
 0x620   : > { %15859 = vrcp.f32 %v7636_v36  ;;  %15200 = vmatmul.mubr.msk.f32.vlgmr.msra.gmra.mrb[80].mxu0 %vm4916_vm2, %v7694_v59 }
 0x621   : > { %v15856_v24 = vpop.eup %15855  ;;  %15195 = vmatmul.mubr.msk.f32.vlgmr.msra.gmra.mrb[62].mxu1 %vm4916_vm2, %v7692_v13  ;;  %15208 = vmatpush3.msra.mxu0 %v4914_v20 }
 0x622   : > { %v7698_v18 = vmul.f32 %v15856_v24, %v21584_v0  ;;  %15203 = vmatpush3.msra.mxu1 %v21585_v33  ;;  %15204 = vmatprep.mubr.msk.f32.mxu1 %vm16478_vm1, %v21543_v62 }
 0x623   : > { %15209 = vmatprep.mubr.msk.f32.mxu0 %vm16478_vm1, %v21543_v62  ;;  %15212 = vmatprep.subr.mxu1 %v21543_v62 }
 0x624   : > { %15210 = vmatmul.mubr.msk.f32.vlgmr.msra.gmra.mrb[82].mxu0 %vm4916_vm2, %v7698_v18 }
 0x626   : > { %v15858_v57 = vpop.eup %15857 }
 0x627   : > { %v7696_v48 = vmul.f32 %v15858_v57, %v19596_v54 }
 0x629   : > { %15205 = vmatmul.mubr.msk.f32.vlgmr.msra.gmra.mrb[64].mxu1 %vm4916_vm2, %v7696_v48 }
 0x62a   : > { %v15860_v20 = vpop.eup %15859  ;;  %15213 = vmatpush3.msra.mxu1 %v4915_v26  ;;  %15214 = vmatprep.mubr.msk.f32.mxu1 %vm16478_vm1, %v21543_v62 }
 0x62b   : > { %v7700_v52 = vmul.f32 %v15860_v20, %v19613_v39 }
 0x62d   : > { %15215 = vmatmul.mubr.msk.f32.vlgmr.msra.gmra.mrb[66].mxu1 %vm4916_vm2, %v7700_v52 }
 0x6b1   : > { %v7770_v9 = vpop.f32.mrb[52].mxu0 }
 0x6b2   : > { %v15061_v17 = vpop.f32.mrb[53].mxu0 }
 0x6b5   : > { %v7843_v47 = vpop.f32.mrb[36].mxu1 }
 0x6b6   : > { %v15066_v35 = vpop.f32.mrb[37].mxu1 }
 0x6b9   : > { %v7916_v44 = vpop.f32.mrb[54].mxu0 }
 0x6ba   : > { %v10037_v54 = vcombine.low %v7770_v9, %v7916_v44  ;;  %v10038_v40 = vcombine.high %v7770_v9, %v7916_v44  ;;  %v15071_v63 = vpop.f32.mrb[55].mxu0 }
 0x6bc   : > { %v10045_v12 = vrot.slane %v10037_v54, %v21586_v3  ;;  %v10052_v39 = vrot.slane %v10038_v40, %v21586_v3 }
 0x6bd   : > { %v7989_v37 = vpop.f32.mrb[38].mxu1  ;;  %v8062_v10 = vpop.f32.mrb[56].mxu0 }
 0x6be   : > { %v10053_v1 = vcombine.low %v7843_v47, %v7989_v37  ;;  %v10054_v34 = vcombine.high %v7843_v47, %v7989_v37  ;;  %v15076_v55 = vpop.f32.mrb[39].mxu1  ;;  %v15081_v26 = vpop.f32.mrb[57].mxu0 }
 0x6c0   : > { %v10061_v56 = vrot.slane %v10053_v1, %v21586_v3  ;;  %v10068_v25 = vrot.slane %v10054_v34, %v21586_v3 }
 0x6c1   : > { %v8208_v16 = vpop.f32.mrb[58].mxu0 }
 0x6c2   : > { %v10069_v21 = vcombine.low %v10045_v12, %v10061_v56  ;;  %v10070_v58 = vcombine.high %v10045_v12, %v10061_v56  ;;  %v10085_v42 = vcombine.low %v10052_v39, %v10068_v25  ;;  %v10086_v50 = vcombine.high %v10052_v39, %v10068_v25  ;;  %v8135_v28 = vpop.f32.mrb[40].mxu1  ;;  %v15091_v8 = vpop.f32.mrb[59].mxu0 }
 0x6c3   : > { %v10105_v5 = vcombine.low %v8062_v10, %v8208_v16  ;;  %v10106_v6 = vcombine.high %v8062_v10, %v8208_v16  ;;  %v15086_v51 = vpop.f32.mrb[41].mxu1 }
 0x6c4   : > { %v20023_v54 = vrot.slane %v10069_v21, %v17360_v29  ;;  %v20026_v40 = vrot.slane %v10070_v58, %v17360_v29  ;;  %v20041_v26 = vrot.slane %v10085_v42, %v17360_v29  ;;  %v20044_v12 = vrot.slane %v10086_v50, %v17360_v29 }
 0x6c5   : > { %v19999_v7 = vrot.slane %v10105_v5, %v21586_v3  ;;  %v20002_v2 = vrot.slane %v10106_v6, %v21586_v3 }
 0x6c6   : > { %v8281_v60 = vpop.f32.mrb[42].mxu1 }
 0x6c7   : > { %v8354_v15 = vpop.f32.mrb[60].mxu0  ;;  %v10121_v11 = vcombine.low %v8135_v28, %v8281_v60  ;;  %v10122_v31 = vcombine.high %v8135_v28, %v8281_v60  ;;  %v15096_v46 = vpop.f32.mrb[43].mxu1 }
 0x6c8   : > { %v15101_v45 = vpop.f32.mrb[61].mxu0 }
 0x6c9   : > { %v20005_v53 = vrot.slane %v10121_v11, %v21586_v3  ;;  %v20008_v32 = vrot.slane %v10122_v31, %v21586_v3 }
 0x6cb   : > { %v8427_v30 = vpop.f32.mrb[44].mxu1  ;;  %v10137_v41 = vcombine.low %v19999_v7, %v20005_v53  ;;  %v10138_v61 = vcombine.high %v19999_v7, %v20005_v53  ;;  %v10153_v22 = vcombine.low %v20002_v2, %v20008_v32  ;;  %v10154_v49 = vcombine.high %v20002_v2, %v20008_v32 }
 0x6cc   : > { %v8500_v19 = vpop.f32.mrb[62].mxu0  ;;  %v15106_v38 = vpop.f32.mrb[45].mxu1 }
 0x6cd   : > { %v15111_v27 = vpop.f32.mrb[63].mxu0  ;;  %v10173_v23 = vcombine.low %v8354_v15, %v8500_v19  ;;  %v10174_v4 = vcombine.high %v8354_v15, %v8500_v19  ;;  %v10168_v7 = vrot.slane %v10154_v49, %v17360_v29 }
 0x6cf   : > { %v8573_v59 = vpop.f32.mrb[46].mxu1  ;;  %v10181_v0 = vrot.slane %v10173_v23, %v21586_v3  ;;  %v10188_v18 = vrot.slane %v10174_v4, %v21586_v3 }
 0x6d0   : > { %v8646_v36 = vpop.f32.mrb[64].mxu0  ;;  %v10189_v43 = vcombine.low %v8427_v30, %v8573_v59  ;;  %v10190_v14 = vcombine.high %v8427_v30, %v8573_v59  ;;  %v15116_v13 = vpop.f32.mrb[47].mxu1 }
 0x6d1   : > { %v15121_v24 = vpop.f32.mrb[65].mxu0 }
 0x6d2   : > { %v10197_v33 = vrot.slane %v10189_v43, %v21586_v3  ;;  %v10204_v57 = vrot.slane %v10190_v14, %v21586_v3 }
 0x6d3   : > { %v8719_v48 = vpop.f32.mrb[48].mxu1 }
 0x6d4   : > { %v8792_v20 = vpop.f32.mrb[66].mxu0  ;;  %v10205_v52 = vcombine.low %v10181_v0, %v10197_v33  ;;  %v10206_v9 = vcombine.high %v10181_v0, %v10197_v33  ;;  %v10221_v17 = vcombine.low %v10188_v18, %v10204_v57  ;;  %v10222_v47 = vcombine.high %v10188_v18, %v10204_v57  ;;  %v15126_v35 = vpop.f32.mrb[49].mxu1 }
 0x6d5   : > { %v15131_v44 = vpop.f32.mrb[67].mxu0  ;;  %v10241_v63 = vcombine.low %v8646_v36, %v8792_v20  ;;  %v10242_v37 = vcombine.high %v8646_v36, %v8792_v20  ;;  %v10145_v18 = vrot.slane %v10137_v41, %v17360_v29  ;;  %v10152_v33 = vrot.slane %v10138_v61, %v17360_v29 }
 0x6d6   : > { %v20029_v10 = vrot.slane %v10205_v52, %v17360_v29  ;;  %v20032_v1 = vrot.slane %v10206_v9, %v17360_v29  ;;  %v20035_v34 = vrot.slane %v10221_v17, %v17360_v29  ;;  %v20038_v55 = vrot.slane %v10222_v47, %v17360_v29 }
 0x6d7   : > { %v8865_v39 = vpop.f32.mrb[50].mxu1  ;;  %v10249_v19 = vrot.slane %v10241_v63, %v21586_v3  ;;  %v10256_v38 = vrot.slane %v10242_v37, %v21586_v3  ;;  %v10161_v41 = vrot.slane %v10153_v22, %v17360_v29 }
 0x6d8   : > { %v8938_v56 = vpop.f32.mrb[68].mxu0  ;;  %v10581_v25 = vcombine.low %v20023_v54, %v20029_v10  ;;  %v14443_v16 = vcombine.high %v20023_v54, %v20029_v10  ;;  %v10717_v21 = vcombine.low %v20026_v40, %v20032_v1  ;;  %v14447_v58 = vcombine.high %v20026_v40, %v20032_v1  ;;  %v15136_v28 = vpop.f32.mrb[51].mxu1 }
 0x6d9   : > { %v15141_v42 = vpop.f32.mrb[69].mxu0  ;;  %v10853_v50 = vcombine.low %v20041_v26, %v20035_v34  ;;  %v14451_v8 = vcombine.high %v20041_v26, %v20035_v34  ;;  %v10989_v5 = vcombine.low %v20044_v12, %v20038_v55  ;;  %v14455_v6 = vcombine.high %v20044_v12, %v20038_v55 }
 0x6da   : > { %v10257_v15 = vcombine.low %v8719_v48, %v8865_v39  ;;  %v10258_v11 = vcombine.high %v8719_v48, %v8865_v39  ;;  %v20099_v42 = vrot.slane %v10581_v25, %v21586_v3 }
 0x6db   : > { %v20173_v40 = vrot.slane %v14455_v6, %v21586_v3 }
 0x6dc   : > { %v9011_v51 = vpop.f32.mrb[52].mxu1  ;;  %v10265_v27 = vrot.slane %v10257_v15, %v21586_v3  ;;  %v10272_v23 = vrot.slane %v10258_v11, %v21586_v3 }
 0x6dd   : > { %v9084_v60 = vpop.f32.mrb[70].mxu0  ;;  %v15146_v45 = vpop.f32.mrb[53].mxu1 }
 0x6de   : > { %v10309_v31 = vcombine.low %v8938_v56, %v9084_v60  ;;  %v10310_v46 = vcombine.high %v8938_v56, %v9084_v60  ;;  %v15151_v30 = vpop.f32.mrb[71].mxu0  ;;  %v10273_v36 = vcombine.low %v10249_v19, %v10265_v27  ;;  %v10274_v43 = vcombine.high %v10249_v19, %v10265_v27 }
 0x6df   : > { %v10289_v14 = vcombine.low %v10256_v38, %v10272_v23  ;;  %v10290_v13 = vcombine.high %v10256_v38, %v10272_v23 }
 0x6e0   : > { %v10281_v20 = vrot.slane %v10273_v36, %v17360_v29  ;;  %v10288_v52 = vrot.slane %v10274_v43, %v17360_v29  ;;  %v10317_v32 = vrot.slane %v10309_v31, %v21586_v3  ;;  %v10324_v49 = vrot.slane %v10310_v46, %v21586_v3 }
 0x6e1   : > { %v9157_v4 = vpop.f32.mrb[54].mxu1  ;;  %v10297_v9 = vrot.slane %v10289_v14, %v17360_v29  ;;  %v20078_v17 = vrot.slane %v10290_v13, %v17360_v29  ;;  %v20118_v36 = vrot.slane %v10717_v21, %v21586_v3 }
 0x6e2   : > { %v9230_v59 = vpop.f32.mrb[72].mxu0  ;;  %v15156_v24 = vpop.f32.mrb[55].mxu1  ;;  %v10325_v57 = vcombine.low %v9011_v51, %v9157_v4  ;;  %v10326_v48 = vcombine.high %v9011_v51, %v9157_v4  ;;  %v10589_v44 = vcombine.low %v10145_v18, %v10281_v20  ;;  %v14444_v54 = vcombine.high %v10145_v18, %v10281_v20 }
 0x6e3   : > { %v15161_v0 = vpop.f32.mrb[73].mxu0  ;;  %v10725_v63 = vcombine.low %v10152_v33, %v10288_v52  ;;  %v14448_v37 = vcombine.high %v10152_v33, %v10288_v52  ;;  %v10861_v22 = vcombine.low %v10161_v41, %v10297_v9  ;;  %v14452_v56 = vcombine.high %v10161_v41, %v10297_v9 }
 0x6e4   : > { %v20089_v53 = vrot.slane %v10325_v57, %v21586_v3  ;;  %v20092_v61 = vrot.slane %v10326_v48, %v21586_v3  ;;  %v10997_v28 = vcombine.low %v10168_v7, %v20078_v17  ;;  %v14456_v2 = vcombine.high %v10168_v7, %v20078_v17 }
 0x6e5   : > { %v20102_v51 = vrot.slane %v14443_v16, %v21586_v3  ;;  %v20105_v60 = vrot.slane %v10589_v44, %v21586_v3  ;;  %v20108_v15 = vrot.slane %v14444_v54, %v21586_v3  ;;  %v20121_v43 = vrot.slane %v10725_v63, %v21586_v3 }
 0x6e6   : > { %v9303_v47 = vpop.f32.mrb[56].mxu1  ;;  %v10341_v30 = vcombine.low %v10317_v32, %v20089_v53  ;;  %v10342_v31 = vcombine.high %v10317_v32, %v20089_v53  ;;  %v10357_v46 = vcombine.low %v10324_v49, %v20092_v61  ;;  %v10358_v25 = vcombine.high %v10324_v49, %v20092_v61 }
 0x6e7   : > { %v9376_v35 = vpop.f32.mrb[74].mxu0  ;;  %v15166_v10 = vpop.f32.mrb[57].mxu1  ;;  %v20124_v14 = vrot.slane %v14448_v37, %v21586_v3  ;;  %v20127_v13 = vrot.slane %v10861_v22, %v21586_v3  ;;  %v10681_v52 = vcombine.low %v20102_v51, %v20108_v15  ;;  %v10613_v9 = vcombine.low %v20099_v42, %v20105_v60 }
 0x6e8   : > { %v15171_v39 = vpop.f32.mrb[75].mxu0  ;;  %v10377_v16 = vcombine.low %v9230_v59, %v9376_v35  ;;  %v10378_v27 = vcombine.high %v9230_v59, %v9376_v35  ;;  %v20155_v35 = vrot.slane %v10853_v50, %v21586_v3  ;;  %v20161_v44 = vrot.slane %v14451_v8, %v21586_v3 }
 0x6e9   : > { %v20167_v54 = vrot.slane %v10989_v5, %v21586_v3  ;;  %v20176_v1 = vrot.slane %v14452_v56, %v21586_v3  ;;  %v20182_v34 = vrot.slane %v14456_v2, %v21586_v3  ;;  %v10614_v5 = vcombine.high %v20099_v42, %v20105_v60 }
 0x6ea   : > { %v9449_v11 = vpop.f32.mrb[58].mxu1  ;;  %v10385_v24 = vrot.slane %v10377_v16, %v21586_v3  ;;  %v20131_v59 = vrot.slane %v10378_v27, %v21586_v3  ;;  %v10749_v55 = vcombine.low %v20118_v36, %v20121_v43  ;;  %v10682_v12 = vcombine.high %v20102_v51, %v20108_v15 }
 0x6eb   : > { %v9522_v45 = vpop.f32.mrb[76].mxu0  ;;  %v15176_v19 = vpop.f32.mrb[59].mxu1  ;;  %v10393_v23 = vcombine.low %v9303_v47, %v9449_v11  ;;  %v10394_v4 = vcombine.high %v9303_v47, %v9449_v11  ;;  %v20149_v47 = vrot.slane %v14447_v58, %v21586_v3  ;;  %v20179_v58 = vrot.slane %v10997_v28, %v21586_v3 }
 0x6ec   : > { %v15181_v38 = vpop.f32.mrb[77].mxu0  ;;  %v10750_v6 = vcombine.high %v20118_v36, %v20121_v43  ;;  %v10885_v22 = vcombine.low %v20155_v35, %v20127_v13  ;;  %v10349_v56 = vrot.slane %v10341_v30, %v17360_v29  ;;  %v20200_v28 = vrot.slane %v10342_v31, %v17360_v29 }
 0x6ed   : > { %v10401_v0 = vrot.slane %v10393_v23, %v21586_v3  ;;  %v20135_v18 = vrot.slane %v10394_v4, %v21586_v3  ;;  %v10817_v39 = vcombine.low %v20149_v47, %v20124_v14  ;;  %v20203_v2 = vrot.slane %v10357_v46, %v17360_v29 }
 0x6ee   : > { %v20206_v32 = vrot.slane %v10358_v25, %v17360_v29  ;;  %v10818_v31 = vcombine.high %v20149_v47, %v20124_v14  ;;  %v10886_v46 = vcombine.high %v20155_v35, %v20127_v13  ;;  %v20225_v4 = vrot.slane %v10681_v52, %v17360_v29 }
 0x6ef   : > { %v9668_v21 = vpop.f32.mrb[78].mxu0  ;;  %v9595_v33 = vpop.f32.mrb[60].mxu1  ;;  %v10409_v17 = vcombine.low %v10385_v24, %v10401_v0  ;;  %v10410_v41 = vcombine.high %v10385_v24, %v10401_v0  ;;  %v10425_v7 = vcombine.low %v20131_v59, %v20135_v18  ;;  %v10426_v53 = vcombine.high %v20131_v59, %v20135_v18 }
 0x6f0   : > { %v10445_v57 = vcombine.low %v9522_v45, %v9668_v21  ;;  %v10446_v48 = vcombine.high %v9522_v45, %v9668_v21  ;;  %v15191_v20 = vpop.f32.mrb[79].mxu0  ;;  %v15186_v61 = vpop.f32.mrb[61].mxu1  ;;  %v20228_v36 = vrot.slane %v10613_v9, %v17360_v29  ;;  %v20272_v59 = vrot.slane %v10885_v22, %v17360_v29 }
 0x6f1   : > { %v20219_v27 = vrot.slane %v10409_v17, %v17360_v29  ;;  %v20222_v23 = vrot.slane %v10410_v41, %v17360_v29  ;;  %v11022_v20 = vcombine.high %v20167_v54, %v20179_v58 }
 0x6f2   : > { %v10453_v49 = vrot.slane %v10445_v57, %v21586_v3  ;;  %v10460_v42 = vrot.slane %v10446_v48, %v21586_v3  ;;  %v11021_v57 = vcombine.low %v20167_v54, %v20179_v58  ;;  %v10954_v48 = vcombine.high %v20161_v44, %v20176_v1 }
 0x6f3   : > { %v20184_v26 = vpop.f32.mrb[80].mxu0  ;;  %v10440_v54 = vrot.slane %v10426_v53, %v17360_v29  ;;  %v20257_v58 = vrot.slane %v10614_v5, %v17360_v29 }
 0x6f4   : > { %v9741_v50 = vpop.f32.mrb[62].mxu1  ;;  %v15201_v8 = vpop.f32.mrb[81].mxu0 }
 0x6f5   : > { %v10461_v63 = vcombine.low %v9595_v33, %v9741_v50  ;;  %v10462_v37 = vcombine.high %v9595_v33, %v9741_v50  ;;  %v15196_v10 = vpop.f32.mrb[63].mxu1  ;;  %v10953_v33 = vcombine.low %v20161_v44, %v20176_v1  ;;  %v10433_v44 = vrot.slane %v10425_v7, %v17360_v29 }
 0x6f6   : > { %v20260_v50 = vrot.slane %v10749_v55, %v17360_v29  ;;  %v20269_v7 = vrot.slane %v10817_v39, %v17360_v29  ;;  %v20277_v10 = vrot.slane %v10818_v31, %v17360_v29  ;;  %v11090_v39 = vcombine.high %v20173_v40, %v20182_v34 }
 0x6f7   : > { %v10469_v51 = vrot.slane %v10461_v63, %v21586_v3  ;;  %v10476_v60 = vrot.slane %v10462_v37, %v21586_v3  ;;  %v9960_v15 = vpop.f32.mrb[82].mxu0  ;;  %v20263_v63 = vrot.slane %v10682_v12, %v17360_v29  ;;  %v20266_v37 = vrot.slane %v10750_v6, %v17360_v29 }
 0x6f8   : > { %v10513_v11 = vcombine.low %v20184_v26, %v9960_v15  ;;  %v10514_v45 = vcombine.high %v20184_v26, %v9960_v15  ;;  %v15211_v30 = vpop.f32.mrb[83].mxu0  ;;  %v20280_v12 = vrot.slane %v10886_v46, %v17360_v29  ;;  %v11089_v6 = vcombine.low %v20173_v40, %v20182_v34 }
 0x6f9   : > { %v10477_v25 = vcombine.low %v10453_v49, %v10469_v51  ;;  %v10478_v19 = vcombine.high %v10453_v49, %v10469_v51  ;;  %v10493_v38 = vcombine.low %v10460_v42, %v10476_v60  ;;  %v10494_v16 = vcombine.high %v10460_v42, %v10476_v60 }
 0x6fa   : > { %v10521_v18 = vrot.slane %v10513_v11, %v21586_v3  ;;  %v10528_v53 = vrot.slane %v10514_v45, %v21586_v3  ;;  %v20307_v30 = vrot.slane %v10953_v33, %v17360_v29  ;;  %v20310_v31 = vrot.slane %v11021_v57, %v17360_v29 }
 0x6fb   : > { %v10485_v43 = vrot.slane %v10477_v25, %v17360_v29  ;;  %v10492_v14 = vrot.slane %v10478_v19, %v17360_v29  ;;  %v10501_v13 = vrot.slane %v10493_v38, %v17360_v29  ;;  %v10508_v24 = vrot.slane %v10494_v16, %v17360_v29 }
 0x6fc   : > { %v9887_v0 = vpop.f32.mrb[64].mxu1  ;;  %v20317_v16 = vrot.slane %v10954_v48, %v17360_v29 }
 0x6fd   : > { %v15206_v21 = vpop.f32.mrb[65].mxu1  ;;  %v10597_v52 = vcombine.low %v10349_v56, %v10485_v43  ;;  %v14445_v9 = vcombine.high %v10349_v56, %v10485_v43  ;;  %v10733_v17 = vcombine.low %v20200_v28, %v10492_v14  ;;  %v14449_v41 = vcombine.high %v20200_v28, %v10492_v14 }
 0x6fe   : > { %v10869_v61 = vcombine.low %v20203_v2, %v10501_v13  ;;  %v14453_v47 = vcombine.high %v20203_v2, %v10501_v13  ;;  %v11005_v35 = vcombine.low %v20206_v32, %v10508_v24  ;;  %v14457_v26 = vcombine.high %v20206_v32, %v10508_v24 }
 0x6ff   : > { %v10604_v22 = vrot.slane %v10597_v52, %v21586_v3  ;;  %v10672_v56 = vrot.slane %v14445_v9, %v21586_v3  ;;  %v10740_v32 = vrot.slane %v10733_v17, %v21586_v3  ;;  %v20292_v49 = vrot.slane %v14449_v41, %v21586_v3 }
 0x700   : > { %v10033_v1 = vpop.f32.mrb[66].mxu1  ;;  %v20295_v42 = vrot.slane %v10869_v61, %v21586_v3  ;;  %v20298_v51 = vrot.slane %v14453_v47, %v21586_v3  ;;  %v20301_v11 = vrot.slane %v11005_v35, %v21586_v3  ;;  %v20304_v45 = vrot.slane %v14457_v26, %v21586_v3 }
 0x701   : > { %v15216_v8 = vpop.f32.mrb[67].mxu1  ;;  %v10529_v5 = vcombine.low %v9887_v0, %v10033_v1  ;;  %v10530_v55 = vcombine.high %v9887_v0, %v10033_v1  ;;  %v20320_v43 = vrot.slane %v11022_v20, %v17360_v29  ;;  %v20323_v14 = vrot.slane %v11089_v6, %v17360_v29 }
 0x702   : > { %v20326_v13 = vrot.slane %v11090_v39, %v17360_v29 }
 0x703   : > { %v10537_v28 = vrot.slane %v10529_v5, %v21586_v3  ;;  %v10544_v2 = vrot.slane %v10530_v55, %v21586_v3 }
 0x705   : > { %v10545_v40 = vcombine.low %v10521_v18, %v10537_v28  ;;  %v10546_v34 = vcombine.high %v10521_v18, %v10537_v28  ;;  %v10561_v60 = vcombine.low %v10528_v53, %v10544_v2  ;;  %v10562_v15 = vcombine.high %v10528_v53, %v10544_v2 }
 0x707   : > { %v10553_v46 = vrot.slane %v10545_v40, %v17360_v29  ;;  %v10560_v25 = vrot.slane %v10546_v34, %v17360_v29  ;;  %v10569_v19 = vrot.slane %v10561_v60, %v17360_v29  ;;  %v10576_v38 = vrot.slane %v10562_v15, %v17360_v29 }
 0x709   : > { %v10605_v24 = vcombine.low %v20219_v27, %v10553_v46  ;;  %v14446_v0 = vcombine.high %v20219_v27, %v10553_v46  ;;  %v10741_v21 = vcombine.low %v20222_v23, %v10560_v25  ;;  %v14450_v33 = vcombine.high %v20222_v23, %v10560_v25 }
 0x70a   : > { %v10877_v57 = vcombine.low %v10433_v44, %v10569_v19  ;;  %v14454_v48 = vcombine.high %v10433_v44, %v10569_v19  ;;  %v11013_v52 = vcombine.low %v10440_v54, %v10576_v38  ;;  %v14458_v9 = vcombine.high %v10440_v54, %v10576_v38 }
 0x70b   : > { %v10612_v20 = vrot.slane %v10605_v24, %v21586_v3  ;;  %v10680_v17 = vrot.slane %v14446_v0, %v21586_v3  ;;  %v10748_v41 = vrot.slane %v10741_v21, %v21586_v3  ;;  %v10816_v61 = vrot.slane %v14450_v33, %v21586_v3 }
 0x70c   : > { %v10884_v47 = vrot.slane %v10877_v57, %v21586_v3  ;;  %v10952_v27 = vrot.slane %v14454_v48, %v21586_v3  ;;  %v11020_v35 = vrot.slane %v11013_v52, %v21586_v3  ;;  %v20340_v23 = vrot.slane %v14458_v9, %v21586_v3 }
 0x70d   : > { %v10697_v26 = vcombine.low %v10672_v56, %v10680_v17  ;;  %v10629_v44 = vcombine.low %v10604_v22, %v10612_v20  ;;  %v10630_v54 = vcombine.high %v10604_v22, %v10612_v20  ;;  %v10765_v1 = vcombine.low %v10740_v32, %v10748_v41 }
 0x70e   : > { %v10698_v8 = vcombine.high %v10672_v56, %v10680_v17  ;;  %v10766_v18 = vcombine.high %v10740_v32, %v10748_v41  ;;  %v10833_v53 = vcombine.low %v20292_v49, %v10816_v61  ;;  %v10901_v5 = vcombine.low %v20295_v42, %v10884_v47 }
 0x70f   : > { %v20345_v55 = vrot.slane %v10697_v26, %v17360_v29  ;;  %v20348_v6 = vrot.slane %v10629_v44, %v17360_v29  ;;  %v10644_v39 = vrot.slane %v10630_v54, %v17360_v29  ;;  %v20352_v28 = vrot.slane %v10765_v1, %v17360_v29 }
 0x710   : > { %v20355_v22 = vrot.slane %v10698_v8, %v17360_v29  ;;  %v20358_v56 = vrot.slane %v10766_v18, %v17360_v29  ;;  %v20361_v2 = vrot.slane %v10833_v53, %v17360_v29  ;;  %v20364_v32 = vrot.slane %v10901_v5, %v17360_v29  ;;  %v11249_v8 = vld [vmem:[#allocation10 + $0x10] sm:$0xff]  ;;  %v11250_v18 = vld [vmem:[#allocation10 + $0x18] sm:$0xff] }
 0x711   : > { %v10714_v40 = vcombine.high %v20225_v4, %v20345_v55  ;;  %v10646_v34 = vcombine.high %v20228_v36, %v20348_v6  ;;  %v10648_v60 = vcombine.high %v20257_v58, %v10644_v39  ;;  %v10647_v15 = vcombine.low %v20257_v58, %v10644_v39 }
 0x712   : > { %v10782_v46 = vcombine.high %v20260_v50, %v20352_v28  ;;  %v10715_v25 = vcombine.low %v20263_v63, %v20355_v22  ;;  %v10783_v19 = vcombine.low %v20266_v37, %v20358_v56  ;;  %v10716_v38 = vcombine.high %v20263_v63, %v20355_v22 }
 0x713   : > { %11135 = vrot.lane.b32.xlu0 %v10714_v40, %s16480_s6  ;;  %11133 = vrot.lane.b32.xlu1 %v10646_v34, %s16480_s6  ;;  %v10784_v58 = vcombine.high %v20266_v37, %v20358_v56  ;;  %v10850_v24 = vcombine.high %v20269_v7, %v20361_v2  ;;  %v10918_v0 = vcombine.high %v20272_v59, %v20364_v32 }
 0x714   : > { %v10834_v21 = vcombine.high %v20292_v49, %v10816_v61  ;;  %v10902_v33 = vcombine.high %v20295_v42, %v10884_v47  ;;  %v10969_v63 = vcombine.low %v20298_v51, %v10952_v27  ;;  %v11037_v57 = vcombine.low %v20301_v11, %v11020_v35 }
 0x715   : > { %v10970_v48 = vcombine.high %v20298_v51, %v10952_v27  ;;  %v11038_v52 = vcombine.high %v20301_v11, %v11020_v35  ;;  %v11105_v37 = vcombine.low %v20304_v45, %v20340_v23  ;;  %v11106_v9 = vcombine.high %v20304_v45, %v20340_v23  ;;  %v11247_v35 = vld [vmem:[#allocation10] sm:$0xff]  ;;  %v11248_v23 = vld [vmem:[#allocation10 + $0x8] sm:$0xff] }
 0x716   : > { %v10848_v20 = vrot.slane %v10834_v21, %v17360_v29  ;;  %v10916_v49 = vrot.slane %v10902_v33, %v17360_v29  ;;  %v20401_v42 = vrot.slane %v10969_v63, %v17360_v29  ;;  %v20404_v17 = vrot.slane %v11037_v57, %v17360_v29 }
 0x717   : > { %11197 = vrot.lane.b32.xlu0 %v10648_v60, %s16481_s26  ;;  %11165 = vrot.lane.b32.xlu1 %v10647_v15, %s16482_s5  ;;  %v10984_v51 = vrot.slane %v10970_v48, %v17360_v29  ;;  %v11052_v11 = vrot.slane %v11038_v52, %v17360_v29  ;;  %v20411_v45 = vrot.slane %v11105_v37, %v17360_v29 }
 0x718   : > { %v10851_v41 = vcombine.low %v20277_v10, %v10848_v20  ;;  %v10919_v61 = vcombine.low %v20280_v12, %v10916_v49  ;;  %v10852_v47 = vcombine.high %v20277_v10, %v10848_v20  ;;  %v10920_v27 = vcombine.high %v20280_v12, %v10916_v49 }
 0x719   : > { %v10986_v26 = vcombine.high %v20307_v30, %v20401_v42  ;;  %v11054_v44 = vcombine.high %v20310_v31, %v20404_v17  ;;  %v10987_v54 = vcombine.low %v20317_v16, %v10984_v51  ;;  %v11055_v1 = vcombine.low %v20320_v43, %v11052_v11 }
 0x71a   : > { %v10988_v53 = vcombine.high %v20317_v16, %v10984_v51  ;;  %v11056_v10 = vcombine.high %v20320_v43, %v11052_v11  ;;  %v11122_v12 = vcombine.high %v20323_v14, %v20411_v45  ;;  %v11120_v5 = vrot.slane %v11106_v9, %v17360_v29 }
 0x71b   : > { %11137 = vrot.lane.b32.xlu0 %v10782_v46, %s16480_s6  ;;  %11167 = vrot.lane.b32.xlu1 %v10715_v25, %s16482_s5  ;;  %v10713_v39 = vcombine.low %v20225_v4, %v20345_v55  ;;  %v10645_v22 = vcombine.low %v20228_v36, %v20348_v6  ;;  %v15469_v56 = vpack.c.bf16 %v11248_v23, %v11247_v35 }
 0x71c   : > { %v11123_v16 = vcombine.low %v20326_v13, %v11120_v5  ;;  %v11124_v43 = vcombine.high %v20326_v13, %v11120_v5  ;;  %v10781_v40 = vcombine.low %v20260_v50, %v20352_v28  ;;  %v15473_v34 = vpack.c.bf16 %v11250_v18, %v11249_v8 }
 0x71d   : > { %15470 = vmatprep.subr.bf16.mxu0 %v15469_v56  ;;  %v10849_v60 = vcombine.low %v20269_v7, %v20361_v2  ;;  %v10917_v15 = vcombine.low %v20272_v59, %v20364_v32  ;;  %v10985_v4 = vcombine.low %v20307_v30, %v20401_v42  ;;  %v11053_v36 = vcombine.low %v20310_v31, %v20404_v17 }
 0x71e   : > { %15472 = vmatpush3.bf16.msra.mxu0 %v15469_v56  ;;  %v11121_v13 = vcombine.low %v20323_v14, %v20411_v45  ;;  %v20512_v45 = vld [vmem:[%s17093_s11] sm:$0xff] }
 0x71f   : > { %11169 = vrot.lane.b32.xlu0 %v10783_v19, %s16482_s5  ;;  %11199 = vrot.lane.b32.xlu1 %v10716_v38, %s16481_s26 }
 0x720   : > { %15474 = vmatprep.subr.bf16.mxu0 %v15473_v34 }
 0x722   : > { %15476 = vmatpush3.bf16.msra.mxu0 %v15473_v34  ;;  %v20508_v34 = vld [vmem:[%s17093_s11 + $0x8] sm:$0xff] }
 0x723   : > { %11201 = vrot.lane.b32.xlu0 %v10784_v58, %s16481_s26  ;;  %11139 = vrot.lane.b32.xlu1 %v10850_v24, %s16480_s6 }
 0x727   : > { %11141 = vrot.lane.b32.xlu0 %v10918_v0, %s16480_s6  ;;  %11171 = vrot.lane.b32.xlu1 %v10851_v41, %s16482_s5 }
 0x72b   : > { %11173 = vrot.lane.b32.xlu0 %v10919_v61, %s16482_s5  ;;  %11203 = vrot.lane.b32.xlu1 %v10852_v47, %s16481_s26 }
 0x72f   : > { %11205 = vrot.lane.b32.xlu0 %v10920_v27, %s16481_s26  ;;  %11143 = vrot.lane.b32.xlu1 %v10986_v26, %s16480_s6 }
 0x733   : > { %11145 = vrot.lane.b32.xlu0 %v11054_v44, %s16480_s6  ;;  %11175 = vrot.lane.b32.xlu1 %v10987_v54, %s16482_s5 }
 0x737   : > { %11177 = vrot.lane.b32.xlu0 %v11055_v1, %s16482_s5  ;;  %11207 = vrot.lane.b32.xlu1 %v10988_v53, %s16481_s26 }
 0x73b   : > { %11209 = vrot.lane.b32.xlu0 %v11056_v10, %s16481_s26  ;;  %11147 = vrot.lane.b32.xlu1 %v11122_v12, %s16480_s6 }
 0x73f   : > { %11179 = vrot.lane.b32.xlu1 %v11123_v16, %s16482_s5  ;;  %s16359_s5 = scalar_lea.vmem %s21044_s24, 1024 }
 0x740   : > { %p16360_p6 = scmp.ne.s32.totalorder %s21044_s24, %s16359_s5 }
 0x742   : > { %p16361_p7 = pnand %p16360_p6, %p21595_p2 }
 0x743   : > { %11211 = vrot.lane.b32.xlu1 %v11124_v43, %s16481_s26 }
 0x744   : > { %p16362_p0 = pneg %p16361_p7 }
 0x785   : > { %v11136_v50 = vpop.permute.xlu0 %11135  ;;  %v11134_v7 = vpop.permute.xlu1 %11133 }
 0x786   : > { %v11221_v59 = vsel %vm4916_vm2, %v10645_v22, %v11134_v7  ;;  %v11222_v25 = vsel %vm4916_vm2, %v10713_v39, %v11136_v50  ;;  %v14459_v22 = vld [vmem:[#allocation11] ss:$0 sm:$0xff] }
 0x789   : > { %v11198_v55 = vpop.permute.xlu0 %11197  ;;  %v11166_v6 = vpop.permute.xlu1 %11165 }
 0x78a   : > { %v11230_v28 = vsel %vm11229_vm3, %v11221_v59, %v11166_v6  ;;  %v20518_v59 = vld [vmem:[%s17093_s11 + $0x10] sm:$0xff]  ;;  %v20522_v6 = vld [vmem:[%s17093_s11 + $0x18] sm:$0xff] }
 0x78b   : > { %v11239_v2 = vsel %vm11238_vm4, %v11230_v28, %v11198_v55 }
 0x78c   : > { %15225 = vmatprep.mubr.msk.f32.mxu0 %vm1016_vm0, %v11239_v2 }
 0x78d   : > { %v11138_v32 = vpop.permute.xlu0 %11137  ;;  %v11168_v46 = vpop.permute.xlu1 %11167 }
 0x78e   : > { %v11231_v19 = vsel %vm11229_vm3, %v11222_v25, %v11168_v46  ;;  %v11223_v0 = vsel %vm4916_vm2, %v10781_v40, %v11138_v32 }
 0x791   : > { %v11170_v38 = vpop.permute.xlu0 %11169  ;;  %v11200_v58 = vpop.permute.xlu1 %11199 }
 0x792   : > { %v11240_v24 = vsel %vm11238_vm4, %v11231_v19, %v11200_v58  ;;  %v11232_v21 = vsel %vm11229_vm3, %v11223_v0, %v11170_v38  ;;  %v20528_v58 = vld [vmem:[%s17093_s11 + $0x28] sm:$0xff]  ;;  %v20532_v0 = vld [vmem:[%s17093_s11 + $0x20] sm:$0xff] }
 0x793   : > { %15226 = vmatmul.mubr.msk.f32.vlgmr.msra.gmra.mrb[84].mxu0 %vm1016_vm0, %v11240_v24 }
 0x795   : > { %v11202_v33 = vpop.permute.xlu0 %11201  ;;  %v11140_v63 = vpop.permute.xlu1 %11139 }
 0x796   : > { %v11241_v57 = vsel %vm11238_vm4, %v11232_v21, %v11202_v33  ;;  %v11224_v37 = vsel %vm4916_vm2, %v10849_v60, %v11140_v63 }
 0x797   : > { %15228 = vmatprep.mubr.msk.f32.mxu0 %vm1016_vm0, %v11241_v57 }
 0x799   : > { %v11142_v48 = vpop.permute.xlu0 %11141  ;;  %v11172_v52 = vpop.permute.xlu1 %11171 }
 0x79a   : > { %v11233_v9 = vsel %vm11229_vm3, %v11224_v37, %v11172_v52  ;;  %v11225_v11 = vsel %vm4916_vm2, %v10917_v15, %v11142_v48 }
 0x79d   : > { %v11174_v20 = vpop.permute.xlu0 %11173  ;;  %v11204_v49 = vpop.permute.xlu1 %11203 }
 0x79e   : > { %v11242_v51 = vsel %vm11238_vm4, %v11233_v9, %v11204_v49  ;;  %v11234_v41 = vsel %vm11229_vm3, %v11225_v11, %v11174_v20  ;;  %v20538_v9 = vld [vmem:[%s17093_s11 + $0x38] sm:$0xff]  ;;  %v20542_v49 = vld [vmem:[%s17093_s11 + $0x30] sm:$0xff]  ;;  %s21591_s11 = sld [smem:[#allocation87_spill]] }
 0x79f   : > { %15229 = vmatmul.mubr.msk.f32.gmra.mrb[86].mxu0 %vm1016_vm0, %v11242_v51 }
 0x7a1   : > { %v11206_v61 = vpop.permute.xlu0 %11205  ;;  %v11144_v47 = vpop.permute.xlu1 %11143 }
 0x7a2   : > { %v11243_v27 = vsel %vm11238_vm4, %v11234_v41, %v11206_v61  ;;  %v11226_v26 = vsel %vm4916_vm2, %v10985_v4, %v11144_v47 }
 0x7a3   : > { %15231 = vmatprep.mubr.msk.f32.mxu0 %vm1016_vm0, %v11243_v27 }
 0x7a5   : > { %v11146_v35 = vpop.permute.xlu0 %11145  ;;  %v11176_v23 = vpop.permute.xlu1 %11175 }
 0x7a6   : > { %v11235_v44 = vsel %vm11229_vm3, %v11226_v26, %v11176_v23  ;;  %v11227_v18 = vsel %vm4916_vm2, %v11053_v36, %v11146_v35 }
 0x7a9   : > { %v11178_v54 = vpop.permute.xlu0 %11177  ;;  %v11208_v1 = vpop.permute.xlu1 %11207 }
 0x7aa   : > { %v11244_v8 = vsel %vm11238_vm4, %v11235_v44, %v11208_v1  ;;  %v11236_v53 = vsel %vm11229_vm3, %v11227_v18, %v11178_v54 }
 0x7ab   : > { %15232 = vmatmul.mubr.msk.f32.gmra.mrb[88].mxu0 %vm1016_vm0, %v11244_v8 }
 0x7ad   : > { %v11210_v10 = vpop.permute.xlu0 %11209  ;;  %v11148_v30 = vpop.permute.xlu1 %11147 }
 0x7ae   : > { %v11245_v42 = vsel %vm11238_vm4, %v11236_v53, %v11210_v10  ;;  %v11228_v5 = vsel %vm4916_vm2, %v11121_v13, %v11148_v30 }
 0x7af   : > { %15234 = vmatprep.mubr.msk.f32.mxu0 %vm1016_vm0, %v11245_v42 }
 0x7b1   : > { %v11180_v12 = vpop.permute.xlu1 %11179 }
 0x7b2   : > { %v11237_v31 = vsel %vm11229_vm3, %v11228_v5, %v11180_v12 }
 0x7b5   : > { %v11212_v17 = vpop.permute.xlu1 %11211 }
 0x7b6   : > { %v11246_v39 = vsel %vm11238_vm4, %v11237_v31, %v11212_v17 }
 0x7b7   : > { %15235 = vmatmul.mubr.msk.f32.gmra.mrb[90].mxu0 %vm1016_vm0, %v11246_v39 }
 0x866   : > { %v15227_v56 = vpop.f32.mrb[84].mxu0 }
 0x867   : > { %v11354_v16 = vadd.f32 %v15227_v56, %v14459_v22  ;;  %v11348_v43 = vpop.f32.mrb[85].mxu0 }
 0x868   : > { %v11349_v40 = vadd.f32 %v14459_v22, %v11348_v43 }
 0x869   : > { %v11388_v14 = vadd.f32 %v20508_v34, %v11354_v16 }
 0x86a   : > { %v11387_v60 = vadd.f32 %v20512_v45, %v11349_v40 }
 0x86b   : > { %v11400_v15 = vsel %vm1016_vm0, %v11388_v14, 0.0 }
 0x86c   : > { %11401 = vadd.xlane.f32.xlu1 %v11400_v15  ;;  %v11397_v4 = vsel %vm1016_vm0, %v11387_v60, 0.0 }
 0x86d   : > { %11398 = vadd.xlane.f32.xlu0 %v11397_v4 }
 0x872   : > { %v15230_v36 = vpop.f32.mrb[86].mxu0 }
 0x873   : > { %v11358_v13 = vpop.f32.mrb[87].mxu0  ;;  %v11364_v50 = vadd.f32 %v15230_v36, %v14459_v22 }
 0x874   : > { %v11359_v7 = vadd.f32 %v14459_v22, %v11358_v13 }
 0x875   : > { %v11390_v28 = vadd.f32 %v20522_v6, %v11364_v50 }
 0x876   : > { %v11389_v55 = vadd.f32 %v20518_v59, %v11359_v7 }
 0x877   : > { %v11406_v32 = vsel %vm1016_vm0, %v11390_v28, 0.0 }
 0x878   : > { %v11403_v2 = vsel %vm1016_vm0, %v11389_v55, 0.0 }
 0x879   : > { %11404 = vadd.xlane.f32.xlu0 %v11403_v2  ;;  %v11530_v2 = vld [vmem:[%s21587_s13] sm:$0xff] }
 0x87d   : > { %11407 = vadd.xlane.f32.xlu0 %v11406_v32  ;;  %v11531_v32 = vld [vmem:[%s21587_s13 + $0x8] sm:$0xff] }
 0x87e   : > { %v15233_v46 = vpop.f32.mrb[88].mxu0 }
 0x87f   : > { %v11374_v25 = vadd.f32 %v15233_v46, %v14459_v22  ;;  %v11368_v19 = vpop.f32.mrb[89].mxu0 }
 0x880   : > { %v11369_v38 = vadd.f32 %v14459_v22, %v11368_v19 }
 0x881   : > { %v11392_v24 = vadd.f32 %v20528_v58, %v11374_v25  ;;  %v15477_v25 = vpack.c.bf16 %v11531_v32, %v11530_v2 }
 0x882   : > { %v11391_v21 = vadd.f32 %v20532_v0, %v11369_v38 }
 0x883   : > { %v11412_v33 = vsel %vm1016_vm0, %v11392_v24, 0.0  ;;  %15478 = vmatprep.subr.bf16.mxu1 %v15477_v25 }
 0x884   : > { %11413 = vadd.xlane.f32.xlu0 %v11412_v33  ;;  %v11409_v63 = vsel %vm1016_vm0, %v11391_v21, 0.0  ;;  %15480 = vmatpush3.bf16.msra.mxu1 %v15477_v25  ;;  %v11533_v33 = vld [vmem:[%s21587_s13 + $0x18] sm:$0xff] }
 0x885   : > { %11410 = vadd.xlane.f32.xlu1 %v11409_v63 }
 0x88a   : > { %v15236_v57 = vpop.f32.mrb[90].mxu0 }
 0x88b   : > { %v11384_v48 = vadd.f32 %v15236_v57, %v14459_v22  ;;  %v11378_v52 = vpop.f32.mrb[91].mxu0 }
 0x88c   : > { %v11379_v37 = vadd.f32 %v14459_v22, %v11378_v52  ;;  %v11967_v52 = vld [vmem:[%s21588_s23 + $0x8] sm:$0xff] }
 0x88d   : > { %v11394_v20 = vadd.f32 %v20538_v9, %v11384_v48  ;;  %v11966_v48 = vld [vmem:[%s21588_s23] sm:$0xff] }
 0x88e   : > { %v11393_v51 = vadd.f32 %v20542_v49, %v11379_v37  ;;  %v15501_v37 = vpack.c.bf16 %v11967_v52, %v11966_v48 }
 0x88f   : > { %v11418_v11 = vsel %vm1016_vm0, %v11394_v20, 0.0 }
 0x890   : > { %11419 = vadd.xlane.f32.xlu0 %v11418_v11  ;;  %v11415_v41 = vsel %vm1016_vm0, %v11393_v51, 0.0  ;;  %v11680_v11 = vld [vmem:[%s21589_s29 + $0x10] sm:$0xff] }
 0x891   : > { %11416 = vadd.xlane.f32.xlu1 %v11415_v41 }
 0x8f9   : > { %v11402_v61 = vpop.xlane.xlu1 %11401 }
 0x8fa   : > { %v11423_v47 = vmul.f32 0.03125, %v11402_v61  ;;  %v11399_v27 = vpop.xlane.xlu0 %11398  ;;  %v11681_v61 = vld [vmem:[%s21589_s29 + $0x18] sm:$0xff] }
 0x8fb   : > { %v11422_v35 = vmul.f32 0.03125, %v11399_v27  ;;  %v11682_v27 = vld [vmem:[%s21589_s29 + $0x20] sm:$0xff] }
 0x8fc   : > { %v20547_v23 = vsub.f32 %v11388_v14, %v11423_v47  ;;  %v15489_v47 = vpack.c.bf16 %v11681_v61, %v11680_v11 }
 0x8fd   : > { %v20549_v26 = vsub.f32 %v11387_v60, %v11422_v35  ;;  %v11683_v35 = vld [vmem:[%s21589_s29 + $0x28] sm:$0xff] }
 0x8fe   : > { %v11439_v44 = vmul.f32 %v20547_v23, %v20547_v23 }
 0x8ff   : > { %v11438_v54 = vmul.f32 %v20549_v26, %v20549_v26 }
 0x900   : > { %v11449_v1 = vsel %vm1016_vm0, %v11439_v44, 0.0  ;;  %v15493_v44 = vpack.c.bf16 %v11683_v35, %v11682_v27 }
 0x901   : > { %11450 = vadd.xlane.f32.xlu0 %v11449_v1  ;;  %v11446_v8 = vsel %vm1016_vm0, %v11438_v54, 0.0 }
 0x902   : > { %11447 = vadd.xlane.f32.xlu1 %v11446_v8 }
 0x906   : > { %v11405_v18 = vpop.xlane.xlu0 %11404 }
 0x907   : > { %v11424_v53 = vmul.f32 0.03125, %v11405_v18 }
 0x909   : > { %v20557_v10 = vsub.f32 %v11389_v55, %v11424_v53 }
 0x90a   : > { %v11408_v30 = vpop.xlane.xlu0 %11407 }
 0x90b   : > { %v11425_v42 = vmul.f32 0.03125, %v11408_v30  ;;  %v11440_v12 = vmul.f32 %v20557_v10, %v20557_v10 }
 0x90d   : > { %v20561_v5 = vsub.f32 %v11390_v28, %v11425_v42  ;;  %v11452_v31 = vsel %vm1016_vm0, %v11440_v12, 0.0 }
 0x90e   : > { %11453 = vadd.xlane.f32.xlu1 %v11452_v31 }
 0x90f   : > { %v11441_v17 = vmul.f32 %v20561_v5, %v20561_v5 }
 0x911   : > { %v11414_v39 = vpop.xlane.xlu0 %11413  ;;  %v11455_v22 = vsel %vm1016_vm0, %v11441_v17, 0.0  ;;  %v20623_v17 = vld [vmem:[#allocation13] ss:$0 sm:$0xff] }
 0x912   : > { %v11427_v56 = vmul.f32 0.03125, %v11414_v39  ;;  %v11411_v16 = vpop.xlane.xlu1 %11410  ;;  %11456 = vadd.xlane.f32.xlu0 %v11455_v22 }
 0x913   : > { %v11426_v43 = vmul.f32 0.03125, %v11411_v16 }
 0x914   : > { %v20567_v40 = vsub.f32 %v11392_v24, %v11427_v56 }
 0x915   : > { %v20569_v14 = vsub.f32 %v11391_v21, %v11426_v43  ;;  %v11532_v21 = vld [vmem:[%s21587_s13 + $0x10] sm:$0xff] }
 0x916   : > { %v11443_v60 = vmul.f32 %v20567_v40, %v20567_v40  ;;  %v15481_v57 = vpack.c.bf16 %v11533_v33, %v11532_v21 }
 0x917   : > { %v11442_v15 = vmul.f32 %v20569_v14, %v20569_v14 }
 0x918   : > { %v11461_v4 = vsel %vm1016_vm0, %v11443_v60, 0.0  ;;  %15482 = vmatprep.subr.bf16.mxu1 %v15481_v57 }
 0x919   : > { %11462 = vadd.xlane.f32.xlu0 %v11461_v4  ;;  %v11458_v36 = vsel %vm1016_vm0, %v11442_v15, 0.0  ;;  %15484 = vmatpush3.bf16.msra.mxu1 %v15481_v57  ;;  %v14469_v15 = vld [vmem:[#allocation14] ss:$0 sm:$0xff] }
 0x91a   : > { %11459 = vadd.xlane.f32.xlu1 %v11458_v36  ;;  %15502 = vmatprep.subr.bf16.mxu1 %v15501_v37 }
 0x91d   : > { %v11420_v13 = vpop.xlane.xlu0 %11419 }
 0x91e   : > { %v11429_v50 = vmul.f32 0.03125, %v11420_v13  ;;  %v11417_v7 = vpop.xlane.xlu1 %11416  ;;  %v11968_v13 = vld [vmem:[%s21588_s23 + $0x10] sm:$0xff] }
 0x91f   : > { %v11428_v55 = vmul.f32 0.03125, %v11417_v7 }
 0x920   : > { %v20577_v28 = vsub.f32 %v11394_v20, %v11429_v50  ;;  %v11678_v20 = vld [vmem:[%s21589_s29] sm:$0xff]  ;;  %v11969_v50 = vld [vmem:[%s21588_s23 + $0x18] sm:$0xff] }
 0x921   : > { %v20585_v46 = vsub.f32 %v11393_v51, %v11428_v55  ;;  %v11679_v51 = vld [vmem:[%s21589_s29 + $0x8] sm:$0xff]  ;;  %v15505_v55 = vpack.c.bf16 %v11969_v50, %v11968_v13 }
 0x922   : > { %v11445_v19 = vmul.f32 %v20577_v28, %v20577_v28  ;;  %v15485_v41 = vpack.c.bf16 %v11679_v51, %v11678_v20 }
 0x923   : > { %v11444_v38 = vmul.f32 %v20585_v46, %v20585_v46 }
 0x924   : > { %v11467_v24 = vsel %vm1016_vm0, %v11445_v19, 0.0  ;;  %15486 = vmatprep.subr.bf16.mxu0 %v15485_v41 }
 0x925   : > { %11468 = vadd.xlane.f32.xlu0 %v11467_v24  ;;  %v11464_v63 = vsel %vm1016_vm0, %v11444_v38, 0.0  ;;  %15488 = vmatpush3.bf16.msra.mxu0 %v15485_v41 }
 0x926   : > { %11465 = vadd.xlane.f32.xlu1 %v11464_v63  ;;  %15490 = vmatprep.subr.bf16.mxu0 %v15489_v47 }
 0x929   : > { %15492 = vmatpush3.bf16.msra.mxu0 %v15489_v47 }
 0x92a   : > { %15494 = vmatprep.subr.bf16.mxu0 %v15493_v44 }
 0x92d   : > { %15496 = vmatpush3.bf16.msra.mxu0 %v15493_v44 }
 0x98e   : > { %v11451_v54 = vpop.xlane.xlu0 %11450 }
 0x98f   : > { %v11471_v1 = vmul.f32 0.03125, %v11451_v54  ;;  %v11448_v8 = vpop.xlane.xlu1 %11447 }
 0x990   : > { %v11470_v18 = vmul.f32 0.03125, %v11448_v8 }
 0x991   : > { %v11479_v53 = vadd.f32 1e-05, %v11471_v1 }
 0x992   : > { %v11478_v30 = vadd.f32 1e-05, %v11470_v18 }
 0x993   : > { %15861 = vrsqrt.f32 %v11479_v53 }
 0x994   : > { %15863 = vrsqrt.f32 %v11478_v30 }
 0x99b   : > { %v11454_v42 = vpop.xlane.xlu1 %11453 }
 0x99c   : > { %v11472_v12 = vmul.f32 0.03125, %v11454_v42 }
 0x99d   : > { %v15862_v31 = vpop.eup %15861 }
 0x99e   : > { %v15864_v39 = vpop.eup %15863  ;;  %v11495_v22 = vmul.f32 %v15862_v31, %v20547_v23  ;;  %v11480_v56 = vadd.f32 1e-05, %v11472_v12 }
 0x99f   : > { %v11457_v16 = vpop.xlane.xlu0 %11456  ;;  %v11494_v43 = vmul.f32 %v15864_v39, %v20549_v26 }
 0x9a0   : > { %15865 = vrsqrt.f32 %v11480_v56  ;;  %v11473_v60 = vmul.f32 0.03125, %v11457_v16  ;;  %v11509_v4 = vmul.f32 %v20623_v17, %v11495_v22 }
 0x9a1   : > { %v11508_v36 = vmul.f32 %v20623_v17, %v11494_v43 }
 0x9a2   : > { %v11481_v23 = vadd.f32 1e-05, %v11473_v60  ;;  %v20637_v26 = vadd.f32 %v14469_v15, %v11509_v4 }
 0x9a3   : > { %v20635_v7 = vadd.f32 %v14469_v15, %v11508_v36 }
 0x9a4   : > { %15867 = vrsqrt.f32 %v11481_v23 }
 0x9a5   : > { %15245 = vmatprep.mubr.msk.f32.mxu1 %vm1016_vm0, %v20635_v7 }
 0x9a6   : > { %15246 = vmatmul.mubr.msk.f32.vlgmr.msra.gmra.mrb[68].mxu1 %vm1016_vm0, %v20637_v26  ;;  %v11463_v2 = vpop.xlane.xlu0 %11462 }
 0x9a7   : > { %v11475_v32 = vmul.f32 0.03125, %v11463_v2  ;;  %v11460_v25 = vpop.xlane.xlu1 %11459  ;;  %15504 = vmatpush3.bf16.msra.mxu1 %v15501_v37 }
 0x9a8   : > { %v11474_v19 = vmul.f32 0.03125, %v11460_v25  ;;  %15506 = vmatprep.subr.bf16.mxu1 %v15505_v55 }
 0x9a9   : > { %v11483_v38 = vadd.f32 1e-05, %v11475_v32 }
 0x9aa   : > { %v15866_v24 = vpop.eup %15865  ;;  %v11482_v21 = vadd.f32 1e-05, %v11474_v19 }
 0x9ab   : > { %15869 = vrsqrt.f32 %v11483_v38  ;;  %v11496_v33 = vmul.f32 %v15866_v24, %v20557_v10  ;;  %15508 = vmatpush3.bf16.msra.mxu1 %v15505_v55 }
 0x9ac   : > { %15871 = vrsqrt.f32 %v11482_v21  ;;  %15310 = vmatprep.subr.mxu1 %v21543_v62 }
 0x9ad   : > { %v11510_v63 = vmul.f32 %v20623_v17, %v11496_v33 }
 0x9ae   : > { %v15868_v57 = vpop.eup %15867 }
 0x9af   : > { %v20646_v48 = vadd.f32 %v14469_v15, %v11510_v63  ;;  %v11497_v52 = vmul.f32 %v15868_v57, %v20561_v5 }
 0x9b1   : > { %15248 = vmatprep.mubr.msk.f32.mxu1 %vm1016_vm0, %v20646_v48  ;;  %v11511_v37 = vmul.f32 %v20623_v17, %v11497_v52 }
 0x9b2   : > { %v11469_v20 = vpop.xlane.xlu0 %11468 }
 0x9b3   : > { %v11477_v51 = vmul.f32 0.03125, %v11469_v20  ;;  %v11466_v11 = vpop.xlane.xlu1 %11465  ;;  %v20652_v10 = vadd.f32 %v14469_v15, %v11511_v37 }
 0x9b4   : > { %v11476_v41 = vmul.f32 0.03125, %v11466_v11 }
 0x9b5   : > { %v15870_v61 = vpop.eup %15869  ;;  %v11485_v47 = vadd.f32 1e-05, %v11477_v51  ;;  %15249 = vmatmul.mubr.msk.f32.gmra.mrb[70].mxu1 %vm1016_vm0, %v20652_v10 }
 0x9b6   : > { %v15872_v27 = vpop.eup %15871  ;;  %v11484_v35 = vadd.f32 1e-05, %v11476_v41  ;;  %v11499_v5 = vmul.f32 %v15870_v61, %v20567_v40 }
 0x9b7   : > { %15873 = vrsqrt.f32 %v11485_v47  ;;  %v11498_v44 = vmul.f32 %v15872_v27, %v20569_v14 }
 0x9b8   : > { %15875 = vrsqrt.f32 %v11484_v35  ;;  %v11513_v54 = vmul.f32 %v20623_v17, %v11499_v5 }
 0x9b9   : > { %v11512_v1 = vmul.f32 %v20623_v17, %v11498_v44 }
 0x9ba   : > { %v20662_v18 = vadd.f32 %v14469_v15, %v11513_v54 }
 0x9bb   : > { %v20660_v8 = vadd.f32 %v14469_v15, %v11512_v1 }
 0x9bd   : > { %15251 = vmatprep.mubr.msk.f32.mxu1 %vm1016_vm0, %v20660_v8 }
 0x9be   : > { %15252 = vmatmul.mubr.msk.f32.gmra.mrb[72].mxu1 %vm1016_vm0, %v20662_v18 }
 0x9c1   : > { %v15874_v53 = vpop.eup %15873 }
 0x9c2   : > { %v15876_v40 = vpop.eup %15875  ;;  %v11501_v30 = vmul.f32 %v15874_v53, %v20577_v28 }
 0x9c3   : > { %v11500_v14 = vmul.f32 %v15876_v40, %v20585_v46 }
 0x9c4   : > { %v11515_v42 = vmul.f32 %v20623_v17, %v11501_v30 }
 0x9c5   : > { %v11514_v12 = vmul.f32 %v20623_v17, %v11500_v14 }
 0x9c6   : > { %v20674_v39 = vadd.f32 %v14469_v15, %v11515_v42 }
 0x9c7   : > { %v20672_v31 = vadd.f32 %v14469_v15, %v11514_v12 }
 0x9c9   : > { %15254 = vmatprep.mubr.msk.f32.mxu1 %vm1016_vm0, %v20672_v31 }
 0x9ca   : > { %15255 = vmatmul.mubr.msk.f32.gmra.mrb[74].mxu1 %vm1016_vm0, %v20674_v39 }
 0x9cb   : > { %15293 = vmatprep.mubr.msk.f32.mxu1 %vm1016_vm0, %v20512_v45  ;;  %v11685_v45 = vld [vmem:[%s21589_s29 + $0x38] sm:$0xff] }
 0x9ce   : > { %15294 = vmatmul.mubr.msk.f32.vlgmr.msra.gmra.mrb[76].mxu1 %vm1016_vm0, %v20508_v34  ;;  %v11684_v34 = vld [vmem:[%s21589_s29 + $0x30] sm:$0xff] }
 0x9cf   : > { %15296 = vmatprep.mubr.msk.f32.mxu1 %vm1016_vm0, %v20518_v59  ;;  %v15497_v59 = vpack.c.bf16 %v11685_v45, %v11684_v34 }
 0x9d1   : > { %15498 = vmatprep.subr.bf16.mxu0 %v15497_v59 }
 0x9d2   : > { %15297 = vmatmul.mubr.msk.f32.gmra.mrb[78].mxu1 %vm1016_vm0, %v20522_v6  ;;  %15500 = vmatpush3.bf16.msra.mxu0 %v15497_v59  ;;  %v14470_v6 = vld [vmem:[#allocation16] ss:$0 sm:$0xff] }
 0x9d3   : > { %15299 = vmatprep.mubr.msk.f32.mxu1 %vm1016_vm0, %v20532_v0  ;;  %15305 = vmatprep.subr.mxu0 %v21543_v62 }
 0x9d6   : > { %15300 = vmatmul.mubr.msk.f32.gmra.mrb[80].mxu1 %vm1016_vm0, %v20528_v58 }
 0x9d7   : > { %15302 = vmatprep.mubr.msk.f32.mxu1 %vm1016_vm0, %v20542_v49 }
 0x9da   : > { %15303 = vmatmul.mubr.msk.f32.gmra.mrb[82].mxu1 %vm1016_vm0, %v20538_v9 }
 0x9db   : > { %15312 = vmatprep.mubr.msk.f32.mxu1 %vm16478_vm1, %v21543_v62 }
 0xa79   : > { %v15247_v58 = vpop.f32.mrb[68].mxu1 }
 0xa7a   : > { %v11637_v0 = vadd.f32 %v15247_v58, %v14470_v6  ;;  %v11631_v9 = vpop.f32.mrb[69].mxu1 }
 0xa7b   : > { %v11632_v49 = vadd.f32 %v14470_v6, %v11631_v9 }
 0xa7c   : > { %v11671_v46 = vmax.f32 %v11637_v0, 0.0 }
 0xa7d   : > { %v11670_v28 = vmax.f32 %v11632_v49, 0.0 }
 0xa7f   : > { %15273 = vmatprep.mubr.msk.f32.mxu0 %vm11693_vm5, %v11670_v28 }
 0xa80   : > { %15274 = vmatmul.mubr.msk.f32.vlgmr.msra.gmra.mrb[92].mxu0 %vm11693_vm5, %v11671_v46 }
 0xa88   : > { %v15250_v17 = vpop.f32.mrb[70].mxu1 }
 0xa89   : > { %v11647_v22 = vadd.f32 %v15250_v17, %v14470_v6  ;;  %v11641_v56 = vpop.f32.mrb[71].mxu1 }
 0xa8a   : > { %v11642_v16 = vadd.f32 %v14470_v6, %v11641_v56 }
 0xa8b   : > { %v11673_v60 = vmax.f32 %v11647_v22, 0.0 }
 0xa8c   : > { %v11672_v43 = vmax.f32 %v11642_v16, 0.0 }
 0xa8e   : > { %15276 = vmatprep.mubr.msk.f32.mxu0 %vm11693_vm5, %v11672_v43 }
 0xa8f   : > { %15277 = vmatmul.mubr.msk.f32.gmra.mrb[94].mxu0 %vm11693_vm5, %v11673_v60 }
 0xa91   : > { %v15253_v15 = vpop.f32.mrb[72].mxu1 }
 0xa92   : > { %v11657_v4 = vadd.f32 %v15253_v15, %v14470_v6  ;;  %v11651_v36 = vpop.f32.mrb[73].mxu1 }
 0xa93   : > { %v11652_v13 = vadd.f32 %v14470_v6, %v11651_v36 }
 0xa94   : > { %v11675_v23 = vmax.f32 %v11657_v4, 0.0  ;;  %v20731_v4 = vld [vmem:[#allocation8] sm:$0xff] }
 0xa95   : > { %v11674_v50 = vmax.f32 %v11652_v13, 0.0 }
 0xa97   : > { %15279 = vmatprep.mubr.msk.f32.mxu0 %vm11693_vm5, %v11674_v50 }
 0xa98   : > { %15280 = vmatmul.mubr.msk.f32.gmra.mrb[96].mxu0 %vm11693_vm5, %v11675_v23 }
 0xa9d   : > { %v15256_v55 = vpop.f32.mrb[74].mxu1 }
 0xa9e   : > { %v11667_v2 = vadd.f32 %v15256_v55, %v14470_v6  ;;  %v11661_v32 = vpop.f32.mrb[75].mxu1 }
 0xa9f   : > { %v11662_v25 = vadd.f32 %v14470_v6, %v11661_v32  ;;  %v12789_v32 = vld [vmem:[#allocation22] sm:$0xff] }
 0xaa0   : > { %v11677_v24 = vmax.f32 %v11667_v2, 0.0 }
 0xaa1   : > { %v11676_v19 = vmax.f32 %v11662_v25, 0.0  ;;  %v15295_v38 = vpop.f32.mrb[76].mxu1  ;;  %v12790_v25 = vld [vmem:[#allocation22 + $0x8] sm:$0xff] }
 0xaa2   : > { %v12036_v21 = vpop.f32.mrb[77].mxu1 }
 0xaa3   : > { %15282 = vmatprep.mubr.msk.f32.mxu0 %vm11693_vm5, %v11676_v19  ;;  %v15509_v19 = vpack.c.bf16 %v12790_v25, %v12789_v32 }
 0xaa4   : > { %15283 = vmatmul.mubr.msk.f32.gmra.mrb[98].mxu0 %vm11693_vm5, %v11677_v24  ;;  %v12792_v24 = vld [vmem:[#allocation22 + $0x18] sm:$0xff] }
 0xaa5   : > { %v15298_v33 = vpop.f32.mrb[78].mxu1  ;;  %15307 = vmatprep.mubr.msk.f32.mxu0 %vm16478_vm1, %v21543_v62 }
 0xaa6   : > { %v12091_v63 = vcombine.low %v15295_v38, %v15298_v33  ;;  %v12092_v57 = vcombine.high %v15295_v38, %v15298_v33  ;;  %v12046_v52 = vpop.f32.mrb[79].mxu1  ;;  %v12791_v38 = vld [vmem:[#allocation22 + $0x10] sm:$0xff]  ;;  %v14479_v33 = vld [vmem:[#allocation17] ss:$0 sm:$0xff] }
 0xaa7   : > { %v12075_v37 = vcombine.low %v12036_v21, %v12046_v52  ;;  %v12076_v20 = vcombine.high %v12036_v21, %v12046_v52  ;;  %v15513_v21 = vpack.c.bf16 %v12792_v24, %v12791_v38 }
 0xaa8   : > { %v12099_v51 = vrot.slane %v12091_v63, %v21586_v3  ;;  %v12106_v11 = vrot.slane %v12092_v57, %v21586_v3 }
 0xaa9   : > { %v12083_v41 = vrot.slane %v12075_v37, %v21586_v3  ;;  %v12090_v61 = vrot.slane %v12076_v20, %v21586_v3  ;;  %v15301_v47 = vpop.f32.mrb[80].mxu1 }
 0xaaa   : > { %v12056_v27 = vpop.f32.mrb[81].mxu1 }
 0xaab   : > { %v12139_v35 = vcombine.low %v12083_v41, %v12099_v51  ;;  %v12140_v5 = vcombine.high %v12083_v41, %v12099_v51  ;;  %v12155_v44 = vcombine.low %v12090_v61, %v12106_v11  ;;  %v12156_v54 = vcombine.high %v12090_v61, %v12106_v11 }
 0xaad   : > { %v15304_v1 = vpop.f32.mrb[82].mxu1  ;;  %v12147_v49 = vrot.slane %v12139_v35, %v17360_v29  ;;  %v12154_v28 = vrot.slane %v12140_v5, %v17360_v29  ;;  %v12163_v16 = vrot.slane %v12155_v44, %v17360_v29  ;;  %v12170_v43 = vrot.slane %v12156_v54, %v17360_v29 }
 0xaae   : > { %v12123_v53 = vcombine.low %v15301_v47, %v15304_v1  ;;  %v12124_v40 = vcombine.high %v15301_v47, %v15304_v1  ;;  %v12066_v30 = vpop.f32.mrb[83].mxu1 }
 0xaaf   : > { %v12107_v14 = vcombine.low %v12056_v27, %v12066_v30  ;;  %v12108_v42 = vcombine.high %v12056_v27, %v12066_v30 }
 0xab0   : > { %v12131_v12 = vrot.slane %v12123_v53, %v21586_v3  ;;  %v12138_v34 = vrot.slane %v12124_v40, %v21586_v3 }
 0xab1   : > { %v12115_v45 = vrot.slane %v12107_v14, %v21586_v3  ;;  %v12122_v59 = vrot.slane %v12108_v42, %v21586_v3 }
 0xab3   : > { %v12171_v6 = vcombine.low %v12115_v45, %v12131_v12  ;;  %v12172_v58 = vcombine.high %v12115_v45, %v12131_v12  ;;  %v12187_v0 = vcombine.low %v12122_v59, %v12138_v34  ;;  %v12188_v9 = vcombine.high %v12122_v59, %v12138_v34 }
 0xab5   : > { %v12179_v46 = vrot.slane %v12171_v6, %v17360_v29  ;;  %v12186_v17 = vrot.slane %v12172_v58, %v17360_v29  ;;  %v12195_v22 = vrot.slane %v12187_v0, %v17360_v29  ;;  %v12202_v56 = vrot.slane %v12188_v9, %v17360_v29  ;;  %v14498_v58 = vld [vmem:[%s21590_s1] ss:$0 sm:$0xff]  ;;  %s21594_s1 = sld [smem:[#allocation90_spill]] }
 0xab7   : > { %v12203_v60 = vcombine.low %v12147_v49, %v12179_v46  ;;  %v12204_v15 = vcombine.high %v12147_v49, %v12179_v46  ;;  %v12205_v36 = vcombine.low %v12154_v28, %v12186_v17  ;;  %v12206_v13 = vcombine.high %v12154_v28, %v12186_v17 }
 0xab8   : > { %v12207_v50 = vcombine.low %v12163_v16, %v12195_v22  ;;  %v12208_v23 = vcombine.high %v12163_v16, %v12195_v22  ;;  %v12209_v55 = vcombine.low %v12170_v43, %v12202_v56  ;;  %v12210_v2 = vcombine.high %v12170_v43, %v12202_v56 }
 0xab9   : > { %15306 = vmatpush3.msra.mxu0 %v12203_v60  ;;  %15311 = vmatpush3.msra.mxu1 %v12204_v15 }
 0xaba   : > { %15308 = vmatmul.mubr.msk.f32.vlgmr.msra.gmra.mrb[100].mxu0 %vm4916_vm2, %v20731_v4  ;;  %15313 = vmatmul.mubr.msk.f32.vlgmr.msra.gmra.mrb[84].mxu1 %vm4916_vm2, %v20731_v4 }
 0xabb   : > { %15315 = vmatprep.subr.mxu0 %v21543_v62  ;;  %15320 = vmatprep.subr.mxu1 %v21543_v62  ;;  %s21042_s26 = scalar_lea.hbm %s21594_s1, %s14550_s8 }
 0xabc   : > { %15316 = vmatpush3.msra.mxu0 %v12205_v36  ;;  %15321 = vmatpush3.msra.mxu1 %v12206_v13 }
 0xabd   : > { %15317 = vmatprep.mubr.msk.f32.mxu0 %vm16478_vm1, %v21543_v62  ;;  %15322 = vmatprep.mubr.msk.f32.mxu1 %vm16478_vm1, %v21543_v62 }
 0xabe   : > { %15325 = vmatprep.subr.mxu0 %v21543_v62  ;;  %15330 = vmatprep.subr.mxu1 %v21543_v62 }
 0xabf   : > { %15318 = vmatmul.mubr.msk.f32.vlgmr.msra.gmra.mrb[102].mxu0 %vm4916_vm2, %v20731_v4  ;;  %15323 = vmatmul.mubr.msk.f32.vlgmr.msra.gmra.mrb[86].mxu1 %vm4916_vm2, %v20731_v4 }
 0xac0   : > { %15326 = vmatpush3.msra.mxu0 %v12207_v50  ;;  %15331 = vmatpush3.msra.mxu1 %v12208_v23 }
 0xac1   : > { %15327 = vmatprep.mubr.msk.f32.mxu0 %vm16478_vm1, %v21543_v62  ;;  %15332 = vmatprep.mubr.msk.f32.mxu1 %vm16478_vm1, %v21543_v62 }
 0xac2   : > { %15335 = vmatprep.subr.mxu0 %v21543_v62  ;;  %15340 = vmatprep.subr.mxu1 %v21543_v62 }
 0xac3   : > { %15328 = vmatmul.mubr.msk.f32.vlgmr.msra.gmra.mrb[104].mxu0 %vm4916_vm2, %v20731_v4  ;;  %15333 = vmatmul.mubr.msk.f32.vlgmr.msra.gmra.mrb[88].mxu1 %vm4916_vm2, %v20731_v4 }
 0xac4   : > { %15336 = vmatpush3.msra.mxu0 %v12209_v55  ;;  %15341 = vmatpush3.msra.mxu1 %v12210_v2 }
 0xac5   : > { %15337 = vmatprep.mubr.msk.f32.mxu0 %vm16478_vm1, %v21543_v62  ;;  %15342 = vmatprep.mubr.msk.f32.mxu1 %vm16478_vm1, %v21543_v62 }
 0xac6   : > { %15365 = vmatprep.subr.mxu1 %v21543_v62  ;;  %15510 = vmatprep.subr.bf16.mxu0 %v15509_v19 }
 0xac7   : > { %15338 = vmatmul.mubr.msk.f32.vlgmr.msra.gmra.mrb[106].mxu0 %vm4916_vm2, %v20731_v4  ;;  %15343 = vmatmul.mubr.msk.f32.vlgmr.msra.gmra.mrb[90].mxu1 %vm4916_vm2, %v20731_v4 }
 0xac8   : > { %15367 = vmatprep.mubr.msk.f32.mxu1 %vm16478_vm1, %v21543_v62  ;;  %15512 = vmatpush3.bf16.msra.mxu0 %v15509_v19 }
 0xac9   : > { %15514 = vmatprep.subr.bf16.mxu0 %v15513_v21 }
 0xacc   : > { %15516 = vmatpush3.bf16.msra.mxu0 %v15513_v21 }
 0xacd   : > { %15390 = vmatprep.subr.mxu0 %v21543_v62 }
 0xb53   : > { %v15275_v63 = vpop.f32.mrb[92].mxu0 }
 0xb54   : > { %v11790_v57 = vadd.f32 %v15275_v63, %v14479_v33  ;;  %v11784_v52 = vpop.f32.mrb[93].mxu0 }
 0xb55   : > { %v11785_v37 = vadd.f32 %v14479_v33, %v11784_v52 }
 0xb56   : > { %v20772_v20 = vadd.f32 %v11790_v57, %v20637_v26 }
 0xb57   : > { %v20775_v51 = vadd.f32 %v11785_v37, %v20635_v7 }
 0xb58   : > { %v11836_v11 = vsel %vm1016_vm0, %v20772_v20, 0.0 }
 0xb59   : > { %11837 = vadd.xlane.f32.xlu0 %v11836_v11  ;;  %v11833_v41 = vsel %vm1016_vm0, %v20775_v51, 0.0 }
 0xb5a   : > { %11834 = vadd.xlane.f32.xlu1 %v11833_v41 }
 0xb62   : > { %v15278_v61 = vpop.f32.mrb[94].mxu0 }
 0xb63   : > { %v11800_v47 = vadd.f32 %v15278_v61, %v14479_v33  ;;  %v11794_v27 = vpop.f32.mrb[95].mxu0 }
 0xb64   : > { %v11795_v35 = vadd.f32 %v14479_v33, %v11794_v27 }
 0xb65   : > { %v20782_v5 = vadd.f32 %v11800_v47, %v20652_v10 }
 0xb66   : > { %v20785_v26 = vadd.f32 %v11795_v35, %v20646_v48 }
 0xb67   : > { %v11842_v7 = vsel %vm1016_vm0, %v20782_v5, 0.0 }
 0xb68   : > { %11843 = vadd.xlane.f32.xlu0 %v11842_v7  ;;  %v11839_v44 = vsel %vm1016_vm0, %v20785_v26, 0.0 }
 0xb69   : > { %11840 = vadd.xlane.f32.xlu1 %v11839_v44 }
 0xb6b   : > { %v15281_v54 = vpop.f32.mrb[96].mxu0 }
 0xb6c   : > { %v11810_v1 = vadd.f32 %v15281_v54, %v14479_v33  ;;  %v11804_v53 = vpop.f32.mrb[97].mxu0 }
 0xb6d   : > { %v11805_v40 = vadd.f32 %v14479_v33, %v11804_v53 }
 0xb6e   : > { %v20792_v30 = vadd.f32 %v11810_v1, %v20662_v18 }
 0xb6f   : > { %v20795_v10 = vadd.f32 %v11805_v40, %v20660_v8 }
 0xb70   : > { %v11848_v48 = vsel %vm1016_vm0, %v20792_v30, 0.0 }
 0xb71   : > { %11849 = vadd.xlane.f32.xlu0 %v11848_v48  ;;  %v11845_v14 = vsel %vm1016_vm0, %v20795_v10, 0.0 }
 0xb72   : > { %11846 = vadd.xlane.f32.xlu1 %v11845_v14 }
 0xb77   : > { %v15284_v42 = vpop.f32.mrb[98].mxu0 }
 0xb78   : > { %v11820_v12 = vadd.f32 %v15284_v42, %v14479_v33  ;;  %v11814_v34 = vpop.f32.mrb[99].mxu0 }
 0xb79   : > { %v11815_v45 = vadd.f32 %v14479_v33, %v11814_v34 }
 0xb7a   : > { %v20802_v59 = vadd.f32 %v11820_v12, %v20674_v39 }
 0xb7b   : > { %v20805_v18 = vadd.f32 %v11815_v45, %v20672_v31 }
 0xb7c   : > { %v11854_v8 = vsel %vm1016_vm0, %v20802_v59, 0.0 }
 0xb7d   : > { %11855 = vadd.xlane.f32.xlu0 %v11854_v8  ;;  %v11851_v6 = vsel %vm1016_vm0, %v20805_v18, 0.0 }
 0xb7e   : > { %11852 = vadd.xlane.f32.xlu1 %v11851_v6 }
 0xb8d   : > { %v12287_v0 = vpop.f32.mrb[100].mxu0  ;;  %v12357_v9 = vpop.f32.mrb[84].mxu1 }
 0xb8e   : > { %v12288_v49 = vadd.f32 %v14498_v58, %v12287_v0  ;;  %v12358_v39 = vadd.f32 %v14498_v58, %v12357_v9  ;;  %v15309_v28 = vpop.f32.mrb[101].mxu0  ;;  %v15314_v46 = vpop.f32.mrb[85].mxu1 }
 0xb90   : > { %v12781_v31 = vmax.f32 %v12288_v49, 0.0  ;;  %v12782_v17 = vmax.f32 %v12358_v39, 0.0 }
 0xb92   : > { %15353 = vmatprep.mubr.msk.f32.mxu0 %vm1016_vm0, %v12781_v31  ;;  %v12427_v22 = vpop.f32.mrb[102].mxu0  ;;  %v12497_v56 = vpop.f32.mrb[86].mxu1 }
 0xb93   : > { %15354 = vmatmul.mubr.msk.f32.vlgmr.msra.gmra.mrb[108].mxu0 %vm1016_vm0, %v12782_v17  ;;  %v12428_v16 = vadd.f32 %v14498_v58, %v12427_v22  ;;  %v12498_v43 = vadd.f32 %v14498_v58, %v12497_v56  ;;  %v15319_v60 = vpop.f32.mrb[103].mxu0  ;;  %v15324_v15 = vpop.f32.mrb[87].mxu1 }
 0xb95   : > { %v12783_v36 = vmax.f32 %v12428_v16, 0.0  ;;  %v12784_v13 = vmax.f32 %v12498_v43, 0.0 }
 0xb96   : > { %v12567_v50 = vpop.f32.mrb[104].mxu0  ;;  %v12637_v23 = vpop.f32.mrb[88].mxu1 }
 0xb97   : > { %15356 = vmatprep.mubr.msk.f32.mxu0 %vm1016_vm0, %v12783_v36  ;;  %v12568_v55 = vadd.f32 %v14498_v58, %v12567_v50  ;;  %v15329_v2 = vpop.f32.mrb[105].mxu0  ;;  %v12638_v32 = vadd.f32 %v14498_v58, %v12637_v23  ;;  %v15334_v25 = vpop.f32.mrb[89].mxu1 }
 0xb98   : > { %15357 = vmatmul.mubr.msk.f32.gmra.mrb[110].mxu0 %vm1016_vm0, %v12784_v13  ;;  %v13630_v25 = vld [vmem:[#allocation25 + $0x8] sm:$0xff] }
 0xb99   : > { %v12785_v19 = vmax.f32 %v12568_v55, 0.0  ;;  %v12786_v38 = vmax.f32 %v12638_v32, 0.0  ;;  %v13629_v32 = vld [vmem:[#allocation25] sm:$0xff] }
 0xb9a   : > { %v12707_v24 = vpop.f32.mrb[106].mxu0  ;;  %v12777_v21 = vpop.f32.mrb[90].mxu1 }
 0xb9b   : > { %v12708_v33 = vadd.f32 %v14498_v58, %v12707_v24  ;;  %v12778_v63 = vadd.f32 %v14498_v58, %v12777_v21  ;;  %15359 = vmatprep.mubr.msk.f32.mxu0 %vm1016_vm0, %v12785_v19  ;;  %v15339_v57 = vpop.f32.mrb[107].mxu0  ;;  %v15344_v52 = vpop.f32.mrb[91].mxu1  ;;  %v13631_v19 = vld [vmem:[#allocation25 + $0x10] sm:$0xff]  ;;  %v13632_v24 = vld [vmem:[#allocation25 + $0x18] sm:$0xff] }
 0xb9c   : > { %15360 = vmatmul.mubr.msk.f32.gmra.mrb[112].mxu0 %vm1016_vm0, %v12786_v38  ;;  %v15517_v38 = vpack.c.bf16 %v13630_v25, %v13629_v32  ;;  %v15521_v21 = vpack.c.bf16 %v13632_v24, %v13631_v19 }
 0xb9d   : > { %v12787_v37 = vmax.f32 %v12708_v33, 0.0  ;;  %v12788_v11 = vmax.f32 %v12778_v63, 0.0  ;;  %v13625_v33 = vld [vmem:[#allocation23] sm:$0xff]  ;;  %v13626_v63 = vld [vmem:[#allocation23 + $0x8] sm:$0xff] }
 0xb9e   : > { %v20906_v57 = vpack.c.bf16 %v13626_v63, %v13625_v33 }
 0xb9f   : > { %15362 = vmatprep.mubr.msk.f32.mxu0 %vm1016_vm0, %v12787_v37 }
 0xba0   : > { %15363 = vmatmul.mubr.msk.f32.gmra.mrb[114].mxu0 %vm1016_vm0, %v12788_v11  ;;  %v14515_v11 = vld [vmem:[%s21591_s11] ss:$0 sm:$0xff]  ;;  %s16483_s11 = smov [#allocation26]  }
 0xba1   : > { %15392 = vmatprep.mubr.msk.f32.mxu0 %vm16478_vm1, %v21543_v62  ;;  %s16363_s0 = sshll.u32 %s16483_s11, 4  ;;  %s16364_s0 = int_to_ptr.vmem [resolvable:$false] %s16363_s0 }
 0xba2   : > { %s16365_s10 = scalar_lea.vmem %s16364_s0, 2048  ;;  %p16366_p3 = scmp.lt.s32.totalorder %s21044_s24, %s16364_s0 }
 0xba3   : > { %p16367_p5 = scmp.lt.s32.totalorder %s16365_s10, %s16359_s5 }
 0xba5   : > { %p16368_p9 = por %p16367_p5, %p16366_p3 }
 0xba7   : > { %p16369_p8 = pnand %p16368_p9, %p16362_p0 }
 0xbe6   : > { %v11838_v41 = vpop.xlane.xlu0 %11837 }
 0xbe7   : > { %v11858_v61 = vmul.f32 0.03125, %v11838_v41  ;;  %v11835_v47 = vpop.xlane.xlu1 %11834 }
 0xbe8   : > { %v11857_v27 = vmul.f32 0.03125, %v11835_v47 }
 0xbe9   : > { %v20825_v35 = vsub.f32 %v20772_v20, %v11858_v61 }
 0xbea   : > { %v20828_v7 = vsub.f32 %v20775_v51, %v11857_v27 }
 0xbeb   : > { %v11874_v44 = vmul.f32 %v20825_v35, %v20825_v35 }
 0xbec   : > { %v11873_v54 = vmul.f32 %v20828_v7, %v20828_v7 }
 0xbed   : > { %v11884_v1 = vsel %vm1016_vm0, %v11874_v44, 0.0 }
 0xbee   : > { %11885 = vadd.xlane.f32.xlu0 %v11884_v1  ;;  %v11881_v53 = vsel %vm1016_vm0, %v11873_v54, 0.0 }
 0xbef   : > { %11882 = vadd.xlane.f32.xlu1 %v11881_v53 }
 0xbf5   : > { %v11844_v40 = vpop.xlane.xlu0 %11843 }
 0xbf6   : > { %v11860_v48 = vmul.f32 0.03125, %v11844_v40  ;;  %v11841_v14 = vpop.xlane.xlu1 %11840 }
 0xbf7   : > { %v11859_v20 = vmul.f32 0.03125, %v11841_v14 }
 0xbf8   : > { %v20837_v42 = vsub.f32 %v20782_v5, %v11860_v48 }
 0xbf9   : > { %v20840_v51 = vsub.f32 %v20785_v26, %v11859_v20 }
 0xbfa   : > { %v11876_v12 = vmul.f32 %v20837_v42, %v20837_v42 }
 0xbfb   : > { %v11875_v34 = vmul.f32 %v20840_v51, %v20840_v51 }
 0xbfc   : > { %v11890_v45 = vsel %vm1016_vm0, %v11876_v12, 0.0 }
 0xbfd   : > { %11891 = vadd.xlane.f32.xlu0 %v11890_v45  ;;  %v11887_v8 = vsel %vm1016_vm0, %v11875_v34, 0.0 }
 0xbfe   : > { %11888 = vadd.xlane.f32.xlu1 %v11887_v8  ;;  %v11850_v6 = vpop.xlane.xlu0 %11849 }
 0xbff   : > { %v11862_v58 = vmul.f32 0.03125, %v11850_v6  ;;  %v11847_v0 = vpop.xlane.xlu1 %11846 }
 0xc00   : > { %v11861_v5 = vmul.f32 0.03125, %v11847_v0 }
 0xc01   : > { %v20849_v9 = vsub.f32 %v20792_v30, %v11862_v58 }
 0xc02   : > { %v20852_v26 = vsub.f32 %v20795_v10, %v11861_v5 }
 0xc03   : > { %v11878_v49 = vmul.f32 %v20849_v9, %v20849_v9 }
 0xc04   : > { %v11877_v39 = vmul.f32 %v20852_v26, %v20852_v26 }
 0xc05   : > { %v11896_v28 = vsel %vm1016_vm0, %v11878_v49, 0.0 }
 0xc06   : > { %11897 = vadd.xlane.f32.xlu0 %v11896_v28  ;;  %v11893_v46 = vsel %vm1016_vm0, %v11877_v39, 0.0 }
 0xc07   : > { %11894 = vadd.xlane.f32.xlu1 %v11893_v46 }
 0xc0a   : > { %v11856_v31 = vpop.xlane.xlu0 %11855 }
 0xc0b   : > { %v11864_v17 = vmul.f32 0.03125, %v11856_v31  ;;  %v11853_v22 = vpop.xlane.xlu1 %11852 }
 0xc0c   : > { %v11863_v30 = vmul.f32 0.03125, %v11853_v22 }
 0xc0d   : > { %v20861_v56 = vsub.f32 %v20802_v59, %v11864_v17 }
 0xc0e   : > { %v20864_v10 = vsub.f32 %v20805_v18, %v11863_v30 }
 0xc0f   : > { %v11880_v16 = vmul.f32 %v20861_v56, %v20861_v56 }
 0xc10   : > { %v11879_v43 = vmul.f32 %v20864_v10, %v20864_v10 }
 0xc11   : > { %v11902_v60 = vsel %vm1016_vm0, %v11880_v16, 0.0 }
 0xc12   : > { %11903 = vadd.xlane.f32.xlu0 %v11902_v60  ;;  %v11899_v15 = vsel %vm1016_vm0, %v11879_v43, 0.0 }
 0xc13   : > { %11900 = vadd.xlane.f32.xlu1 %v11899_v15 }
 0xc66   : > { %v15355_v36 = vpop.f32.mrb[108].mxu0 }
 0xc67   : > { %v12883_v13 = vpop.f32.mrb[109].mxu0 }
 0xc68   : > { %15366 = vmatpush3.msra.mxu1 %v12883_v13 }
 0xc69   : > { %15368 = vmatmul.mubr.msk.f32.vlgmr.msra.gmra.mrb[92].mxu1 %vm4916_vm2, %v20731_v4  ;;  %15370 = vmatprep.subr.mxu1 %v21543_v62 }
 0xc6a   : > { %15371 = vmatpush3.msra.mxu1 %v15355_v36  ;;  %15372 = vmatprep.mubr.msk.f32.mxu1 %vm16478_vm1, %v21543_v62 }
 0xc6b   : > { %v15358_v59 = vpop.f32.mrb[110].mxu0  ;;  %15375 = vmatprep.subr.mxu1 %v21543_v62 }
 0xc6c   : > { %v12893_v18 = vpop.f32.mrb[111].mxu0 }
 0xc6d   : > { %15373 = vmatmul.mubr.msk.f32.vlgmr.msra.gmra.mrb[94].mxu1 %vm4916_vm2, %v20731_v4 }
 0xc6e   : > { %15376 = vmatpush3.msra.mxu1 %v12893_v18  ;;  %15377 = vmatprep.mubr.msk.f32.mxu1 %vm16478_vm1, %v21543_v62 }
 0xc6f   : > { %15380 = vmatprep.subr.mxu1 %v21543_v62  ;;  %v15361_v50 = vpop.f32.mrb[112].mxu0 }
 0xc70   : > { %v12903_v23 = vpop.f32.mrb[113].mxu0  ;;  %15391 = vmatpush3.msra.mxu0 %v15361_v50 }
 0xc71   : > { %15378 = vmatmul.mubr.msk.f32.vlgmr.msra.gmra.mrb[96].mxu1 %vm4916_vm2, %v20731_v4  ;;  %15393 = vmatmul.mubr.msk.f32.vlgmr.msra.gmra.mrb[116].mxu0 %vm4916_vm2, %v20731_v4 }
 0xc72   : > { %15381 = vmatpush3.msra.mxu1 %v15358_v59  ;;  %15382 = vmatprep.mubr.msk.f32.mxu1 %vm16478_vm1, %v21543_v62 }
 0xc73   : > { %15385 = vmatprep.subr.mxu1 %v21543_v62  ;;  %v15364_v55 = vpop.f32.mrb[114].mxu0  ;;  %15400 = vmatprep.subr.mxu0 %v21543_v62 }
 0xc74   : > { %v12913_v2 = vpop.f32.mrb[115].mxu0  ;;  %15401 = vmatpush3.msra.mxu0 %v15364_v55  ;;  %15402 = vmatprep.mubr.msk.f32.mxu0 %vm16478_vm1, %v21543_v62 }
 0xc75   : > { %15383 = vmatmul.mubr.msk.f32.vlgmr.msra.gmra.mrb[98].mxu1 %vm4916_vm2, %v20731_v4  ;;  %15403 = vmatmul.mubr.msk.f32.vlgmr.msra.gmra.mrb[118].mxu0 %vm4916_vm2, %v20731_v4 }
 0xc76   : > { %15386 = vmatpush3.msra.mxu1 %v12903_v23  ;;  %15387 = vmatprep.mubr.msk.f32.mxu1 %vm16478_vm1, %v21543_v62 }
 0xc77   : > { %15395 = vmatprep.subr.mxu1 %v21543_v62 }
 0xc79   : > { %15388 = vmatmul.mubr.msk.f32.vlgmr.msra.gmra.mrb[100].mxu1 %vm4916_vm2, %v20731_v4 }
 0xc7a   : > { %15396 = vmatpush3.msra.mxu1 %v12913_v2  ;;  %15397 = vmatprep.mubr.msk.f32.mxu1 %vm16478_vm1, %v21543_v62 }
 0xc7b   : > { %15518 = vmatprep.subr.bf16.mxu1 %v15517_v38  ;;  %v11886_v41 = vpop.xlane.xlu0 %11885 }
 0xc7c   : > { %v11883_v53 = vpop.xlane.xlu1 %11882  ;;  %v11906_v5 = vmul.f32 0.03125, %v11886_v41 }
 0xc7d   : > { %15398 = vmatmul.mubr.msk.f32.vlgmr.msra.gmra.mrb[102].mxu1 %vm4916_vm2, %v20731_v4  ;;  %v11905_v17 = vmul.f32 0.03125, %v11883_v53 }
 0xc7e   : > { %15520 = vmatpush3.bf16.msra.mxu1 %v15517_v38  ;;  %v11914_v13 = vadd.f32 1e-05, %v11906_v5 }
 0xc7f   : > { %15522 = vmatprep.subr.bf16.mxu1 %v15521_v21  ;;  %v11913_v32 = vadd.f32 1e-05, %v11905_v17 }
 0xc80   : > { %15877 = vrsqrt.f32 %v11914_v13 }
 0xc81   : > { %15879 = vrsqrt.f32 %v11913_v32 }
 0xc82   : > { %15524 = vmatpush3.bf16.msra.mxu1 %v15521_v21 }
 0xc83   : > { %15526 = vmatprep.subr.bf16.mxu1 %v20906_v57 }
 0xc8a   : > { %v11892_v40 = vpop.xlane.xlu0 %11891 }
 0xc8b   : > { %v11889_v49 = vpop.xlane.xlu1 %11888  ;;  %v11908_v22 = vmul.f32 0.03125, %v11892_v40 }
 0xc8c   : > { %v11907_v59 = vmul.f32 0.03125, %v11889_v49 }
 0xc8d   : > { %v11916_v38 = vadd.f32 1e-05, %v11908_v22 }
 0xc8f   : > { %15881 = vrsqrt.f32 %v11916_v38 }
 0xc93   : > { %v11898_v25 = vpop.xlane.xlu0 %11897 }
 0xc94   : > { %v11895_v18 = vpop.xlane.xlu1 %11894 }
 0xc95   : > { %v11909_v24 = vmul.f32 0.03125, %v11895_v18 }
 0xd3c   : > { %v12995_v62 = vpop.f32.mrb[92].mxu1 }
 0xd3d   : > { %v15369_v52 = vpop.f32.mrb[93].mxu1  ;;  %v12996_v27 = vadd.f32 %v14515_v11, %v12995_v62  ;;  %v11915_v62 = vadd.f32 1e-05, %v11907_v59 }
 0xd3e   : > { %v11910_v52 = vmul.f32 0.03125, %v11898_v25  ;;  %v14489_v25 = vld [vmem:[#allocation20] ss:$0 sm:$0xff] }
 0xd3f   : > { %15883 = vrsqrt.f32 %v11915_v62 }
 0xd40   : > { %v13065_v37 = vpop.f32.mrb[94].mxu1 }
 0xd41   : > { %v15374_v4 = vpop.f32.mrb[95].mxu1  ;;  %v13066_v45 = vadd.f32 %v14515_v11, %v13065_v37  ;;  %v11901_v37 = vpop.xlane.xlu1 %11900 }
 0xd42   : > { %v11911_v53 = vmul.f32 0.03125, %v11901_v37 }
 0xd44   : > { %v13135_v61 = vpop.f32.mrb[96].mxu1  ;;  %v13345_v47 = vpop.f32.mrb[116].mxu0  ;;  %v11919_v49 = vadd.f32 1e-05, %v11911_v53 }
 0xd45   : > { %v13136_v44 = vadd.f32 %v14515_v11, %v13135_v61  ;;  %v15379_v54 = vpop.f32.mrb[97].mxu1  ;;  %v15394_v1 = vpop.f32.mrb[117].mxu0  ;;  %v13346_v20 = vadd.f32 %v14515_v11, %v13345_v47  ;;  %v11917_v61 = vadd.f32 1e-05, %v11909_v24 }
 0xd46   : > { %v11904_v47 = vpop.xlane.xlu0 %11903 }
 0xd47   : > { %v13489_v48 = vcombine.low %v12996_v27, %v13136_v44  ;;  %v13490_v14 = vcombine.high %v12996_v27, %v13136_v44  ;;  %15885 = vrsqrt.f32 %v11917_v61 }
 0xd48   : > { %v13205_v12 = vpop.f32.mrb[98].mxu1  ;;  %v13485_v34 = vpop.f32.mrb[118].mxu0 }
 0xd49   : > { %v13206_v8 = vadd.f32 %v14515_v11, %v13205_v12  ;;  %v15384_v6 = vpop.f32.mrb[99].mxu1  ;;  %v13486_v58 = vadd.f32 %v14515_v11, %v13485_v34  ;;  %v15404_v0 = vpop.f32.mrb[119].mxu0  ;;  %v13497_v16 = vrot.slane %v13489_v48, %v21586_v3  ;;  %v13504_v43 = vrot.slane %v13490_v14, %v21586_v3  ;;  %v13627_v12 = vld [vmem:[#allocation23 + $0x10] sm:$0xff]  ;;  %v13628_v34 = vld [vmem:[#allocation23 + $0x18] sm:$0xff] }
 0xd4b   : > { %v13505_v39 = vcombine.low %v13066_v45, %v13206_v8  ;;  %v13506_v28 = vcombine.high %v13066_v45, %v13206_v8  ;;  %v13537_v46 = vcombine.low %v13346_v20, %v13486_v58  ;;  %v13538_v31 = vcombine.high %v13346_v20, %v13486_v58 }
 0xd4c   : > { %v13275_v30 = vpop.f32.mrb[100].mxu1  ;;  %v11912_v45 = vmul.f32 0.03125, %v11904_v47 }
 0xd4d   : > { %v13513_v60 = vrot.slane %v13505_v39, %v21586_v3  ;;  %v13520_v15 = vrot.slane %v13506_v28, %v21586_v3  ;;  %v15389_v36 = vpop.f32.mrb[101].mxu1  ;;  %v13276_v33 = vadd.f32 %v14515_v11, %v13275_v30  ;;  %v13545_v54 = vrot.slane %v13537_v46, %v21586_v3 }
 0xd4e   : > { %v13552_v1 = vrot.slane %v13538_v31, %v21586_v3  ;;  %v15529_v46 = vpack.c.bf16 %v13628_v34, %v13627_v12  ;;  %v11920_v59 = vadd.f32 1e-05, %v11912_v45 }
 0xd4f   : > { %v13553_v50 = vcombine.low %v13497_v16, %v13513_v60  ;;  %v13554_v23 = vcombine.high %v13497_v16, %v13513_v60  ;;  %v13569_v55 = vcombine.low %v13504_v43, %v13520_v15  ;;  %v13570_v2 = vcombine.high %v13504_v43, %v13520_v15  ;;  %v15878_v16 = vpop.eup %15877 }
 0xd50   : > { %v13415_v19 = vpop.f32.mrb[102].mxu1  ;;  %v15880_v13 = vpop.eup %15879 }
 0xd51   : > { %v15399_v21 = vpop.f32.mrb[103].mxu1  ;;  %v13416_v63 = vadd.f32 %v14515_v11, %v13415_v19  ;;  %v11918_v11 = vadd.f32 1e-05, %v11910_v52  ;;  %v13561_v8 = vrot.slane %v13553_v50, %v17360_v29  ;;  %v13568_v6 = vrot.slane %v13554_v23, %v17360_v29 }
 0xd52   : > { %v13577_v39 = vrot.slane %v13569_v55, %v17360_v29  ;;  %v13584_v28 = vrot.slane %v13570_v2, %v17360_v29  ;;  %v11929_v50 = vmul.f32 %v15880_v13, %v20828_v7  ;;  %v14488_v55 = vld [vmem:[#allocation19] ss:$0 sm:$0xff]  ;;  %v11930_v2 = vmul.f32 %v15878_v16, %v20825_v35 }
 0xd53   : > { %v13521_v4 = vcombine.low %v13276_v33, %v13416_v63  ;;  %v13522_v41 = vcombine.high %v13276_v33, %v13416_v63  ;;  %15887 = vrsqrt.f32 %v11918_v11 }
 0xd54   : > { %15889 = vrsqrt.f32 %v11919_v49  ;;  %v11943_v32 = vmul.f32 %v14488_v55, %v11929_v50  ;;  %v11944_v7 = vmul.f32 %v14488_v55, %v11930_v2 }
 0xd55   : > { %v13529_v27 = vrot.slane %v13521_v4, %v21586_v3  ;;  %v13536_v44 = vrot.slane %v13522_v41, %v21586_v3  ;;  %15891 = vrsqrt.f32 %v11920_v59 }
 0xd56   : > { %v20963_v24 = vadd.f32 %v14489_v25, %v11943_v32 }
 0xd57   : > { %v13585_v40 = vcombine.low %v13529_v27, %v13545_v54  ;;  %v13586_v48 = vcombine.high %v13529_v27, %v13545_v54  ;;  %v13601_v14 = vcombine.low %v13536_v44, %v13552_v1  ;;  %v13602_v20 = vcombine.high %v13536_v44, %v13552_v1  ;;  %v14540_v54 = vld [vmem:[%s21592_s7] ss:$0 sm:$0xff] }
 0xd59   : > { %v13593_v58 = vrot.slane %v13585_v40, %v17360_v29  ;;  %v13600_v0 = vrot.slane %v13586_v48, %v17360_v29  ;;  %v13609_v3 = vrot.slane %v13601_v14, %v17360_v29  ;;  %v13616_v5 = vrot.slane %v13602_v20, %v17360_v29  ;;  %v15882_v29 = vpop.eup %15881 }
 0xd5a   : > { %v15884_v18 = vpop.eup %15883  ;;  %v11932_v19 = vmul.f32 %v15882_v29, %v20837_v42 }
 0xd5b   : > { %v20928_v31 = vcombine.high %v13561_v8, %v13593_v58  ;;  %v20930_v17 = vcombine.low %v13561_v8, %v13593_v58  ;;  %v20932_v22 = vcombine.low %v13568_v6, %v13600_v0  ;;  %v20934_v30 = vcombine.high %v13568_v6, %v13600_v0  ;;  %v15886_v23 = vpop.eup %15885 }
 0xd5c   : > { %v20936_v43 = vcombine.low %v13577_v39, %v13609_v3  ;;  %v20938_v60 = vcombine.high %v13577_v39, %v13609_v3  ;;  %v20940_v15 = vcombine.low %v13584_v28, %v13616_v5  ;;  %v20942_v36 = vcombine.high %v13584_v28, %v13616_v5 }
 0xd5d   : > { %15413 = vmatprep.mubr.msk.f32.mxu1 %vm1016_vm0, %v20930_v17  ;;  %v15888_v38 = vpop.eup %15887  ;;  %v11933_v33 = vmul.f32 %v15886_v23, %v20852_v26  ;;  %v11946_v63 = vmul.f32 %v14488_v55, %v11932_v19 }
 0xd5e   : > { %15414 = vmatmul.mubr.msk.f32.vlgmr.msra.gmra.mrb[104].mxu1 %vm1016_vm0, %v20928_v31  ;;  %v15890_v35 = vpop.eup %15889  ;;  %v11934_v62 = vmul.f32 %v15888_v38, %v20849_v9 }
 0xd5f   : > { %15416 = vmatprep.mubr.msk.f32.mxu1 %vm1016_vm0, %v20932_v22  ;;  %15528 = vmatpush3.bf16.msra.mxu1 %v20906_v57  ;;  %v11931_v57 = vmul.f32 %v15884_v18, %v20840_v51  ;;  %v20970_v51 = vadd.f32 %v14489_v25, %v11944_v7  ;;  %v15892_v52 = vpop.eup %15891  ;;  %v11947_v37 = vmul.f32 %v14488_v55, %v11933_v33 }
 0xd60   : > { %15530 = vmatprep.subr.bf16.mxu1 %v15529_v46  ;;  %v11935_v4 = vmul.f32 %v15890_v35, %v20864_v10  ;;  %v20980_v26 = vadd.f32 %v14489_v25, %v11946_v63  ;;  %v11948_v41 = vmul.f32 %v14488_v55, %v11934_v62  ;;  %v11936_v61 = vmul.f32 %v15892_v52, %v20861_v56 }
 0xd61   : > { %v11945_v21 = vmul.f32 %v14488_v55, %v11931_v57  ;;  %v20983_v47 = vadd.f32 %v14489_v25, %v11947_v37 }
 0xd62   : > { %15417 = vmatmul.mubr.msk.f32.gmra.mrb[106].mxu1 %vm1016_vm0, %v20934_v30  ;;  %v11949_v9 = vmul.f32 %v14488_v55, %v11935_v4  ;;  %v20989_v10 = vadd.f32 %v14489_v25, %v11948_v41  ;;  %v11950_v27 = vmul.f32 %v14488_v55, %v11936_v61 }
 0xd63   : > { %15419 = vmatprep.mubr.msk.f32.mxu1 %vm1016_vm0, %v20936_v43  ;;  %15532 = vmatpush3.bf16.msra.mxu1 %v15529_v46  ;;  %v20973_v42 = vadd.f32 %v14489_v25, %v11945_v21 }
 0xd64   : > { %v20991_v44 = vadd.f32 %v14489_v25, %v11949_v9  ;;  %v20997_v56 = vadd.f32 %v14489_v25, %v11950_v27 }
 0xd66   : > { %15420 = vmatmul.mubr.msk.f32.gmra.mrb[108].mxu1 %vm1016_vm0, %v20938_v60 }
 0xd67   : > { %15422 = vmatprep.mubr.msk.f32.mxu1 %vm1016_vm0, %v20940_v15 }
 0xd6a   : > { %15423 = vmatmul.mubr.msk.f32.gmra.mrb[110].mxu1 %vm1016_vm0, %v20942_v36 }
 0xd6b   : > { %15433 = vmatprep.mubr.msk.f32.mxu1 %vm1016_vm0, %v20963_v24 }
 0xd6e   : > { %15434 = vmatmul.mubr.msk.f32.vlgmr.msra.gmra.mrb[104].mxu1 %vm1016_vm0, %v20970_v51 }
 0xd6f   : > { %15436 = vmatprep.mubr.msk.f32.mxu1 %vm1016_vm0, %v20973_v42 }
 0xd72   : > { %15437 = vmatmul.mubr.msk.f32.gmra.mrb[106].mxu1 %vm1016_vm0, %v20980_v26 }
 0xd73   : > { %15439 = vmatprep.mubr.msk.f32.mxu1 %vm1016_vm0, %v20983_v47 }
 0xd76   : > { %15440 = vmatmul.mubr.msk.f32.gmra.mrb[108].mxu1 %vm1016_vm0, %v20989_v10 }
 0xd77   : > { %15442 = vmatprep.mubr.msk.f32.mxu1 %vm1016_vm0, %v20991_v44 }
 0xd7a   : > { %15443 = vmatmul.mubr.msk.f32.gmra.mrb[110].mxu1 %vm1016_vm0, %v20997_v56 }
 0xe41   : > { %v15435_v1 = vpop.f32.mrb[104].mxu1 }
 0xe42   : > { %v13899_v11 = vadd.f32 %v15435_v1, %v14540_v54  ;;  %v13852_v53 = vpop.f32.mrb[105].mxu1 }
 0xe43   : > { %v13898_v40 = vadd.f32 %v14540_v54, %v13852_v53 }
 0xe44   : > { %v14542_v48 = vmul.f32 -1.442695, %v13899_v11 }
 0xe45   : > { %v14541_v14 = vmul.f32 -1.442695, %v13898_v40  ;;  %v15438_v20 = vpop.f32.mrb[106].mxu1 }
 0xe46   : > { %15893 = vpow2.f32 %v14542_v48  ;;  %v13901_v12 = vadd.f32 %v15438_v20, %v14540_v54  ;;  %v13862_v34 = vpop.f32.mrb[107].mxu1 }
 0xe47   : > { %15895 = vpow2.f32 %v14541_v14  ;;  %v13900_v45 = vadd.f32 %v14540_v54, %v13862_v34 }
 0xe48   : > { %v14544_v8 = vmul.f32 -1.442695, %v13901_v12 }
 0xe49   : > { %v14543_v6 = vmul.f32 -1.442695, %v13900_v45  ;;  %v15441_v58 = vpop.f32.mrb[108].mxu1 }
 0xe4a   : > { %15897 = vpow2.f32 %v14544_v8  ;;  %v13903_v0 = vadd.f32 %v15441_v58, %v14540_v54  ;;  %v13872_v3 = vpop.f32.mrb[109].mxu1 }
 0xe4b   : > { %15899 = vpow2.f32 %v14543_v6  ;;  %v13902_v5 = vadd.f32 %v14540_v54, %v13872_v3 }
 0xe4c   : > { %v14546_v49 = vmul.f32 -1.442695, %v13903_v0 }
 0xe4d   : > { %v14545_v39 = vmul.f32 -1.442695, %v13902_v5  ;;  %v15444_v28 = vpop.f32.mrb[110].mxu1 }
 0xe4e   : > { %15901 = vpow2.f32 %v14546_v49  ;;  %v13905_v46 = vadd.f32 %v15444_v28, %v14540_v54  ;;  %v13882_v16 = vpop.f32.mrb[111].mxu1 }
 0xe4f   : > { %15903 = vpow2.f32 %v14545_v39  ;;  %v13904_v13 = vadd.f32 %v14540_v54, %v13882_v16 }
 0xe50   : > { %v15894_v29 = vpop.eup %15893  ;;  %v14548_v59 = vmul.f32 -1.442695, %v13905_v46 }
 0xe51   : > { %v15896_v18 = vpop.eup %15895  ;;  %v13931_v50 = vadd.f32 1.0, %v15894_v29  ;;  %v14547_v23 = vmul.f32 -1.442695, %v13904_v13 }
 0xe52   : > { %v13930_v55 = vadd.f32 1.0, %v15896_v18  ;;  %15905 = vpow2.f32 %v14548_v59 }
 0xe53   : > { %15907 = vrcp.f32 %v13931_v50 }
 0xe54   : > { %v15898_v2 = vpop.eup %15897  ;;  %15909 = vrcp.f32 %v13930_v55 }
 0xe55   : > { %v15900_v32 = vpop.eup %15899  ;;  %v13933_v57 = vadd.f32 1.0, %v15898_v2  ;;  %15911 = vpow2.f32 %v14547_v23 }
 0xe56   : > { %v13932_v25 = vadd.f32 1.0, %v15900_v32 }
 0xe57   : > { %15913 = vrcp.f32 %v13933_v57 }
 0xe58   : > { %v15902_v7 = vpop.eup %15901  ;;  %15915 = vrcp.f32 %v13932_v25 }
 0xe59   : > { %v15904_v19 = vpop.eup %15903  ;;  %v13935_v38 = vadd.f32 1.0, %v15902_v7 }
 0xe5a   : > { %v13934_v21 = vadd.f32 1.0, %v15904_v19 }
 0xe5b   : > { %15917 = vrcp.f32 %v13935_v38 }
 0xe5c   : > { %v15906_v33 = vpop.eup %15905  ;;  %15919 = vrcp.f32 %v13934_v21 }
 0xe5d   : > { %v15908_v35 = vpop.eup %15907  ;;  %v13937_v63 = vadd.f32 1.0, %v15906_v33 }
 0xe5e   : > { %v15910_v62 = vpop.eup %15909  ;;  %v13963_v52 = vsub.f32 1.0, %v15908_v35  ;;  %v13955_v41 = vmul.f32 %v15908_v35, %v20970_v51 }
 0xe5f   : > { %v15912_v37 = vpop.eup %15911  ;;  %v13962_v4 = vsub.f32 1.0, %v15910_v62  ;;  %15921 = vrcp.f32 %v13937_v63  ;;  %v13954_v54 = vmul.f32 %v15910_v62, %v20963_v24 }
 0xe60   : > { %v13971_v61 = vmul.f32 %v13963_v52, %v20928_v31  ;;  %v13936_v9 = vadd.f32 1.0, %v15912_v37 }
 0xe61   : > { %v15914_v27 = vpop.eup %15913  ;;  %v13970_v1 = vmul.f32 %v13962_v4, %v20930_v17 }
 0xe62   : > { %v15916_v11 = vpop.eup %15915  ;;  %v13979_v53 = vadd.f32 %v13971_v61, %v13955_v41  ;;  %v13965_v40 = vsub.f32 1.0, %v15914_v27  ;;  %15923 = vrcp.f32 %v13936_v9  ;;  %v13957_v31 = vmul.f32 %v15914_v27, %v20980_v26 }
 0xe63   : > { %v13978_v48 = vadd.f32 %v13970_v1, %v13954_v54  ;;  %v13964_v14 = vsub.f32 1.0, %v15916_v11  ;;  %v13956_v17 = vmul.f32 %v15916_v11, %v20973_v42 }
 0xe64   : > { %13987 = vst.msk [vmem:[%s21009_s21 + $0x8] sm:$0xff] %vm1016_vm0, %v13979_v53  ;;  %v13973_v24 = vmul.f32 %v13965_v40, %v20934_v30 }
 0xe65   : > { %v15918_v51 = vpop.eup %15917  ;;  %13986 = vst.msk [vmem:[%s21009_s21] sm:$0xff] %vm1016_vm0, %v13978_v48  ;;  %v13972_v20 = vmul.f32 %v13964_v14, %v20932_v22 }
 0xe66   : > { %v15920_v12 = vpop.eup %15919  ;;  %v13981_v34 = vadd.f32 %v13973_v24, %v13957_v31  ;;  %v13967_v45 = vsub.f32 1.0, %v15918_v51  ;;  %v13959_v26 = vmul.f32 %v15918_v51, %v20989_v10 }
 0xe67   : > { %v13980_v8 = vadd.f32 %v13972_v20, %v13956_v17  ;;  %v13966_v6 = vsub.f32 1.0, %v15920_v12  ;;  %v13958_v22 = vmul.f32 %v15920_v12, %v20983_v47 }
 0xe68   : > { %13989 = vst.msk [vmem:[%s21009_s21 + $0x18] sm:$0xff] %vm1016_vm0, %v13981_v34  ;;  %v13975_v30 = vmul.f32 %v13967_v45, %v20938_v60 }
 0xe69   : > { %v15922_v58 = vpop.eup %15921  ;;  %13988 = vst.msk [vmem:[%s21009_s21 + $0x10] sm:$0xff] %vm1016_vm0, %v13980_v8  ;;  %v13974_v42 = vmul.f32 %v13966_v6, %v20936_v43 }
 0xe6a   : > { %v13983_v0 = vadd.f32 %v13975_v30, %v13959_v26  ;;  %v13969_v3 = vsub.f32 1.0, %v15922_v58  ;;  %v13961_v10 = vmul.f32 %v15922_v58, %v20997_v56 }
 0xe6b   : > { %v13982_v5 = vadd.f32 %v13974_v42, %v13958_v22 }
 0xe6c   : > { %v15924_v49 = vpop.eup %15923  ;;  %13991 = vst.msk [vmem:[%s21009_s21 + $0x28] sm:$0xff] %vm1016_vm0, %v13983_v0  ;;  %v13977_v60 = vmul.f32 %v13969_v3, %v20942_v36 }
 0xe6d   : > { %13990 = vst.msk [vmem:[%s21009_s21 + $0x20] sm:$0xff] %vm1016_vm0, %v13982_v5  ;;  %v13968_v39 = vsub.f32 1.0, %v15924_v49  ;;  %v13960_v43 = vmul.f32 %v15924_v49, %v20991_v44 }
 0xe6e   : > { %v13985_v47 = vadd.f32 %v13977_v60, %v13961_v10 }
 0xe6f   : > { %v13976_v28 = vmul.f32 %v13968_v39, %v20940_v15 }
 0xe70   : > { %13993 = vst.msk [vmem:[%s21009_s21 + $0x38] sm:$0xff] %vm1016_vm0, %v13985_v47 }
 0xe71   : > { %v13984_v36 = vadd.f32 %v13976_v28, %v13960_v43 }
 0xe73   : > { %13992 = vst.msk [vmem:[%s21009_s21 + $0x30] sm:$0xff] %vm1016_vm0, %v13984_v36 }
 0xe74   : > { %16372 = shalt.err (!%p16369_p8)
}
 0xe75   : > { %s16373_s7 = scalar_lea.hbm %s21042_s26, 1024  ;;  %s16377_s28 = scalar_lea.hbm %s21594_s1, 2048 }
 0xe76   : > { %p16374_p1 = scmp.ne.s32.totalorder %s21042_s26, %s16373_s7  ;;  %p16378_p12 = scmp.lt.u32.totalorder %s21042_s26, %s21594_s1 }
 0xe77   : > { %p16379_p10 = scmp.lt.u32.totalorder %s16377_s28, %s16373_s7  ;;  %p16381_p6 = scmp.lt.u32.totalorder %s16373_s7, %s21042_s26 }
 0xe78   : > { %p16375_p13 = pnand %p16374_p1, %p21595_p2 }
 0xe79   : > { %p16380_p4 = por %p16379_p10, %p16378_p12 }
 0xe7a   : > { %p16376_p11 = pneg %p16375_p13 }
 0xe7b   : > { %p16382_p7 = por %p16381_p6, %p16380_p4 }
 0xe7d   : > { %p16383_p0 = pnand %p16382_p7, %p16376_p11 }
 0xe7f   : > { %16386 = shalt.err (!%p16383_p0)
}
 0xe80   : > { %s16484_s5 = smov 128   ;;  %s16485_s0 = smov 256  }
 0xe81   : > { %15595 = dma.vmem_to_hbm [thread:$0]  (%p21595_p2), %s21044_s24, 1024, %s21042_s26, %s13995_s14, %s16484_s5, %s16485_s0, %s16480_s6  }
 0xe82 PF: > { %s21596_s10 = sld [smem:[#allocation36_spill]]  ;;  %s21597_s21 = sld [smem:[#allocation45_spill]] }
 0xe83   : > { %s21598_s8 = sld [smem:[#allocation38_spill]] }
 0xe88   : > { %s14022_s28 = sand.u32 1, %s21596_s10   ;;  %p21599_p3 = scmp.ne.s32.totalorder %s21597_s21, 0 }
 0xe89   : > { %p21600_p5 = scmp.ge.s32.totalorder %s21598_s8, 2  ;;  %s14023_s7 = scalar_lea.sflag [#allocation4], %s14022_s28 }
 0xe8b   : > { %p15645_p9 = pnand %p21600_p5, %p21599_p3 }
 0xe8d   : > { %16436 = dma.done.wait (!%p15645_p9), %s14023_s7, 1024  }
 0xe8e   : > { %16438 = vsyncadd (!%p15645_p9), %s14023_s7, 4294966272  ;;  %s21601_s28 = sld [smem:[#allocation41_spill]]  ;;  %s21602_s5 = sld [smem:[#allocation37_spill]] }
 0xe8f   : > { %s21603_s16 = sld [smem:[#allocation42_spill]]  ;;  %s21604_s26 = smov %s16449_s27 }
 0xe94   : > { %p46_p8 = scmp.ge.s32.totalorder %s21601_s28, 4  }
 0xe95   : > { %s21605_s27 = smov %s21603_s16 }
 0xe96   :  { %48 = sbr.rel (!%p46_p8) target bundleno = 34 (0x22), region = 233 }
 0xe9d   :  { %14028 = vsyncpa [#allocation3], 1 }
 0xe9e   :  { %14030 = vsyncpa [#allocation3 + $0x1], 1 }
 0xe9f   :  { %14031 = vsyncpa [#allocation6], 1 }
 0xea0   :  { %14033 = vsyncpa [#allocation6 + $0x1], 1 }
 0xea1   :  { %14034 = vsyncpa [#allocation9], 1 }
 0xea2   :  { %14035 = vsyncpa [#allocation12], 1 }
 0xea3   :  { %14036 = vsyncpa [#allocation15], 1 }
 0xea4   :  { %14037 = vsyncpa [#allocation18], 1 }
 0xea5   :  { %14038 = vsyncpa [#allocation21], 1 }
 0xea6   :  { %14039 = vsyncpa [#allocation24], 1 }
 0xea7   :  { %14040 = vsyncpa [#allocation4], 1 }
 0xea8   :  { %14042 = vsyncpa [#allocation4 + $0x1], 1 }

</bundles_post_ra>
